<compile_context>
chip_gen: v7x
topology: tpu7x:2x2x1
jax: 0.10.0
libtpu: 0.0.40
codegen_flags: <defaults>
</compile_context>

<pallas_src>
import functools
import math

import numpy as np
import jax
import jax.numpy as jnp
from jax.experimental import pallas as pl
from jax.experimental.pallas import tpu as pltpu

# ---- GDN / NonNegativeParametrizer constants (match PyTorch module) ----
REPARAM_OFFSET = 2.0 ** (-18)
PEDESTAL = REPARAM_OFFSET ** 2
BETA_MIN = 1e-6
BETA_BOUND = (BETA_MIN + PEDESTAL) ** 0.5
GAMMA_BOUND = PEDESTAL ** 0.5
LEAKY_SLOPE = 0.01  # nn.LeakyReLU default

LANE = 128
_SCR_PAD = 8        # extra scratch rows so the last conv2 tap slice stays in range


def _round_up(x, m):
    return (x + m - 1) // m * m


# --------------------------- fused Pallas kernel -----------------------------
def _fused_block_kernel(xph_ref, mask_ref, dw_ref, pw_ref, b1_ref, w2_ref,
                        b2_ref, beta_ref, gT_ref, skw_ref, skb_ref,
                        o_ref, y1_scr, *, Wp, stride):
    """One (batch, row-tile) step: depthwise3x3-stride (VPU) + pointwise 1x1
    + LeakyReLU + conv2 3x3 (9 accumulated matmuls over in-VMEM y1) + GDN +
    strided 1x1 skip + residual add."""
    s = stride
    M2, Cp = o_ref.shape
    M1 = y1_scr.shape[0] - _SCR_PAD
    Cin = xph_ref.shape[-1]

    # ---- conv1 depthwise 3x3 (stride folded into the phase layout): 9 VPU FMAs
    y1dw = jnp.zeros((M1, Cin), jnp.float32)
    for ki in range(3):
        qi, pi = divmod(ki, s)
        for kj in range(3):
            qj, pj = divmod(kj, s)
            ph = pi * s + pj
            slab = xph_ref[ph, pl.ds(qi * Wp + qj, M1), :]           # bf16
            k = ki * 3 + kj
            y1dw = y1dw + slab * dw_ref[k:k + 1, :]                  # f32 accum

    # ---- conv1 pointwise 1x1 (fused dw+pw bias) + LeakyReLU + halo zeroing
    y1 = jnp.dot(y1dw.astype(jnp.bfloat16), pw_ref[...],
                 preferred_element_type=jnp.float32) + b1_ref[...]
    y1 = jnp.where(y1 >= 0.0, y1, LEAKY_SLOPE * y1)                  # LeakyReLU
    y1 = y1 * mask_ref[...]            # zero halo rows/cols -> conv2 zero pad
    y1_scr[0:M1, :] = y1.astype(jnp.bfloat16)
    y1_scr[M1:M1 + _SCR_PAD, :] = jnp.zeros((_SCR_PAD, Cp), jnp.bfloat16)

    # ---- conv2 3x3: 9 accumulated MXU matmuls over shifted y1 slices (VMEM)
    y2 = jnp.zeros((M2, Cp), jnp.float32)
    for ki in range(3):
        for kj in range(3):
            tap = y1_scr[pl.ds(ki * Wp + kj, M2), :]                 # bf16
            y2 = y2 + jnp.dot(tap, w2_ref[ki * 3 + kj],
                              preferred_element_type=jnp.float32)
    y2 = y2 + b2_ref[...]

    # ---- GDN (beta/gamma reparametrized in the wrapper), bf16 MXU + EUP rsqrt
    norm = jnp.dot((y2 * y2).astype(jnp.bfloat16), gT_ref[...],
                   preferred_element_type=jnp.float32) + beta_ref[...]
    gdn = y2 * jax.lax.rsqrt(norm)

    # ---- strided 1x1 skip: center tap read straight from the phase tile
    ci, pci = divmod(1, s)
    cj, pcj = divmod(1, s)
    xs = xph_ref[pci * s + pcj, pl.ds((ci + 1) * Wp + (cj + 1), M2), :]
    ident = jnp.dot(xs, skw_ref[...],
                    preferred_element_type=jnp.float32) + skb_ref[...]
    o_ref[...] = gdn + ident


# ------------------------------ tiling helpers --------------------------------
def _vmem_budget():
    """Generation-aware VMEM budget / limit (v5e/v6e: 128 MiB phys, v7x: 64 MiB)."""
    phys = 64 * 1024 * 1024
    try:
        info = pltpu.get_tpu_info()
        phys = int(getattr(info, "vmem_capacity_bytes", phys)) or phys
    except Exception:
        pass
    budget = min(phys // 2, 64 * 1024 * 1024)
    limit = min((phys * 3) // 4, 100 * 1024 * 1024)
    return budget, limit


def _vmem_need(TH, Wo, Cin, Cp, s):
    """Working-set estimate incl. double-buffered streams, resident params,
    bf16 scratch AND the in-kernel f32 temporaries (per perf review)."""
    qmax = 2 // s
    Wp = Wo + 2
    PH = s * s
    Rt = TH + 3 + qmax
    M1 = (TH + 2) * Wp
    M2 = TH * Wp
    streams = 2 * (PH * Rt * Wp * Cin * 2 + M1 * 4 + M2 * Cp * 4)
    resident = 2 * (9 * Cin * 4 + 2 * Cin * Cp * 2 + 9 * Cp * Cp * 2
                    + Cp * Cp * 2 + 5 * Cp * 4)
    scratch = (M1 + _SCR_PAD) * Cp * 2
    temps = (2 * M1 * Cin * 4          # depthwise accumulator + slab
             + M1 * Cp * 6             # y1 f32 + bf16 copy
             + 6 * M2 * Cp * 4         # y2 / y2^2 / norm / gdn / ident / staging
             + 2 * M2 * Cp * 2)        # conv2 tap loads
    return streams + resident + scratch + temps


def _pick_tile_rows(Ho, Wo, Cin, Cp, s, n_batch, budget_bytes):
    """Largest row-tile fitting the VMEM budget; keep T>=2 when N==1 so both
    v7x TensorCores stay busy."""
    cap = Ho
    if n_batch < 2 and Ho >= 2:
        cap = min(cap, -(-Ho // 2))
    TH = max(1, min(cap, 256))
    while TH > 1 and _vmem_need(TH, Wo, Cin, Cp, s) > budget_bytes:
        TH = max(1, TH // 2)
    return TH


# ------------------------------ wrapper --------------------------------------
def sep_residual_block_forward(x_nchw, params, stride=2):
    s = int(stride)
    x = jnp.transpose(x_nchw, (0, 2, 3, 1)).astype(jnp.bfloat16)   # NHWC, bf16 early
    N, H, W, Cin = x.shape
    Cout = params["pw_w"].shape[0]
    Ho = (H - 1) // s + 1
    Wo = (W - 1) // s + 1
    Cp = _round_up(Cout, LANE)           # lane-dense (padded) output channels
    Wp = Wo + 2                          # y1 columns incl. conv2 zero-padding
    qmax = 2 // s
    PH = s * s

    budget, vmem_limit = _vmem_budget()
    TH = _pick_tile_rows(Ho, Wo, Cin, Cp, s, N, budget)
    T = -(-Ho // TH)
    Rt = TH + 3 + qmax                   # phase-tile rows (incl. halo + slack)
    M1 = (TH + 2) * Wp                   # y1 halo-tile rows (flattened)
    M2 = TH * Wp                         # output-tile rows (flattened)
    Hph = (T - 1) * TH + Rt              # global phase-array height

    # ---- phase-decimated, zero-padded input (streams ~1x of x, bf16) ----
    pad_t = s + 1
    pad_b = Hph * s - (H + pad_t)
    pad_l = s + 1
    pad_r = Wp * s - (W + pad_l)
    xpp = jnp.pad(x, ((0, 0), (pad_t, pad_b), (pad_l, pad_r), (0, 0)))
    xph = jnp.transpose(xpp.reshape(N, Hph, s, Wp, s, Cin),
                        (0, 2, 4, 1, 3, 5))                     # (N,s,s,Hph,Wp,Cin)
    xph_tiles = jnp.stack([xph[:, :, :, t * TH:t * TH + Rt] for t in range(T)],
                          axis=1)                               # (N,T,s,s,Rt,Wp,Cin)
    xph_tiles = xph_tiles.reshape(N, T, PH, Rt * Wp, Cin)

    # ---- validity mask for the y1 halo tile (zero = conv2 zero padding) ----
    g = np.arange(T)[:, None] * TH - 1 + np.arange(TH + 2)[None, :]
    row_ok = (g >= 0) & (g < Ho)
    col_ok = (np.arange(Wp) >= 1) & (np.arange(Wp) <= Wo)
    mask = jnp.asarray((row_ok[:, :, None] & col_ok[None, None, :])
                       .astype(np.float32).reshape(T, M1, 1))

    # ---- fused / padded parameters (reparam + packing hoisted out of kernel) --
    dwk = jnp.transpose(params["dw_w"].reshape(Cin, 9), (1, 0))    # (9, Cin) f32
    pw = params["pw_w"].reshape(Cout, Cin)
    pwT = (jnp.zeros((Cin, Cp), jnp.float32).at[:, :Cout].set(pw.T)
           .astype(jnp.bfloat16))
    b1 = jnp.zeros((1, Cp), jnp.float32).at[0, :Cout].set(
        params["pw_b"] + pw @ params["dw_b"])

    w2k = (jnp.zeros((3, 3, Cp, Cp), jnp.float32)
           .at[:, :, :Cout, :Cout].set(jnp.transpose(params["w2"], (2, 3, 1, 0)))
           .reshape(9, Cp, Cp).astype(jnp.bfloat16))
    b2 = jnp.zeros((1, Cp), jnp.float32).at[0, :Cout].set(params["b2"])

    beta_r = jnp.maximum(params["beta"], BETA_BOUND) ** 2 - PEDESTAL
    beta_p = jnp.ones((1, Cp), jnp.float32).at[0, :Cout].set(beta_r)
    gamma_r = jnp.maximum(params["gamma"], GAMMA_BOUND) ** 2 - PEDESTAL
    gT = (jnp.zeros((Cp, Cp), jnp.float32).at[:Cout, :Cout].set(gamma_r.T)
          .astype(jnp.bfloat16))

    skw = (jnp.zeros((Cin, Cp), jnp.float32)
           .at[:, :Cout].set(params["skip_w"].reshape(Cout, Cin).T)
           .astype(jnp.bfloat16))
    skb = jnp.zeros((1, Cp), jnp.float32).at[0, :Cout].set(params["skip_b"])

    # ---- pallas call: grid over (batch, output-row-tiles) ----
    stream_x = lambda n, t: (n, t, 0, 0, 0)
    const2 = lambda n, t: (0, 0)
    const3 = lambda n, t: (0, 0, 0)
    in_specs = [
        pl.BlockSpec((None, None, PH, Rt * Wp, Cin), stream_x),   # phase-split x
        pl.BlockSpec((None, M1, 1), lambda n, t: (t, 0, 0)),      # y1 halo mask
        pl.BlockSpec((9, Cin), const2),                           # depthwise w
        pl.BlockSpec((Cin, Cp), const2),                          # pointwise w
        pl.BlockSpec((1, Cp), const2),                            # fused conv1 bias
        pl.BlockSpec((9, Cp, Cp), const3),                        # conv2 per-tap w
        pl.BlockSpec((1, Cp), const2),                            # conv2 bias
        pl.BlockSpec((1, Cp), const2),                            # GDN beta
        pl.BlockSpec((Cp, Cp), const2),                           # GDN gamma^T
        pl.BlockSpec((Cin, Cp), const2),                          # skip w
        pl.BlockSpec((1, Cp), const2),                            # skip bias
    ]
    out = pl.pallas_call(
        functools.partial(_fused_block_kernel, Wp=Wp, stride=s),
        grid=(N, T),
        in_specs=in_specs,
        out_specs=pl.BlockSpec((None, None, M2, Cp), lambda n, t: (n, t, 0, 0)),
        out_shape=jax.ShapeDtypeStruct((N, T, M2, Cp), jnp.float32),
        scratch_shapes=[pltpu.VMEM((M1 + _SCR_PAD, Cp), jnp.bfloat16)],
        compiler_params=pltpu.CompilerParams(
            dimension_semantics=("parallel", "parallel"),
            vmem_limit_bytes=int(vmem_limit)),
    )(xph_tiles, mask, dwk, pwT, b1, w2k, b2, beta_p, gT, skw, skb)

    # crop padded columns / rows / channels, back to NCHW
    out = out.reshape(N, T, TH, Wp, Cp)[:, :, :, :Wo, :Cout]
    out = out.reshape(N, T * TH, Wo, Cout)[:, :Ho]
    return jnp.transpose(out, (0, 3, 1, 2))


# ----------------------- deterministic parameter init ------------------------
def init_params(key, in_ch, out_ch):
    ks = jax.random.split(key, 8)

    def u(k, shape, fan_in):
        b = 1.0 / math.sqrt(fan_in)
        return jax.random.uniform(k, shape, jnp.float32, -b, b)

    return {
        "dw_w": u(ks[0], (in_ch, 1, 3, 3), 9),           # depthwise conv
        "dw_b": u(ks[1], (in_ch,), 9),
        "pw_w": u(ks[2], (out_ch, in_ch, 1, 1), in_ch),  # pointwise conv
        "pw_b": u(ks[3], (out_ch,), in_ch),
        "w2": u(ks[4], (out_ch, out_ch, 3, 3), out_ch * 9),
        "b2": u(ks[5], (out_ch,), out_ch * 9),
        # GDN params, exactly as GDN.__init__ builds them:
        "beta": jnp.sqrt(jnp.ones((out_ch,), jnp.float32) + PEDESTAL),
        "gamma": jnp.sqrt(0.1 * jnp.eye(out_ch, dtype=jnp.float32) + PEDESTAL),
        "skip_w": u(ks[6], (out_ch, in_ch, 1, 1), in_ch),
        "skip_b": u(ks[7], (out_ch,), in_ch),
    }


# ------------------------- numpy reference (float64) -------------------------
def np_conv2d(x, w, b, stride=1, padding=0, groups=1):
    N, Cin, H, W = x.shape
    Cout, Cin_g, kh, kw = w.shape
    xp = np.pad(x, ((0, 0), (0, 0), (padding, padding), (padding, padding)))
    Ho = (H + 2 * padding - kh) // stride + 1
    Wo = (W + 2 * padding - kw) // stride + 1
    out = np.zeros((N, Cout, Ho, Wo), dtype=x.dtype)
    cog = Cout // groups
    for g in range(groups):
        xg = xp[:, g * Cin_g:(g + 1) * Cin_g]
        wg = w[g * cog:(g + 1) * cog]
        for i in range(Ho):
            for j in range(Wo):
                patch = xg[:, :, i * stride:i * stride + kh, j * stride:j * stride + kw]
                out[:, g * cog:(g + 1) * cog, i, j] = np.einsum("ncij,ocij->no", patch, wg)
    return out + b.reshape(1, Cout, 1, 1)


def ref_forward(x, p, stride):
    in_ch = x.shape[1]
    out = np_conv2d(x, p["dw_w"], p["dw_b"], stride=stride, padding=1, groups=in_ch)
    out = np_conv2d(out, p["pw_w"], p["pw_b"])
    out = np.where(out >= 0, out, LEAKY_SLOPE * out)
    out = np_conv2d(out, p["w2"], p["b2"], stride=1, padding=1)
    beta = np.maximum(p["beta"], BETA_BOUND) ** 2 - PEDESTAL
    gamma = np.maximum(p["gamma"], GAMMA_BOUND) ** 2 - PEDESTAL
    norm = np.einsum("ncij,oc->noij", out ** 2, gamma) + beta.reshape(1, -1, 1, 1)
    out = out / np.sqrt(norm)
    identity = np_conv2d(x, p["skip_w"], p["skip_b"], stride=stride)
    return out + identity


if __name__ == "__main__":
    N, Cin, Cout, H, W, stride = 2, 4, 8, 16, 16, 2
    key = jax.random.PRNGKey(0)
    kx, kp = jax.random.split(key)
    x = jax.random.normal(kx, (N, Cin, H, W), jnp.float32)
    params = init_params(kp, Cin, Cout)

    fwd = jax.jit(lambda xx, pp: sep_residual_block_forward(xx, pp, stride=stride))
    out = jax.block_until_ready(fwd(x, params))

    # correctness check against float64 numpy reference of the PyTorch math
    pnp = {k: np.asarray(v, dtype=np.float64) for k, v in params.items()}
    ref = ref_forward(np.asarray(x, dtype=np.float64), pnp, stride)
    out_np = np.asarray(out, dtype=np.float64)
    assert out_np.shape == ref.shape, (out_np.shape, ref.shape)
    assert np.allclose(out_np, ref, atol=5e-2, rtol=5e-2), \
        float(np.max(np.abs(out_np - ref)))
    print("KERNEL_OK")
</pallas_src>

<mosaic_0001>
module attributes {stable_mosaic.version = 11 : i64} {
  func.func @_fused_block_kernel(%arg0: i32, %arg1: i32, %arg2: memref<1x1x4x120x4xbf16, #tpu.memory_space<vmem>>, %arg3: memref<1x100x1xf32, #tpu.memory_space<vmem>>, %arg4: memref<9x4xf32, #tpu.memory_space<vmem>>, %arg5: memref<4x128xbf16, #tpu.memory_space<vmem>>, %arg6: memref<1x128xf32, #tpu.memory_space<vmem>>, %arg7: memref<9x128x128xbf16, #tpu.memory_space<vmem>>, %arg8: memref<1x128xf32, #tpu.memory_space<vmem>>, %arg9: memref<1x128xf32, #tpu.memory_space<vmem>>, %arg10: memref<128x128xbf16, #tpu.memory_space<vmem>>, %arg11: memref<4x128xbf16, #tpu.memory_space<vmem>>, %arg12: memref<1x128xf32, #tpu.memory_space<vmem>>, %arg13: memref<1x1x80x128xf32, #tpu.memory_space<vmem>>, %arg14: memref<108x128xbf16, #tpu.memory_space<vmem>>) attributes {dimension_semantics = [#tpu.dimension_semantics<parallel>, #tpu.dimension_semantics<parallel>], iteration_bounds = array<i64: 2, 1>, scalar_prefetch = 0 : i64, scratch_operands = 1 : i64, tpu.core_type = #tpu.core_type<tc>, window_params = [{transform_indices = @transform_0, window_bounds = array<i64: 1, 1, 4, 120, 4>}, {transform_indices = @transform_1, window_bounds = array<i64: 1, 100, 1>}, {pipeline_mode = #tpu.pipeline_mode<synchronous>, transform_indices = @transform_2, window_bounds = array<i64: 9, 4>}, {pipeline_mode = #tpu.pipeline_mode<synchronous>, transform_indices = @transform_3, window_bounds = array<i64: 4, 128>}, {pipeline_mode = #tpu.pipeline_mode<synchronous>, transform_indices = @transform_4, window_bounds = array<i64: 1, 128>}, {pipeline_mode = #tpu.pipeline_mode<synchronous>, transform_indices = @transform_5, window_bounds = array<i64: 9, 128, 128>}, {pipeline_mode = #tpu.pipeline_mode<synchronous>, transform_indices = @transform_6, window_bounds = array<i64: 1, 128>}, {pipeline_mode = #tpu.pipeline_mode<synchronous>, transform_indices = @transform_7, window_bounds = array<i64: 1, 128>}, {pipeline_mode = #tpu.pipeline_mode<synchronous>, transform_indices = @transform_8, window_bounds = array<i64: 128, 128>}, {pipeline_mode = #tpu.pipeline_mode<synchronous>, transform_indices = @transform_9, window_bounds = array<i64: 4, 128>}, {pipeline_mode = #tpu.pipeline_mode<synchronous>, transform_indices = @transform_10, window_bounds = array<i64: 1, 128>}, {transform_indices = @transform_11, window_bounds = array<i64: 1, 1, 80, 128>}]} {
    %cst = arith.constant 0.000000e+00 : f32
    %0 = vector.broadcast %cst : f32 to vector<100x4xf32>
    %c0 = arith.constant 0 : index
    %c0_0 = arith.constant 0 : index
    %c0_1 = arith.constant 0 : index
    %c0_2 = arith.constant 0 : index
    %c0_3 = arith.constant 0 : index
    %1 = vector.load %arg2[%c0, %c0_0, %c0_1, %c0_2, %c0_3] : memref<1x1x4x120x4xbf16, #tpu.memory_space<vmem>>, vector<1x1x1x100x4xbf16>
    %2 = vector.shape_cast %1 : vector<1x1x1x100x4xbf16> to vector<100x4xbf16>
    %c0_4 = arith.constant 0 : index
    %c0_5 = arith.constant 0 : index
    %3 = vector.load %arg4[%c0_4, %c0_5] : memref<9x4xf32, #tpu.memory_space<vmem>>, vector<1x4xf32>
    %4 = arith.extf %2 : vector<100x4xbf16> to vector<100x4xf32>
    %5 = vector.broadcast %3 : vector<1x4xf32> to vector<100x4xf32>
    %6 = arith.mulf %4, %5 : vector<100x4xf32>
    %7 = arith.addf %0, %6 : vector<100x4xf32>
    %c0_6 = arith.constant 0 : index
    %c0_7 = arith.constant 0 : index
    %c1 = arith.constant 1 : index
    %c0_8 = arith.constant 0 : index
    %c0_9 = arith.constant 0 : index
    %8 = vector.load %arg2[%c0_6, %c0_7, %c1, %c0_8, %c0_9] : memref<1x1x4x120x4xbf16, #tpu.memory_space<vmem>>, vector<1x1x1x100x4xbf16>
    %9 = vector.shape_cast %8 : vector<1x1x1x100x4xbf16> to vector<100x4xbf16>
    %c1_10 = arith.constant 1 : index
    %c0_11 = arith.constant 0 : index
    %10 = vector.load %arg4[%c1_10, %c0_11] : memref<9x4xf32, #tpu.memory_space<vmem>>, vector<1x4xf32>
    %11 = arith.extf %9 : vector<100x4xbf16> to vector<100x4xf32>
    %12 = vector.broadcast %10 : vector<1x4xf32> to vector<100x4xf32>
    %13 = arith.mulf %11, %12 : vector<100x4xf32>
    %14 = arith.addf %7, %13 : vector<100x4xf32>
    %c0_12 = arith.constant 0 : index
    %c0_13 = arith.constant 0 : index
    %c0_14 = arith.constant 0 : index
    %c1_15 = arith.constant 1 : index
    %c0_16 = arith.constant 0 : index
    %15 = vector.load %arg2[%c0_12, %c0_13, %c0_14, %c1_15, %c0_16] : memref<1x1x4x120x4xbf16, #tpu.memory_space<vmem>>, vector<1x1x1x100x4xbf16>
    %16 = vector.shape_cast %15 : vector<1x1x1x100x4xbf16> to vector<100x4xbf16>
    %c2 = arith.constant 2 : index
    %c0_17 = arith.constant 0 : index
    %17 = vector.load %arg4[%c2, %c0_17] : memref<9x4xf32, #tpu.memory_space<vmem>>, vector<1x4xf32>
    %18 = arith.extf %16 : vector<100x4xbf16> to vector<100x4xf32>
    %19 = vector.broadcast %17 : vector<1x4xf32> to vector<100x4xf32>
    %20 = arith.mulf %18, %19 : vector<100x4xf32>
    %21 = arith.addf %14, %20 : vector<100x4xf32>
    %c0_18 = arith.constant 0 : index
    %c0_19 = arith.constant 0 : index
    %c2_20 = arith.constant 2 : index
    %c0_21 = arith.constant 0 : index
    %c0_22 = arith.constant 0 : index
    %22 = vector.load %arg2[%c0_18, %c0_19, %c2_20, %c0_21, %c0_22] : memref<1x1x4x120x4xbf16, #tpu.memory_space<vmem>>, vector<1x1x1x100x4xbf16>
    %23 = vector.shape_cast %22 : vector<1x1x1x100x4xbf16> to vector<100x4xbf16>
    %c3 = arith.constant 3 : index
    %c0_23 = arith.constant 0 : index
    %24 = vector.load %arg4[%c3, %c0_23] : memref<9x4xf32, #tpu.memory_space<vmem>>, vector<1x4xf32>
    %25 = arith.extf %23 : vector<100x4xbf16> to vector<100x4xf32>
    %26 = vector.broadcast %24 : vector<1x4xf32> to vector<100x4xf32>
    %27 = arith.mulf %25, %26 : vector<100x4xf32>
    %28 = arith.addf %21, %27 : vector<100x4xf32>
    %c0_24 = arith.constant 0 : index
    %c0_25 = arith.constant 0 : index
    %c3_26 = arith.constant 3 : index
    %c0_27 = arith.constant 0 : index
    %c0_28 = arith.constant 0 : index
    %29 = vector.load %arg2[%c0_24, %c0_25, %c3_26, %c0_27, %c0_28] : memref<1x1x4x120x4xbf16, #tpu.memory_space<vmem>>, vector<1x1x1x100x4xbf16>
    %30 = vector.shape_cast %29 : vector<1x1x1x100x4xbf16> to vector<100x4xbf16>
    %c4 = arith.constant 4 : index
    %c0_29 = arith.constant 0 : index
    %31 = vector.load %arg4[%c4, %c0_29] : memref<9x4xf32, #tpu.memory_space<vmem>>, vector<1x4xf32>
    %32 = arith.extf %30 : vector<100x4xbf16> to vector<100x4xf32>
    %33 = vector.broadcast %31 : vector<1x4xf32> to vector<100x4xf32>
    %34 = arith.mulf %32, %33 : vector<100x4xf32>
    %35 = arith.addf %28, %34 : vector<100x4xf32>
    %c0_30 = arith.constant 0 : index
    %c0_31 = arith.constant 0 : index
    %c2_32 = arith.constant 2 : index
    %c1_33 = arith.constant 1 : index
    %c0_34 = arith.constant 0 : index
    %36 = vector.load %arg2[%c0_30, %c0_31, %c2_32, %c1_33, %c0_34] : memref<1x1x4x120x4xbf16, #tpu.memory_space<vmem>>, vector<1x1x1x100x4xbf16>
    %37 = vector.shape_cast %36 : vector<1x1x1x100x4xbf16> to vector<100x4xbf16>
    %c5 = arith.constant 5 : index
    %c0_35 = arith.constant 0 : index
    %38 = vector.load %arg4[%c5, %c0_35] : memref<9x4xf32, #tpu.memory_space<vmem>>, vector<1x4xf32>
    %39 = arith.extf %37 : vector<100x4xbf16> to vector<100x4xf32>
    %40 = vector.broadcast %38 : vector<1x4xf32> to vector<100x4xf32>
    %41 = arith.mulf %39, %40 : vector<100x4xf32>
    %42 = arith.addf %35, %41 : vector<100x4xf32>
    %c0_36 = arith.constant 0 : index
    %c0_37 = arith.constant 0 : index
    %c0_38 = arith.constant 0 : index
    %c10 = arith.constant 10 : index
    %c0_39 = arith.constant 0 : index
    %43 = vector.load %arg2[%c0_36, %c0_37, %c0_38, %c10, %c0_39] : memref<1x1x4x120x4xbf16, #tpu.memory_space<vmem>>, vector<1x1x1x100x4xbf16>
    %44 = vector.shape_cast %43 : vector<1x1x1x100x4xbf16> to vector<100x4xbf16>
    %c6 = arith.constant 6 : index
    %c0_40 = arith.constant 0 : index
    %45 = vector.load %arg4[%c6, %c0_40] : memref<9x4xf32, #tpu.memory_space<vmem>>, vector<1x4xf32>
    %46 = arith.extf %44 : vector<100x4xbf16> to vector<100x4xf32>
    %47 = vector.broadcast %45 : vector<1x4xf32> to vector<100x4xf32>
    %48 = arith.mulf %46, %47 : vector<100x4xf32>
    %49 = arith.addf %42, %48 : vector<100x4xf32>
    %c0_41 = arith.constant 0 : index
    %c0_42 = arith.constant 0 : index
    %c1_43 = arith.constant 1 : index
    %c10_44 = arith.constant 10 : index
    %c0_45 = arith.constant 0 : index
    %50 = vector.load %arg2[%c0_41, %c0_42, %c1_43, %c10_44, %c0_45] : memref<1x1x4x120x4xbf16, #tpu.memory_space<vmem>>, vector<1x1x1x100x4xbf16>
    %51 = vector.shape_cast %50 : vector<1x1x1x100x4xbf16> to vector<100x4xbf16>
    %c7 = arith.constant 7 : index
    %c0_46 = arith.constant 0 : index
    %52 = vector.load %arg4[%c7, %c0_46] : memref<9x4xf32, #tpu.memory_space<vmem>>, vector<1x4xf32>
    %53 = arith.extf %51 : vector<100x4xbf16> to vector<100x4xf32>
    %54 = vector.broadcast %52 : vector<1x4xf32> to vector<100x4xf32>
    %55 = arith.mulf %53, %54 : vector<100x4xf32>
    %56 = arith.addf %49, %55 : vector<100x4xf32>
    %c0_47 = arith.constant 0 : index
    %c0_48 = arith.constant 0 : index
    %c0_49 = arith.constant 0 : index
    %c11 = arith.constant 11 : index
    %c0_50 = arith.constant 0 : index
    %57 = vector.load %arg2[%c0_47, %c0_48, %c0_49, %c11, %c0_50] : memref<1x1x4x120x4xbf16, #tpu.memory_space<vmem>>, vector<1x1x1x100x4xbf16>
    %58 = vector.shape_cast %57 : vector<1x1x1x100x4xbf16> to vector<100x4xbf16>
    %c8 = arith.constant 8 : index
    %c0_51 = arith.constant 0 : index
    %59 = vector.load %arg4[%c8, %c0_51] : memref<9x4xf32, #tpu.memory_space<vmem>>, vector<1x4xf32>
    %60 = arith.extf %58 : vector<100x4xbf16> to vector<100x4xf32>
    %61 = vector.broadcast %59 : vector<1x4xf32> to vector<100x4xf32>
    %62 = arith.mulf %60, %61 : vector<100x4xf32>
    %63 = arith.addf %56, %62 : vector<100x4xf32>
    %64 = arith.truncf %63 : vector<100x4xf32> to vector<100x4xbf16>
    %c0_52 = arith.constant 0 : index
    %c0_53 = arith.constant 0 : index
    %65 = vector.load %arg5[%c0_52, %c0_53] : memref<4x128xbf16, #tpu.memory_space<vmem>>, vector<4x128xbf16>
    %cst_54 = arith.constant dense<0.000000e+00> : vector<100x128xf32>
    %66 = tpu.matmul %64, %65, %cst_54 {dimension_numbers = #tpu.dot_dimension_numbers<[1], [0], [0], [1], [0, 0, 1, 1], [], []>} : vector<100x4xbf16>, vector<4x128xbf16>, vector<100x128xf32> -> vector<100x128xf32>
    %c0_55 = arith.constant 0 : index
    %c0_56 = arith.constant 0 : index
    %67 = vector.load %arg6[%c0_55, %c0_56] : memref<1x128xf32, #tpu.memory_space<vmem>>, vector<1x128xf32>
    %68 = vector.broadcast %67 : vector<1x128xf32> to vector<100x128xf32>
    %69 = arith.addf %66, %68 : vector<100x128xf32>
    %cst_57 = arith.constant 0.000000e+00 : f32
    %70 = vector.broadcast %cst_57 : f32 to vector<100x128xf32>
    %71 = arith.cmpf oge, %69, %70 : vector<100x128xf32>
    %cst_58 = arith.constant 0.00999999977 : f32
    %72 = vector.broadcast %cst_58 : f32 to vector<100x128xf32>
    %73 = arith.mulf %72, %69 : vector<100x128xf32>
    %74 = arith.select %71, %69, %73 : vector<100x128xi1>, vector<100x128xf32>
    %c0_59 = arith.constant 0 : index
    %c0_60 = arith.constant 0 : index
    %c0_61 = arith.constant 0 : index
    %75 = vector.load %arg3[%c0_59, %c0_60, %c0_61] : memref<1x100x1xf32, #tpu.memory_space<vmem>>, vector<1x100x1xf32>
    %76 = vector.shape_cast %75 : vector<1x100x1xf32> to vector<100x1xf32>
    %77 = vector.broadcast %76 : vector<100x1xf32> to vector<100x128xf32>
    %78 = arith.mulf %74, %77 : vector<100x128xf32>
    %79 = arith.truncf %78 : vector<100x128xf32> to vector<100x128xbf16>
    %c0_62 = arith.constant 0 : index
    %c0_63 = arith.constant 0 : index
    %80 = vector.load %arg14[%c0_62, %c0_63] : memref<108x128xbf16, #tpu.memory_space<vmem>>, vector<100x128xbf16>
    tpu.vector_store %arg14[%c0_62, %c0_63], %79 {strides = array<i32>} : memref<108x128xbf16, #tpu.memory_space<vmem>>, vector<100x128xbf16>,
    %cst_64 = arith.constant 0.000000e+00 : bf16
    %81 = vector.broadcast %cst_64 : bf16 to vector<8x128xbf16>
    %c100 = arith.constant 100 : index
    %c0_65 = arith.constant 0 : index
    %82 = vector.load %arg14[%c100, %c0_65] : memref<108x128xbf16, #tpu.memory_space<vmem>>, vector<8x128xbf16>
    tpu.vector_store %arg14[%c100, %c0_65], %81 {strides = array<i32>} : memref<108x128xbf16, #tpu.memory_space<vmem>>, vector<8x128xbf16>,
    %cst_66 = arith.constant 0.000000e+00 : f32
    %83 = vector.broadcast %cst_66 : f32 to vector<80x128xf32>
    %c0_67 = arith.constant 0 : index
    %c0_68 = arith.constant 0 : index
    %84 = vector.load %arg14[%c0_67, %c0_68] : memref<108x128xbf16, #tpu.memory_space<vmem>>, vector<80x128xbf16>
    %c0_69 = arith.constant 0 : index
    %c0_70 = arith.constant 0 : index
    %c0_71 = arith.constant 0 : index
    %85 = vector.load %arg7[%c0_69, %c0_70, %c0_71] : memref<9x128x128xbf16, #tpu.memory_space<vmem>>, vector<1x128x128xbf16>
    %86 = vector.shape_cast %85 : vector<1x128x128xbf16> to vector<128x128xbf16>
    %cst_72 = arith.constant dense<0.000000e+00> : vector<80x128xf32>
    %87 = tpu.matmul %84, %86, %cst_72 {dimension_numbers = #tpu.dot_dimension_numbers<[1], [0], [0], [1], [0, 0, 1, 1], [], []>} : vector<80x128xbf16>, vector<128x128xbf16>, vector<80x128xf32> -> vector<80x128xf32>
    %88 = arith.addf %83, %87 : vector<80x128xf32>
    %c1_73 = arith.constant 1 : index
    %c0_74 = arith.constant 0 : index
    %89 = vector.load %arg14[%c1_73, %c0_74] : memref<108x128xbf16, #tpu.memory_space<vmem>>, vector<80x128xbf16>
    %c1_75 = arith.constant 1 : index
    %c0_76 = arith.constant 0 : index
    %c0_77 = arith.constant 0 : index
    %90 = vector.load %arg7[%c1_75, %c0_76, %c0_77] : memref<9x128x128xbf16, #tpu.memory_space<vmem>>, vector<1x128x128xbf16>
    %91 = vector.shape_cast %90 : vector<1x128x128xbf16> to vector<128x128xbf16>
    %cst_78 = arith.constant dense<0.000000e+00> : vector<80x128xf32>
    %92 = tpu.matmul %89, %91, %cst_78 {dimension_numbers = #tpu.dot_dimension_numbers<[1], [0], [0], [1], [0, 0, 1, 1], [], []>} : vector<80x128xbf16>, vector<128x128xbf16>, vector<80x128xf32> -> vector<80x128xf32>
    %93 = arith.addf %88, %92 : vector<80x128xf32>
    %c2_79 = arith.constant 2 : index
    %c0_80 = arith.constant 0 : index
    %94 = vector.load %arg14[%c2_79, %c0_80] : memref<108x128xbf16, #tpu.memory_space<vmem>>, vector<80x128xbf16>
    %c2_81 = arith.constant 2 : index
    %c0_82 = arith.constant 0 : index
    %c0_83 = arith.constant 0 : index
    %95 = vector.load %arg7[%c2_81, %c0_82, %c0_83] : memref<9x128x128xbf16, #tpu.memory_space<vmem>>, vector<1x128x128xbf16>
    %96 = vector.shape_cast %95 : vector<1x128x128xbf16> to vector<128x128xbf16>
    %cst_84 = arith.constant dense<0.000000e+00> : vector<80x128xf32>
    %97 = tpu.matmul %94, %96, %cst_84 {dimension_numbers = #tpu.dot_dimension_numbers<[1], [0], [0], [1], [0, 0, 1, 1], [], []>} : vector<80x128xbf16>, vector<128x128xbf16>, vector<80x128xf32> -> vector<80x128xf32>
    %98 = arith.addf %93, %97 : vector<80x128xf32>
    %c10_85 = arith.constant 10 : index
    %c0_86 = arith.constant 0 : index
    %99 = vector.load %arg14[%c10_85, %c0_86] : memref<108x128xbf16, #tpu.memory_space<vmem>>, vector<80x128xbf16>
    %c3_87 = arith.constant 3 : index
    %c0_88 = arith.constant 0 : index
    %c0_89 = arith.constant 0 : index
    %100 = vector.load %arg7[%c3_87, %c0_88, %c0_89] : memref<9x128x128xbf16, #tpu.memory_space<vmem>>, vector<1x128x128xbf16>
    %101 = vector.shape_cast %100 : vector<1x128x128xbf16> to vector<128x128xbf16>
    %cst_90 = arith.constant dense<0.000000e+00> : vector<80x128xf32>
    %102 = tpu.matmul %99, %101, %cst_90 {dimension_numbers = #tpu.dot_dimension_numbers<[1], [0], [0], [1], [0, 0, 1, 1], [], []>} : vector<80x128xbf16>, vector<128x128xbf16>, vector<80x128xf32> -> vector<80x128xf32>
    %103 = arith.addf %98, %102 : vector<80x128xf32>
    %c11_91 = arith.constant 11 : index
    %c0_92 = arith.constant 0 : index
    %104 = vector.load %arg14[%c11_91, %c0_92] : memref<108x128xbf16, #tpu.memory_space<vmem>>, vector<80x128xbf16>
    %c4_93 = arith.constant 4 : index
    %c0_94 = arith.constant 0 : index
    %c0_95 = arith.constant 0 : index
    %105 = vector.load %arg7[%c4_93, %c0_94, %c0_95] : memref<9x128x128xbf16, #tpu.memory_space<vmem>>, vector<1x128x128xbf16>
    %106 = vector.shape_cast %105 : vector<1x128x128xbf16> to vector<128x128xbf16>
    %cst_96 = arith.constant dense<0.000000e+00> : vector<80x128xf32>
    %107 = tpu.matmul %104, %106, %cst_96 {dimension_numbers = #tpu.dot_dimension_numbers<[1], [0], [0], [1], [0, 0, 1, 1], [], []>} : vector<80x128xbf16>, vector<128x128xbf16>, vector<80x128xf32> -> vector<80x128xf32>
    %108 = arith.addf %103, %107 : vector<80x128xf32>
    %c12 = arith.constant 12 : index
    %c0_97 = arith.constant 0 : index
    %109 = vector.load %arg14[%c12, %c0_97] : memref<108x128xbf16, #tpu.memory_space<vmem>>, vector<80x128xbf16>
    %c5_98 = arith.constant 5 : index
    %c0_99 = arith.constant 0 : index
    %c0_100 = arith.constant 0 : index
    %110 = vector.load %arg7[%c5_98, %c0_99, %c0_100] : memref<9x128x128xbf16, #tpu.memory_space<vmem>>, vector<1x128x128xbf16>
    %111 = vector.shape_cast %110 : vector<1x128x128xbf16> to vector<128x128xbf16>
    %cst_101 = arith.constant dense<0.000000e+00> : vector<80x128xf32>
    %112 = tpu.matmul %109, %111, %cst_101 {dimension_numbers = #tpu.dot_dimension_numbers<[1], [0], [0], [1], [0, 0, 1, 1], [], []>} : vector<80x128xbf16>, vector<128x128xbf16>, vector<80x128xf32> -> vector<80x128xf32>
    %113 = arith.addf %108, %112 : vector<80x128xf32>
    %c20 = arith.constant 20 : index
    %c0_102 = arith.constant 0 : index
    %114 = vector.load %arg14[%c20, %c0_102] : memref<108x128xbf16, #tpu.memory_space<vmem>>, vector<80x128xbf16>
    %c6_103 = arith.constant 6 : index
    %c0_104 = arith.constant 0 : index
    %c0_105 = arith.constant 0 : index
    %115 = vector.load %arg7[%c6_103, %c0_104, %c0_105] : memref<9x128x128xbf16, #tpu.memory_space<vmem>>, vector<1x128x128xbf16>
    %116 = vector.shape_cast %115 : vector<1x128x128xbf16> to vector<128x128xbf16>
    %cst_106 = arith.constant dense<0.000000e+00> : vector<80x128xf32>
    %117 = tpu.matmul %114, %116, %cst_106 {dimension_numbers = #tpu.dot_dimension_numbers<[1], [0], [0], [1], [0, 0, 1, 1], [], []>} : vector<80x128xbf16>, vector<128x128xbf16>, vector<80x128xf32> -> vector<80x128xf32>
    %118 = arith.addf %113, %117 : vector<80x128xf32>
    %c21 = arith.constant 21 : index
    %c0_107 = arith.constant 0 : index
    %119 = vector.load %arg14[%c21, %c0_107] : memref<108x128xbf16, #tpu.memory_space<vmem>>, vector<80x128xbf16>
    %c7_108 = arith.constant 7 : index
    %c0_109 = arith.constant 0 : index
    %c0_110 = arith.constant 0 : index
    %120 = vector.load %arg7[%c7_108, %c0_109, %c0_110] : memref<9x128x128xbf16, #tpu.memory_space<vmem>>, vector<1x128x128xbf16>
    %121 = vector.shape_cast %120 : vector<1x128x128xbf16> to vector<128x128xbf16>
    %cst_111 = arith.constant dense<0.000000e+00> : vector<80x128xf32>
    %122 = tpu.matmul %119, %121, %cst_111 {dimension_numbers = #tpu.dot_dimension_numbers<[1], [0], [0], [1], [0, 0, 1, 1], [], []>} : vector<80x128xbf16>, vector<128x128xbf16>, vector<80x128xf32> -> vector<80x128xf32>
    %123 = arith.addf %118, %122 : vector<80x128xf32>
    %c22 = arith.constant 22 : index
    %c0_112 = arith.constant 0 : index
    %124 = vector.load %arg14[%c22, %c0_112] : memref<108x128xbf16, #tpu.memory_space<vmem>>, vector<80x128xbf16>
    %c8_113 = arith.constant 8 : index
    %c0_114 = arith.constant 0 : index
    %c0_115 = arith.constant 0 : index
    %125 = vector.load %arg7[%c8_113, %c0_114, %c0_115] : memref<9x128x128xbf16, #tpu.memory_space<vmem>>, vector<1x128x128xbf16>
    %126 = vector.shape_cast %125 : vector<1x128x128xbf16> to vector<128x128xbf16>
    %cst_116 = arith.constant dense<0.000000e+00> : vector<80x128xf32>
    %127 = tpu.matmul %124, %126, %cst_116 {dimension_numbers = #tpu.dot_dimension_numbers<[1], [0], [0], [1], [0, 0, 1, 1], [], []>} : vector<80x128xbf16>, vector<128x128xbf16>, vector<80x128xf32> -> vector<80x128xf32>
    %128 = arith.addf %123, %127 : vector<80x128xf32>
    %c0_117 = arith.constant 0 : index
    %c0_118 = arith.constant 0 : index
    %129 = vector.load %arg8[%c0_117, %c0_118] : memref<1x128xf32, #tpu.memory_space<vmem>>, vector<1x128xf32>
    %130 = vector.broadcast %129 : vector<1x128xf32> to vector<80x128xf32>
    %131 = arith.addf %128, %130 : vector<80x128xf32>
    %132 = arith.mulf %131, %131 : vector<80x128xf32>
    %133 = arith.truncf %132 : vector<80x128xf32> to vector<80x128xbf16>
    %c0_119 = arith.constant 0 : index
    %c0_120 = arith.constant 0 : index
    %134 = vector.load %arg10[%c0_119, %c0_120] : memref<128x128xbf16, #tpu.memory_space<vmem>>, vector<128x128xbf16>
    %cst_121 = arith.constant dense<0.000000e+00> : vector<80x128xf32>
    %135 = tpu.matmul %133, %134, %cst_121 {dimension_numbers = #tpu.dot_dimension_numbers<[1], [0], [0], [1], [0, 0, 1, 1], [], []>} : vector<80x128xbf16>, vector<128x128xbf16>, vector<80x128xf32> -> vector<80x128xf32>
    %c0_122 = arith.constant 0 : index
    %c0_123 = arith.constant 0 : index
    %136 = vector.load %arg9[%c0_122, %c0_123] : memref<1x128xf32, #tpu.memory_space<vmem>>, vector<1x128xf32>
    %137 = vector.broadcast %136 : vector<1x128xf32> to vector<80x128xf32>
    %138 = arith.addf %135, %137 : vector<80x128xf32>
    %139 = math.rsqrt %138 : vector<80x128xf32>
    %140 = arith.mulf %131, %139 : vector<80x128xf32>
    %c0_124 = arith.constant 0 : index
    %c0_125 = arith.constant 0 : index
    %c3_126 = arith.constant 3 : index
    %c11_127 = arith.constant 11 : index
    %c0_128 = arith.constant 0 : index
    %141 = vector.load %arg2[%c0_124, %c0_125, %c3_126, %c11_127, %c0_128] : memref<1x1x4x120x4xbf16, #tpu.memory_space<vmem>>, vector<1x1x1x80x4xbf16>
    %142 = vector.shape_cast %141 : vector<1x1x1x80x4xbf16> to vector<80x4xbf16>
    %c0_129 = arith.constant 0 : index
    %c0_130 = arith.constant 0 : index
    %143 = vector.load %arg11[%c0_129, %c0_130] : memref<4x128xbf16, #tpu.memory_space<vmem>>, vector<4x128xbf16>
    %cst_131 = arith.constant dense<0.000000e+00> : vector<80x128xf32>
    %144 = tpu.matmul %142, %143, %cst_131 {dimension_numbers = #tpu.dot_dimension_numbers<[1], [0], [0], [1], [0, 0, 1, 1], [], []>} : vector<80x4xbf16>, vector<4x128xbf16>, vector<80x128xf32> -> vector<80x128xf32>
    %c0_132 = arith.constant 0 : index
    %c0_133 = arith.constant 0 : index
    %145 = vector.load %arg12[%c0_132, %c0_133] : memref<1x128xf32, #tpu.memory_space<vmem>>, vector<1x128xf32>
    %146 = vector.broadcast %145 : vector<1x128xf32> to vector<80x128xf32>
    %147 = arith.addf %144, %146 : vector<80x128xf32>
    %148 = arith.addf %140, %147 : vector<80x128xf32>
    %c0_134 = arith.constant 0 : index
    %c0_135 = arith.constant 0 : index
    %c0_136 = arith.constant 0 : index
    %c0_137 = arith.constant 0 : index
    %149 = vector.load %arg13[%c0_134, %c0_135, %c0_136, %c0_137] : memref<1x1x80x128xf32, #tpu.memory_space<vmem>>, vector<1x1x80x128xf32>
    %150 = vector.shape_cast %149 : vector<1x1x80x128xf32> to vector<80x128xf32>
    %151 = vector.shape_cast %148 : vector<80x128xf32> to vector<1x1x80x128xf32>
    tpu.vector_store %arg13[%c0_134, %c0_135, %c0_136, %c0_137], %151 {strides = array<i32>} : memref<1x1x80x128xf32, #tpu.memory_space<vmem>>, vector<1x1x80x128xf32>,
    return
  }
  func.func @transform_0(%arg0: i32, %arg1: i32) -> (i32, i32, i32, i32, i32) {
    %c0_i32 = arith.constant 0 : i32
    %c0_i32_0 = arith.constant 0 : i32
    %c0_i32_1 = arith.constant 0 : i32
    %c0_i32_2 = arith.constant 0 : i32
    return %arg0, %arg1, %c0_i32, %c0_i32_0, %c0_i32_1 : i32, i32, i32, i32, i32
  }
  func.func @transform_1(%arg0: i32, %arg1: i32) -> (i32, i32, i32) {
    %c0_i32 = arith.constant 0 : i32
    %c0_i32_0 = arith.constant 0 : i32
    %c0_i32_1 = arith.constant 0 : i32
    return %arg1, %c0_i32, %c0_i32_0 : i32, i32, i32
  }
  func.func @transform_2(%arg0: i32, %arg1: i32) -> (i32, i32) {
    %c0_i32 = arith.constant 0 : i32
    %c0_i32_0 = arith.constant 0 : i32
    %c0_i32_1 = arith.constant 0 : i32
    return %c0_i32, %c0_i32_0 : i32, i32
  }
  func.func @transform_3(%arg0: i32, %arg1: i32) -> (i32, i32) {
    %c0_i32 = arith.constant 0 : i32
    %c0_i32_0 = arith.constant 0 : i32
    %c0_i32_1 = arith.constant 0 : i32
    return %c0_i32, %c0_i32_0 : i32, i32
  }
  func.func @transform_4(%arg0: i32, %arg1: i32) -> (i32, i32) {
    %c0_i32 = arith.constant 0 : i32
    %c0_i32_0 = arith.constant 0 : i32
    %c0_i32_1 = arith.constant 0 : i32
    return %c0_i32, %c0_i32_0 : i32, i32
  }
  func.func @transform_5(%arg0: i32, %arg1: i32) -> (i32, i32, i32) {
    %c0_i32 = arith.constant 0 : i32
    %c0_i32_0 = arith.constant 0 : i32
    %c0_i32_1 = arith.constant 0 : i32
    %c0_i32_2 = arith.constant 0 : i32
    return %c0_i32, %c0_i32_0, %c0_i32_1 : i32, i32, i32
  }
  func.func @transform_6(%arg0: i32, %arg1: i32) -> (i32, i32) {
    %c0_i32 = arith.constant 0 : i32
    %c0_i32_0 = arith.constant 0 : i32
    %c0_i32_1 = arith.constant 0 : i32
    return %c0_i32, %c0_i32_0 : i32, i32
  }
  func.func @transform_7(%arg0: i32, %arg1: i32) -> (i32, i32) {
    %c0_i32 = arith.constant 0 : i32
    %c0_i32_0 = arith.constant 0 : i32
    %c0_i32_1 = arith.constant 0 : i32
    return %c0_i32, %c0_i32_0 : i32, i32
  }
  func.func @transform_8(%arg0: i32, %arg1: i32) -> (i32, i32) {
    %c0_i32 = arith.constant 0 : i32
    %c0_i32_0 = arith.constant 0 : i32
    %c0_i32_1 = arith.constant 0 : i32
    return %c0_i32, %c0_i32_0 : i32, i32
  }
  func.func @transform_9(%arg0: i32, %arg1: i32) -> (i32, i32) {
    %c0_i32 = arith.constant 0 : i32
    %c0_i32_0 = arith.constant 0 : i32
    %c0_i32_1 = arith.constant 0 : i32
    return %c0_i32, %c0_i32_0 : i32, i32
  }
  func.func @transform_10(%arg0: i32, %arg1: i32) -> (i32, i32) {
    %c0_i32 = arith.constant 0 : i32
    %c0_i32_0 = arith.constant 0 : i32
    %c0_i32_1 = arith.constant 0 : i32
    return %c0_i32, %c0_i32_0 : i32, i32
  }
  func.func @transform_11(%arg0: i32, %arg1: i32) -> (i32, i32, i32, i32) {
    %c0_i32 = arith.constant 0 : i32
    %c0_i32_0 = arith.constant 0 : i32
    %c0_i32_1 = arith.constant 0 : i32
    return %arg0, %arg1, %c0_i32, %c0_i32_0 : i32, i32, i32, i32
  }
}

</mosaic_0001>

<bundles_post_ra>
// kernel: _lambda_.1
= control target key start
LH: loop header
LB: loop body
LE: loop exit
PB: predicated region body
PF: predicated region fallthrough
CT: control target
= control target key end

     0   :  { %s4960_s17 = smov 0   ;;  %s4962_s18 = smov 0   ;;  %s6535_s0 = inlined_call_operand.vmem [shape: bf16[2,1,4,120,4], index: 0, kind: input, shape index: {}]   ;;  %s6536_s1 = inlined_call_operand.vmem [shape: f32[1,100,1], index: 1, kind: input, shape index: {}]   ;;  %s6537_s2 = inlined_call_operand.vmem [shape: f32[9,4], index: 2, kind: input, shape index: {}]   ;;  %s6538_s3 = inlined_call_operand.vmem [shape: bf16[4,128], index: 3, kind: input, shape index: {}]   ;;  %s6539_s4 = inlined_call_operand.vmem [shape: f32[1,128], index: 4, kind: input, shape index: {}]   ;;  %s6540_s5 = inlined_call_operand.vmem [shape: bf16[9,128,128], index: 5, kind: input, shape index: {}]   ;;  %s6541_s6 = inlined_call_operand.vmem [shape: f32[1,128], index: 6, kind: input, shape index: {}]   ;;  %s6542_s7 = inlined_call_operand.vmem [shape: f32[1,128], index: 7, kind: input, shape index: {}]   ;;  %s6543_s8 = inlined_call_operand.vmem [shape: bf16[128,128], index: 8, kind: input, shape index: {}]   ;;  %s6544_s9 = inlined_call_operand.vmem [shape: bf16[4,128], index: 9, kind: input, shape index: {}]   ;;  %s6545_s10 = inlined_call_operand.vmem [shape: f32[1,128], index: 10, kind: input, shape index: {}]   ;;  %s6546_s11 = inlined_call_operand.vmem [shape: f32[2,1,80,128], index: 11, kind: output, shape index: {}]  }
   0x1   :  { %s4964_s19 = smov 0  }
   0x2 LB: > { %s33_s20 = sadd.s32 1, %s4891_s18  ;;  %p3657_p0 = scmp.ge.s32.totalorder %s4895_s19, 1  ;;  %s4895_s19 = sphi %s4964_s19, %s21_s19   ;;  %s4891_s18 = sphi %s4962_s18, %s6548_s18   ;;  %s4887_s17 = sphi %s4960_s17, %s6547_s17  }
   0x3   : > { %p35_p1 = scmp.ge.s32.totalorder %s33_s20, 2  ;;  %p367_p2 = scmp.lt.s32.totalorder %s4895_s19, 3 }
   0x5   : > { %s6550_s20 = smov (%p35_p1, %s33_s20), 0  ;;  %p368_p3 = pnand %p3657_p0, %p367_p2 }
   0x6   : > { %v1113_v0 = vld [vmem:[%s6538_s3] sm:$0x3] (!%p368_p3)  ;;  %vm1143_vm0 = vcmask (!%p368_p3), 1041408   ;;  %v4897_v1 = vmov (!%p368_p3), 0.0   ;;  %p420_p4 = scmp.lt.s32.totalorder (!%p368_p3), %s4887_s17, 1  ;;  %vm4898_vm1 = vmmov (!%p368_p3), 0  }
   0x7   : > { %371 = sbr.rel (%p368_p3) target bundleno = 974 (0x3ce), region = 64  ;;  %4292 = vmatprep.subr.bf16.mxu0 (!%p368_p3), %v4897_v1  ;;  %v1145_v2 = vsel (!%p368_p3), %vm1143_vm0, %v1113_v0, 0  ;;  %4322 = vmatprep.subr.bf16.mxu1 (!%p368_p3), %v4897_v1  ;;  %v1274_v3 = vld [vmem:[%s6536_s1] sm:$0xff] (!%p368_p3)  ;;  %v4899_v5 = vmov (!%p368_p3), 0   ;;  %v1276_v6 = vld [vmem:[%s6536_s1 + $0x10] sm:$0xff] (!%p368_p3)  ;;  %v1275_v9 = vld [vmem:[%s6536_s1 + $0x8] sm:$0xff] (!%p368_p3) }
   0x8   : > { %4293 = vmatpush3.bf16.msra.mxu0 (!%p368_p3), %v1145_v2  ;;  %4294 = vmatprep.mubr.msk.bf16.mxu0 (!%p368_p3), %vm4898_vm1, %v4897_v1  ;;  %v4998_v4 = vld [vmem:[%s6537_s2] ss:$0 sm:$0xff] (!%p368_p3)  ;;  %v5011_v7 = vld [vmem:[%s6537_s2 + $0x1] ss:$0 sm:$0xff] (!%p368_p3)  ;;  %v5016_v8 = vld [vmem:[%s6537_s2 + $0x2] ss:$0 sm:$0xff] (!%p368_p3) }
   0x9   : > { %4358 = vmatprep.subr.bf16.mxu0 (!%p368_p3), %v4897_v1  ;;  %4338 = vmatprep.mubr.msk.bf16.mxu1 (!%p368_p3), %vm4898_vm1, %v4897_v1  ;;  %vm592_vm2 = vcmask (!%p368_p3), 1046528   ;;  %v1277_v19 = vld [vmem:[%s6536_s1 + $0x18] sm:$0xff] (!%p368_p3)  ;;  %v5063_v34 = vld [vmem:[%s6537_s2 + $0x3] ss:$0 sm:$0xff] (!%p368_p3)  ;;  %v5078_v41 = vld [vmem:[%s6537_s2 + $0x5] ss:$0 sm:$0xff] (!%p368_p3) }
   0xa   : > { %4733 = vset.pattern.permute.xlu0 (!%p368_p3), %v4899_v5  ;;  %4734 = vset.pattern.permute.xlu1 (!%p368_p3), %v4899_v5  ;;  %v1278_v36 = vld [vmem:[%s6536_s1 + $0x20] sm:$0xff] (!%p368_p3)  ;;  %vm881_vm3 = vcmask (!%p368_p3), 1045504   ;;  %v1279_v42 = vld [vmem:[%s6536_s1 + $0x28] sm:$0xff] (!%p368_p3)  ;;  %v1280_v58 = vld [vmem:[%s6536_s1 + $0x30] sm:$0xff] (!%p368_p3)  ;;  %vm1054_vm4 = vcmask (!%p368_p3), 1044480   ;;  %vm1121_vm5 = vcmask (!%p368_p3), 31744  }
   0xb   : > { %1289 = vperm.xlu0 (!%p368_p3), %4733, %v1274_v3   ;;  %1299 = vperm.xlu1 (!%p368_p3), %4734, %v1276_v6   ;;  %v5087_v47 = vld [vmem:[%s6537_s2 + $0x4] ss:$0 sm:$0xff] (!%p368_p3)  ;;  %v5099_v57 = vld [vmem:[%s6537_s2 + $0x6] ss:$0 sm:$0xff] (!%p368_p3)  ;;  %vm1505_vm12 = vsmask.f32 (!%p368_p3), 7424 }
   0xe   : > { %s6552_s17 = smov (!%p420_p4, %s4887_s17), 1 }
   0xf   : > { %s4704_s23 = smul.u32 240, %s6552_s17  ;;  %1294 = vperm.xlu0 %4733, %v1275_v9   ;;  %1304 = vperm.xlu1 %4734, %v1277_v19  }
  0x10   : > { %s4705_s15 = smul.u32 80, %s6552_s17 }
  0x11   : > { %s5006_s13 = scalar_lea.vmem %s6535_s0, %s4704_s23 }
  0x12   : > { %v4005_v10 = vld [vmem:[%s5006_s13] sm:$0xff]   ;;  %v4122_v11 = vld [vmem:[%s5006_s13 + $0x8] sm:$0xff]   ;;  %v3661_v12 = vld [vmem:[%s5006_s13 + $0x3c] ss:$120 sps:$4 sm:$0xff]   ;;  %s6484_s22 = scalar_lea.vmem %s6546_s11, %s4705_s15 }
  0x13   : > { %v4006_v13 = vunpack.c.l.bf16 %v4005_v10  ;;  %v4007_v14 = vunpack.c.h.bf16 %v4005_v10  ;;  %v5024_v15 = vunpack.c.l.bf16 %v4122_v11  ;;  %v5026_v16 = vunpack.c.h.bf16 %v4122_v11  ;;  %v5029_v17 = vld [vmem:[%s5006_s13 + $0x40] sm:$0xff]   ;;  %v5032_v18 = vld [vmem:[%s5006_s13 + $0x48] sm:$0xff]   ;;  %v4132_v24 = vld [vmem:[%s5006_s13 + $0x78] sm:$0xff]   ;;  %1309 = vperm.xlu0 %4733, %v1278_v36   ;;  %1314 = vperm.xlu1 %4734, %v1279_v42  }
  0x14   : > { %v4030_v20 = vunpack.c.l.bf16 %v5029_v17  ;;  %v4031_v21 = vunpack.c.h.bf16 %v5029_v17  ;;  %v4034_v22 = vunpack.c.l.bf16 %v5032_v18  ;;  %v516_v23 = vunpack.c.l.bf16 %v3661_v12  ;;  %v5046_v29 = vld [vmem:[%s5006_s13 + $0x80] sm:$0xff]   ;;  %v5066_v35 = vld [vmem:[%s5006_s13 + $0xb8] sm:$0xff]  }
  0x15   : > { %v475_v25 = vmul.f32 %v4006_v13, %v4998_v4  ;;  %v476_v26 = vmul.f32 %v4007_v14, %v4998_v4  ;;  %v566_v27 = vmul.f32 %v4006_v13, %v5016_v8  ;;  %v567_v28 = vmul.f32 %v4007_v14, %v5016_v8  ;;  %v844_v56 = vld [vmem:[%s5006_s13 + $0x4] sm:$0xe]  ;;  %v3707_v63 = vld [vmem:[%s5006_s13 + $0x40] sm:$0xe] }
  0x16   : > { %v533_v30 = vmul.f32 %v5011_v7, %v516_v23  ;;  %v534_v31 = vmul.f32 %v4030_v20, %v5011_v7  ;;  %v5053_v32 = vmul.f32 %v4031_v21, %v5011_v7  ;;  %v5058_v33 = vmul.f32 %v4034_v22, %v5011_v7  ;;  %v5131_v23 = vld [vmem:[%s6537_s2 + $0x8] ss:$0 sm:$0xff] }
  0x17   : > { %v5073_v37 = vmul.f32 %v5024_v15, %v5016_v8  ;;  %v593_v38 = vrot.slane %v566_v27, 1  ;;  %v594_v39 = vrot.slane %v567_v28, 1  ;;  %v4050_v40 = vunpack.c.l.bf16 %v4132_v24  ;;  %1319 = vperm.xlu0 %4733, %v1280_v58  }
  0x18   : > { %v546_v43 = vadd.f32 %v533_v30, %v475_v25  ;;  %v547_v44 = vadd.f32 %v534_v31, %v476_v26  ;;  %v4051_v45 = vunpack.c.h.bf16 %v4132_v24  ;;  %v4054_v46 = vunpack.c.l.bf16 %v5046_v29  ;;  %v1282_v24 = vld [vmem:[%s6536_s1 + $0x40] sm:$0xff]  ;;  %v1281_v25 = vld [vmem:[%s6536_s1 + $0x38] sm:$0xff] }
  0x19   : > { %v595_v48 = vsel %vm592_vm2, %v593_v38, %v594_v39  ;;  %v596_v49 = vrot.slane %v5073_v37, 1  ;;  %v676_v50 = vmul.f32 %v4050_v40, %v5063_v34  ;;  %v4074_v51 = vunpack.c.l.bf16 %v5066_v35  ;;  %1324 = vperm.xlu1 %4734, %v1281_v25  }
  0x1a   : > { %v631_v52 = vadd.f32 %v595_v48, %v546_v43  ;;  %v677_v53 = vmul.f32 %v4051_v45, %v5063_v34  ;;  %v717_v54 = vunpack.c.h.bf16 %v3661_v12  ;;  %v767_v55 = vmul.f32 %v4050_v40, %v5078_v41  ;;  %v5122_v12 = vld [vmem:[%s6537_s2 + $0x7] ss:$0 sm:$0xff]  ;;  %v1283_v40 = vld [vmem:[%s6536_s1 + $0x48] sm:$0xff]  ;;  %v4123_v48 = vld [vmem:[%s5006_s13 + $0x10] sm:$0xff]  }
  0x1b   : > { %v597_v59 = vsel %vm592_vm2, %v594_v39, %v596_v49  ;;  %v735_v60 = vmul.f32 %v4074_v51, %v5087_v47  ;;  %v768_v61 = vmul.f32 %v4051_v45, %v5078_v41  ;;  %v5112_v62 = vmul.f32 %v4054_v46, %v5078_v41  ;;  %1329 = vperm.xlu0 %4733, %v1282_v24  }
  0x1c   : > { %v632_v0 = vadd.f32 %v597_v59, %v547_v44  ;;  %v689_v2 = vadd.f32 %v676_v50, %v631_v52  ;;  %v734_v3 = vmul.f32 %v5087_v47, %v717_v54  ;;  %v793_v5 = vrot.slane %v767_v55, 1 }
  0x1d   : > { %v794_v6 = vrot.slane %v768_v61, 1  ;;  %v796_v9 = vrot.slane %v5112_v62, 1  ;;  %v848_v10 = vunpack.c.l.bf16 %v844_v56  ;;  %v856_v11 = vmul.f32 %v5024_v15, %v5099_v57  ;;  %1334 = vperm.xlu1 %4734, %v1283_v40   ;;  %v1285_v56 = vld [vmem:[%s6536_s1 + $0x58] sm:$0xff] }
  0x1e   : > { %v690_v13 = vadd.f32 %v677_v53, %v632_v0  ;;  %v747_v14 = vadd.f32 %v734_v3, %v689_v2  ;;  %v5126_v19 = vmul.f32 %v5026_v16, %v5099_v57  ;;  %v937_v20 = vunpack.c.l.bf16 %v3707_v63  ;;  %v1286_v63 = vld [vmem:[%s6536_s1 + $0x60] sm:$0xf] }
  0x1f   : > { %v795_v26 = vsel %vm592_vm2, %v793_v5, %v794_v6  ;;  %v797_v27 = vsel %vm592_vm2, %v794_v6, %v796_v9  ;;  %v855_v28 = vmul.f32 %v5099_v57, %v848_v10  ;;  %v883_v30 = vrot.slane %v856_v11, 2  ;;  %v5187_v6 = vld [vmem:[%s5006_s13 + $0x50] sm:$0xff]  }
  0x20   : > { %v748_v31 = vadd.f32 %v735_v60, %v690_v13  ;;  %v831_v36 = vadd.f32 %v795_v26, %v747_v14  ;;  %v885_v38 = vrot.slane %v5126_v19, 2  ;;  %v944_v39 = vmul.f32 %v5122_v12, %v937_v20  ;;  %v5193_v20 = vld [vmem:[%s5006_s13 + $0x88] sm:$0xff]  }
  0x21   : > { %v882_v42 = vrot.slane %v855_v28, 2  ;;  %v945_v43 = vmul.f32 %v4031_v21, %v5122_v12  ;;  %v5155_v44 = vmul.f32 %v4034_v22, %v5122_v12  ;;  %v1028_v45 = vmul.f32 %v5131_v23, %v848_v10  ;;  %v1284_v21 = vld [vmem:[%s6536_s1 + $0x50] sm:$0xff]  ;;  %v5204_v28 = vld [vmem:[%s5006_s13 + $0xc0] sm:$0xff]   ;;  %1344 = vperm.xlu1 %4734, %v1285_v56  }
  0x22   : > { %v832_v50 = vadd.f32 %v797_v27, %v748_v31  ;;  %v886_v51 = vsel %vm881_vm3, %v883_v30, %v885_v38  ;;  %v970_v52 = vrot.slane %v944_v39, 2  ;;  %v1029_v17 = vmul.f32 %v5024_v15, %v5131_v23  ;;  %1339 = vperm.xlu0 %4733, %v1284_v21  }
  0x23   : > { %v884_v22 = vsel %vm881_vm3, %v882_v42, %v883_v30  ;;  %v971_v53 = vrot.slane %v945_v43, 2  ;;  %v973_v54 = vrot.slane %v5155_v44, 2  ;;  %v5171_v55 = vmul.f32 %v5026_v16, %v5131_v23 }
  0x24   : > { %v920_v58 = vadd.f32 %v884_v22, %v831_v36  ;;  %v921_v59 = vadd.f32 %v886_v51, %v832_v50  ;;  %v1055_v60 = vrot.slane %v1028_v45, 3  ;;  %v1056_v61 = vrot.slane %v1029_v17, 3 }
  0x25   : > { %v972_v0 = vsel %vm881_vm3, %v970_v52, %v971_v53  ;;  %v974_v2 = vsel %vm881_vm3, %v971_v53, %v973_v54  ;;  %v1058_v3 = vrot.slane %v5171_v55, 3  ;;  %v5184_v5 = vunpack.c.l.bf16 %v4123_v48 }
  0x26   : > { %v1008_v10 = vadd.f32 %v972_v0, %v920_v58  ;;  %v1009_v11 = vadd.f32 %v974_v2, %v921_v59  ;;  %v1057_v13 = vsel %vm1054_vm4, %v1055_v60, %v1056_v61  ;;  %v5190_v14 = vunpack.c.h.bf16 %v4123_v48  ;;  %1349 = vperm.xlu0 %4733, %v1286_v63   ;;  %v4736_v60 = vld [vmem:[%s6540_s5 + $0x8] sm:$0xff]  }
  0x27   : > { %v1059_v24 = vsel %vm1054_vm4, %v1056_v61, %v1058_v3  ;;  %v477_v25 = vmul.f32 %v5024_v15, %v4998_v4  ;;  %v478_v26 = vmul.f32 %v5026_v16, %v4998_v4  ;;  %v4035_v27 = vunpack.c.h.bf16 %v5032_v18 }
  0x28   : > { %v1093_v30 = vadd.f32 %v1057_v13, %v1008_v10  ;;  %v1094_v31 = vadd.f32 %v1059_v24, %v1009_v11  ;;  %v4038_v36 = vunpack.c.l.bf16 %v5187_v6  ;;  %v569_v39 = vmul.f32 %v5026_v16, %v5016_v8  ;;  %v4735_v16 = vld [vmem:[%s6540_s5] sm:$0xff]  }
  0x29   : > { %v5210_v40 = vmul.f32 %v4035_v27, %v5011_v7  ;;  %v548_v15 = vadd.f32 %v5053_v32, %v477_v25  ;;  %v549_v42 = vadd.f32 %v5058_v33, %v478_v26  ;;  %v5216_v18 = vmul.f32 %v5184_v5, %v5016_v8  ;;  %v4124_v25 = vld [vmem:[%s5006_s13 + $0x18] sm:$0xff]  }
  0x2a   : > { %v1106_v43 = vpack.c.bf16 %v1094_v31, %v1093_v30  ;;  %v5219_v45 = vmul.f32 %v4038_v36, %v5011_v7  ;;  %v598_v48 = vrot.slane %v569_v39, 1  ;;  %v4055_v50 = vunpack.c.h.bf16 %v5046_v29 }
  0x2b   : > { %v600_v32 = vrot.slane %v5216_v18, 1  ;;  %v4058_v33 = vunpack.c.l.bf16 %v5193_v20  ;;  %v678_v51 = vmul.f32 %v4054_v46, %v5063_v34  ;;  %v4075_v52 = vunpack.c.h.bf16 %v5066_v35 }
  0x2c   : > { %4295 = vmatmul.mubr.msk.bf16.vlgmr.msra.gmra.mrb[0].mxu0 %vm1121_vm5, %v1106_v43  ;;  %v599_v17 = vsel %vm592_vm2, %v596_v49, %v598_v48  ;;  %v679_v21 = vmul.f32 %v4055_v50, %v5063_v34  ;;  %v4078_v22 = vunpack.c.l.bf16 %v5204_v28  ;;  %v770_v53 = vmul.f32 %v4055_v50, %v5078_v41 }
  0x2d   : > { %4298 = vmatprep.mubr.msk.bf16.mxu0 %vm4898_vm1, %v4897_v1  ;;  %v601_v29 = vsel %vm592_vm2, %v598_v48, %v600_v32  ;;  %v633_v35 = vadd.f32 %v599_v17, %v548_v15  ;;  %v736_v46 = vmul.f32 %v4075_v52, %v5087_v47  ;;  %v5247_v37 = vmul.f32 %v4058_v33, %v5078_v41  ;;  %v4737_v15 = vld [vmem:[%s6540_s5 + $0x10] sm:$0xff]   ;;  %v5299_v52 = vld [vmem:[%s5006_s13 + $0x58] sm:$0xff]  }
  0x2e   : > { %v634_v49 = vadd.f32 %v601_v29, %v549_v42  ;;  %v737_v56 = vmul.f32 %v4078_v22, %v5087_v47  ;;  %v798_v58 = vrot.slane %v770_v53, 1  ;;  %v858_v59 = vmul.f32 %v5184_v5, %v5099_v57  ;;  %4359 = vmatpush3.bf16.msra.mxu0 %v4735_v16  ;;  %v5307_v22 = vld [vmem:[%s5006_s13 + $0x90] sm:$0xff]  }
  0x2f   : > { %v691_v61 = vadd.f32 %v678_v51, %v633_v35  ;;  %v800_v63 = vrot.slane %v5247_v37, 1  ;;  %v5258_v0 = vmul.f32 %v5190_v14, %v5099_v57  ;;  %v947_v2 = vmul.f32 %v4035_v27, %v5122_v12  ;;  %4360 = vmatprep.subr.bf16.mxu0 %v4897_v1 }
  0x30   : > { %v692_v10 = vadd.f32 %v679_v21, %v634_v49  ;;  %v799_v11 = vsel %vm592_vm2, %v796_v9, %v798_v58  ;;  %v887_v13 = vrot.slane %v858_v59, 2  ;;  %v5266_v24 = vmul.f32 %v4038_v36, %v5122_v12  ;;  %v5316_v49 = vld [vmem:[%s5006_s13 + $0xc8] sm:$0xff]  }
  0x31   : > { %v749_v26 = vadd.f32 %v736_v46, %v691_v61  ;;  %v801_v30 = vsel %vm592_vm2, %v798_v58, %v800_v63  ;;  %v889_v31 = vrot.slane %v5258_v0, 2  ;;  %v975_v27 = vrot.slane %v947_v2, 2 }
  0x32   : > { %v750_v39 = vadd.f32 %v737_v56, %v692_v10  ;;  %v888_v62 = vsel %vm881_vm3, %v885_v38, %v887_v13  ;;  %v977_v9 = vrot.slane %v5266_v24, 2  ;;  %v1031_v36 = vmul.f32 %v5184_v5, %v5131_v23  ;;  %4361 = vmatpush3.bf16.msra.mxu0 %v4736_v60 }
  0x33   : > { %v833_v42 = vadd.f32 %v799_v11, %v749_v26  ;;  %v890_v43 = vsel %vm881_vm3, %v887_v13, %v889_v31  ;;  %v976_v19 = vsel %vm881_vm3, %v973_v54, %v975_v27  ;;  %v5290_v38 = vmul.f32 %v5190_v14, %v5131_v23  ;;  %4362 = vmatprep.subr.bf16.mxu0 %v4897_v1 }
  0x34   : > { %v834_v48 = vadd.f32 %v801_v30, %v750_v39  ;;  %v978_v50 = vsel %vm881_vm3, %v975_v27, %v977_v9  ;;  %v1060_v16 = vrot.slane %v1031_v36, 3  ;;  %v5296_v51 = vunpack.c.l.bf16 %v4124_v25 }
  0x35   : > { %v922_v44 = vadd.f32 %v888_v62, %v833_v42  ;;  %v1062_v54 = vrot.slane %v5290_v38, 3  ;;  %v5302_v17 = vunpack.c.h.bf16 %v4124_v25  ;;  %v479_v21 = vmul.f32 %v5184_v5, %v4998_v4 }
  0x36   : > { %v923_v53 = vadd.f32 %v890_v43, %v834_v48  ;;  %v1061_v29 = vsel %vm1054_vm4, %v1058_v3, %v1060_v16  ;;  %v480_v35 = vmul.f32 %v5190_v14, %v4998_v4  ;;  %v4039_v46 = vunpack.c.h.bf16 %v5187_v6  ;;  %4363 = vmatpush3.bf16.msra.mxu0 %v4737_v15 }
  0x37   : > { %v1010_v56 = vadd.f32 %v976_v19, %v922_v44  ;;  %v1063_v5 = vsel %vm1054_vm4, %v1060_v16, %v1062_v54  ;;  %v4042_v58 = vunpack.c.l.bf16 %v5299_v52  ;;  %v550_v59 = vadd.f32 %v5210_v40, %v479_v21  ;;  %4364 = vmatprep.subr.bf16.mxu0 %v4897_v1 }
  0x38   : > { %v1011_v55 = vadd.f32 %v978_v50, %v923_v53  ;;  %v5325_v3 = vmul.f32 %v4039_v46, %v5011_v7  ;;  %v551_v6 = vadd.f32 %v5219_v45, %v480_v35  ;;  %v571_v60 = vmul.f32 %v5190_v14, %v5016_v8 }
  0x39   : > { %v1095_v61 = vadd.f32 %v1061_v29, %v1010_v56  ;;  %v5331_v2 = vmul.f32 %v4042_v58, %v5011_v7  ;;  %v5335_v10 = vmul.f32 %v5296_v51, %v5016_v8  ;;  %v4059_v40 = vunpack.c.h.bf16 %v5193_v20 }
  0x3a   : > { %v1096_v11 = vadd.f32 %v1063_v5, %v1011_v55  ;;  %v602_v13 = vrot.slane %v571_v60, 1  ;;  %v4062_v25 = vunpack.c.l.bf16 %v5307_v22  ;;  %v680_v45 = vmul.f32 %v4058_v33, %v5063_v34  ;;  %v4125_v55 = vld [vmem:[%s5006_s13 + $0x20] sm:$0xff]  }
  0x3b   : > { %v604_v14 = vrot.slane %v5335_v10, 1  ;;  %v681_v26 = vmul.f32 %v4059_v40, %v5063_v34  ;;  %v4079_v30 = vunpack.c.h.bf16 %v5204_v28  ;;  %v4082_v27 = vunpack.c.l.bf16 %v5316_v49  ;;  %v5393_v60 = vld [vmem:[%s5006_s13 + $0x60] sm:$0xff]  }
  0x3c   : > { %v1107_v39 = vpack.c.bf16 %v1096_v11, %v1095_v61  ;;  %v603_v62 = vsel %vm592_vm2, %v600_v32, %v602_v13  ;;  %v772_v36 = vmul.f32 %v4059_v40, %v5078_v41  ;;  %v5353_v20 = vmul.f32 %v4062_v25, %v5078_v41 }
  0x3d   : > { %v605_v33 = vsel %vm592_vm2, %v602_v13, %v604_v14  ;;  %v635_v15 = vadd.f32 %v603_v62, %v550_v59  ;;  %v738_v28 = vmul.f32 %v4079_v30, %v5087_v47  ;;  %v739_v42 = vmul.f32 %v4082_v27, %v5087_v47  ;;  %v5408_v30 = vld [vmem:[%s5006_s13 + $0x98] sm:$0xff]  }
  0x3e   : > { %4299 = vmatmul.mubr.msk.bf16.gmra.mrb[4].mxu0 %vm1121_vm5, %v1107_v39  ;;  %v636_v18 = vadd.f32 %v605_v33, %v551_v6  ;;  %v802_v32 = vrot.slane %v772_v36, 1  ;;  %v804_v43 = vrot.slane %v5353_v20, 1  ;;  %v860_v19 = vmul.f32 %v5296_v51, %v5099_v57 }
  0x3f   : > { %4302 = vmatprep.mubr.msk.bf16.mxu0 %vm4898_vm1, %v4897_v1  ;;  %v693_v48 = vadd.f32 %v680_v45, %v635_v15  ;;  %v5368_v50 = vmul.f32 %v5302_v17, %v5099_v57  ;;  %v949_v16 = vmul.f32 %v4039_v46, %v5122_v12  ;;  %v5372_v44 = vmul.f32 %v4042_v58, %v5122_v12 }
  0x40   : > { %v694_v21 = vadd.f32 %v681_v26, %v636_v18  ;;  %v803_v53 = vsel %vm592_vm2, %v800_v63, %v802_v32  ;;  %v805_v29 = vsel %vm592_vm2, %v802_v32, %v804_v43  ;;  %v891_v35 = vrot.slane %v860_v19, 2 }
  0x41   : > { %v751_v56 = vadd.f32 %v738_v28, %v693_v48  ;;  %v893_v5 = vrot.slane %v5368_v50, 2  ;;  %v979_v59 = vrot.slane %v949_v16, 2  ;;  %v981_v46 = vrot.slane %v5372_v44, 2  ;;  %v5424_v28 = vld [vmem:[%s5006_s13 + $0xd0] sm:$0xff]  }
  0x42   : > { %v752_v58 = vadd.f32 %v739_v42, %v694_v21  ;;  %v892_v37 = vsel %vm881_vm3, %v889_v31, %v891_v35  ;;  %v1033_v63 = vmul.f32 %v5296_v51, %v5131_v23  ;;  %v5390_v6 = vmul.f32 %v5302_v17, %v5131_v23 }
  0x43   : > { %v835_v61 = vadd.f32 %v803_v53, %v751_v56  ;;  %v894_v40 = vsel %vm881_vm3, %v891_v35, %v893_v5  ;;  %v980_v0 = vsel %vm881_vm3, %v977_v9, %v979_v59  ;;  %v982_v31 = vsel %vm881_vm3, %v979_v59, %v981_v46 }
  0x44   : > { %v836_v11 = vadd.f32 %v805_v29, %v752_v58  ;;  %v1064_v13 = vrot.slane %v1033_v63, 3  ;;  %v1066_v45 = vrot.slane %v5390_v6, 3  ;;  %v5405_v26 = vunpack.c.l.bf16 %v4125_v55 }
  0x45   : > { %v924_v27 = vadd.f32 %v892_v37, %v835_v61  ;;  %v5410_v39 = vunpack.c.h.bf16 %v4125_v55  ;;  %v481_v24 = vmul.f32 %v5296_v51, %v4998_v4  ;;  %v482_v9 = vmul.f32 %v5302_v17, %v4998_v4 }
  0x46   : > { %v925_v62 = vadd.f32 %v894_v40, %v836_v11  ;;  %v1065_v36 = vsel %vm1054_vm4, %v1062_v54, %v1064_v13  ;;  %v1067_v33 = vsel %vm1054_vm4, %v1064_v13, %v1066_v45  ;;  %v4043_v15 = vunpack.c.h.bf16 %v5299_v52 }
  0x47   : > { %v1012_v42 = vadd.f32 %v980_v0, %v924_v27  ;;  %v4046_v18 = vunpack.c.l.bf16 %v5393_v60  ;;  %v552_v51 = vadd.f32 %v5325_v3, %v481_v24  ;;  %v553_v32 = vadd.f32 %v5331_v2, %v482_v9  ;;  %v4126_v9 = vld [vmem:[%s5006_s13 + $0x28] sm:$0xff]  }
  0x48   : > { %v1013_v19 = vadd.f32 %v982_v31, %v925_v62  ;;  %v5430_v38 = vmul.f32 %v4043_v15, %v5011_v7  ;;  %v573_v54 = vmul.f32 %v5302_v17, %v5016_v8  ;;  %v5436_v48 = vmul.f32 %v5405_v26, %v5016_v8 }
  0x49   : > { %v1097_v52 = vadd.f32 %v1065_v36, %v1012_v42  ;;  %v5439_v16 = vmul.f32 %v4046_v18, %v5011_v7  ;;  %v4063_v21 = vunpack.c.h.bf16 %v5307_v22  ;;  %v4066_v3 = vunpack.c.l.bf16 %v5408_v30 }
  0x4a   : > { %v1098_v2 = vadd.f32 %v1067_v33, %v1013_v19  ;;  %v606_v53 = vrot.slane %v573_v54, 1  ;;  %v608_v29 = vrot.slane %v5436_v48, 1  ;;  %v682_v17 = vmul.f32 %v4062_v25, %v5063_v34 }
  0x4b   : > { %v683_v35 = vmul.f32 %v4063_v21, %v5063_v34  ;;  %v4083_v56 = vunpack.c.h.bf16 %v5316_v49  ;;  %v4086_v59 = vunpack.c.l.bf16 %v5424_v28  ;;  %v774_v55 = vmul.f32 %v4063_v21, %v5078_v41 }
  0x4c   : > { %v1108_v58 = vpack.c.bf16 %v1098_v2, %v1097_v52  ;;  %v607_v37 = vsel %vm592_vm2, %v604_v14, %v606_v53  ;;  %v609_v63 = vsel %vm592_vm2, %v606_v53, %v608_v29  ;;  %v5460_v22 = vmul.f32 %v4066_v3, %v5078_v41 }
  0x4d   : > { %v637_v49 = vadd.f32 %v607_v37, %v552_v51  ;;  %v638_v25 = vadd.f32 %v609_v63, %v553_v32  ;;  %v740_v61 = vmul.f32 %v4083_v56, %v5087_v47  ;;  %v741_v40 = vmul.f32 %v4086_v59, %v5087_v47  ;;  %v5514_v59 = vld [vmem:[%s5006_s13 + $0xa0] sm:$0xff]  }
  0x4e   : > { %4303 = vmatmul.mubr.msk.bf16.gmra.mrb[8].mxu0 %vm1121_vm5, %v1108_v58  ;;  %v806_v10 = vrot.slane %v774_v55, 1  ;;  %v808_v14 = vrot.slane %v5460_v22, 1  ;;  %v862_v0 = vmul.f32 %v5405_v26, %v5099_v57  ;;  %v5470_v31 = vmul.f32 %v5410_v39, %v5099_v57 }
  0x4f   : > { %4306 = vmatprep.mubr.msk.bf16.mxu0 %vm4898_vm1, %v4897_v1  ;;  %v695_v11 = vadd.f32 %v682_v17, %v637_v49  ;;  %v696_v13 = vadd.f32 %v683_v35, %v638_v25  ;;  %v951_v27 = vmul.f32 %v4043_v15, %v5122_v12  ;;  %v5476_v24 = vmul.f32 %v4046_v18, %v5122_v12  ;;  %v5488_v18 = vld [vmem:[%s5006_s13 + $0x68] sm:$0xff]  }
  0x50   : > { %v807_v62 = vsel %vm592_vm2, %v804_v43, %v806_v10  ;;  %v809_v36 = vsel %vm592_vm2, %v806_v10, %v808_v14  ;;  %v895_v33 = vrot.slane %v862_v0, 2  ;;  %v897_v42 = vrot.slane %v5470_v31, 2 }
  0x51   : > { %v753_v51 = vadd.f32 %v740_v61, %v695_v11  ;;  %v754_v32 = vadd.f32 %v741_v40, %v696_v13  ;;  %v983_v19 = vrot.slane %v951_v27, 2  ;;  %v985_v15 = vrot.slane %v5476_v24, 2  ;;  %v5529_v61 = vld [vmem:[%s5006_s13 + $0xd8] sm:$0xff]   ;;  %v5613_v24 = vld [vmem:[%s6537_s2] ss:$0 sm:$0xff] }
  0x52   : > { %v896_v20 = vsel %vm881_vm3, %v893_v5, %v895_v33  ;;  %v898_v43 = vsel %vm881_vm3, %v895_v33, %v897_v42  ;;  %v1035_v54 = vmul.f32 %v5405_v26, %v5131_v23  ;;  %v5500_v52 = vmul.f32 %v5410_v39, %v5131_v23 }
  0x53   : > { %v837_v21 = vadd.f32 %v807_v62, %v753_v51  ;;  %v838_v2 = vadd.f32 %v809_v36, %v754_v32  ;;  %v984_v50 = vsel %vm881_vm3, %v981_v46, %v983_v19  ;;  %v986_v5 = vsel %vm881_vm3, %v983_v19, %v985_v15 }
  0x54   : > { %v1068_v53 = vrot.slane %v1035_v54, 3  ;;  %v1070_v17 = vrot.slane %v5500_v52, 3  ;;  %v5509_v35 = vunpack.c.l.bf16 %v4126_v9  ;;  %v5511_v56 = vunpack.c.h.bf16 %v4126_v9 }
  0x55   : > { %v926_v55 = vadd.f32 %v896_v20, %v837_v21  ;;  %v927_v58 = vadd.f32 %v898_v43, %v838_v2  ;;  %v483_v44 = vmul.f32 %v5405_v26, %v4998_v4  ;;  %v484_v46 = vmul.f32 %v5410_v39, %v4998_v4 }
  0x56   : > { %v1069_v37 = vsel %vm1054_vm4, %v1066_v45, %v1068_v53  ;;  %v1071_v63 = vsel %vm1054_vm4, %v1068_v53, %v1070_v17  ;;  %v4047_v49 = vunpack.c.h.bf16 %v5393_v60  ;;  %v527_v25 = vunpack.c.l.bf16 %v5488_v18 }
  0x57   : > { %v1014_v40 = vadd.f32 %v984_v50, %v926_v55  ;;  %v1015_v10 = vadd.f32 %v986_v5, %v927_v58  ;;  %v554_v26 = vadd.f32 %v5430_v38, %v483_v44  ;;  %v555_v4 = vadd.f32 %v5439_v16, %v484_v46  ;;  %v559_v50 = vld [vmem:[%s5006_s13 + $0x30] sm:$0x7] }
  0x58   : > { %v5534_v6 = vmul.f32 %v4047_v49, %v5011_v7  ;;  %v5537_v45 = vmul.f32 %v5011_v7, %v527_v25  ;;  %v575_v0 = vmul.f32 %v5410_v39, %v5016_v8  ;;  %v5543_v60 = vmul.f32 %v5509_v35, %v5016_v8 }
  0x59   : > { %v1099_v11 = vadd.f32 %v1069_v37, %v1014_v40  ;;  %v1100_v13 = vadd.f32 %v1071_v63, %v1015_v10  ;;  %v4067_v27 = vunpack.c.h.bf16 %v5408_v30  ;;  %v4070_v38 = vunpack.c.l.bf16 %v5514_v59 }
  0x5a   : > { %v610_v16 = vrot.slane %v575_v0, 1  ;;  %v612_v9 = vrot.slane %v5543_v60, 1  ;;  %v684_v7 = vmul.f32 %v4066_v3, %v5063_v34  ;;  %v4087_v62 = vunpack.c.h.bf16 %v5424_v28 }
  0x5b   : > { %v1109_v39 = vpack.c.bf16 %v1100_v13, %v1099_v11  ;;  %v685_v36 = vmul.f32 %v4067_v27, %v5063_v34  ;;  %v4090_v8 = vunpack.c.l.bf16 %v5529_v61  ;;  %v776_v33 = vmul.f32 %v4067_v27, %v5078_v41  ;;  %v4865_v11 = vld [vmem:[%s6537_s2 + $0x2] ss:$0 sm:$0xff] }
  0x5c   : > { %v611_v51 = vsel %vm592_vm2, %v608_v29, %v610_v16  ;;  %v613_v32 = vsel %vm592_vm2, %v610_v16, %v612_v9  ;;  %v742_v30 = vmul.f32 %v4087_v62, %v5087_v47  ;;  %v5565_v28 = vmul.f32 %v4070_v38, %v5078_v41  ;;  %v3701_v27 = vld [vmem:[%s5006_s13 + $0xe0] sm:$0xf] }
  0x5d   : > { %4307 = vmatmul.mubr.msk.bf16.gmra.mrb[12].mxu0 %vm1121_vm5, %v1109_v39  ;;  %v639_v34 = vadd.f32 %v611_v51, %v554_v26  ;;  %v640_v3 = vadd.f32 %v613_v32, %v555_v4  ;;  %v743_v48 = vmul.f32 %v4090_v8, %v5087_v47  ;;  %v810_v19 = vrot.slane %v776_v33, 1  ;;  %v5639_v8 = vld [vmem:[%s6537_s2 + $0x3] ss:$0 sm:$0xff]  ;;  %v3704_v51 = vld [vmem:[%s5006_s13 + $0xa8] sm:$0x7] }
  0x5e   : > { %4310 = vmatprep.mubr.msk.bf16.mxu0 %vm4898_vm1, %v4897_v1  ;;  %v812_v29 = vrot.slane %v5565_v28, 1  ;;  %v864_v20 = vmul.f32 %v5509_v35, %v5099_v57  ;;  %v5576_v43 = vmul.f32 %v5511_v56, %v5099_v57  ;;  %v953_v41 = vmul.f32 %v4047_v49, %v5122_v12  ;;  %v3673_v28 = vld [vmem:[%s5006_s13 + $0x6c] sm:$0x3] }
  0x5f   : > { %v697_v54 = vadd.f32 %v684_v7, %v639_v34  ;;  %v698_v21 = vadd.f32 %v685_v36, %v640_v3  ;;  %v811_v47 = vsel %vm592_vm2, %v808_v14, %v810_v19  ;;  %v5583_v2 = vmul.f32 %v5122_v12, %v527_v25 }
  0x60   : > { %v813_v5 = vsel %vm592_vm2, %v810_v19, %v812_v29  ;;  %v899_v53 = vrot.slane %v864_v20, 2  ;;  %v901_v57 = vrot.slane %v5576_v43, 2  ;;  %v987_v55 = vrot.slane %v953_v41, 2  ;;  %v846_v19 = vld [vmem:[%s5006_s13 + $0x34] sm:$0x7] }
  0x61   : > { %v755_v58 = vadd.f32 %v742_v30, %v697_v54  ;;  %v756_v44 = vadd.f32 %v743_v48, %v698_v21  ;;  %v989_v46 = vrot.slane %v5583_v2, 2  ;;  %v1037_v22 = vmul.f32 %v5509_v35, %v5131_v23  ;;  %v845_v48 = vld [vmem:[%s5006_s13 + $0x30] sm:$0xff]  }
  0x62   : > { %v900_v12 = vsel %vm881_vm3, %v897_v42, %v899_v53  ;;  %v902_v14 = vsel %vm881_vm3, %v899_v53, %v901_v57  ;;  %v988_v37 = vsel %vm881_vm3, %v985_v15, %v987_v55  ;;  %v5604_v63 = vmul.f32 %v5511_v56, %v5131_v23  ;;  %v3709_v41 = vld [vmem:[%s5006_s13 + $0x70] sm:$0x7] }
  0x63   : > { %v839_v49 = vadd.f32 %v811_v47, %v755_v58  ;;  %v840_v25 = vadd.f32 %v813_v5, %v756_v44  ;;  %v990_v31 = vsel %vm881_vm3, %v987_v55, %v989_v46  ;;  %v1072_v42 = vrot.slane %v1037_v22, 3  ;;  %v4868_v47 = vld [vmem:[%s6537_s2 + $0x5] ss:$0 sm:$0xff] }
  0x64   : > { %v1074_v40 = vrot.slane %v5604_v63, 3  ;;  %v485_v15 = vmul.f32 %v5613_v24, %v5509_v35  ;;  %v486_v23 = vmul.f32 %v5613_v24, %v5511_v56  ;;  %v561_v10 = vunpack.c.l.bf16 %v559_v50 }
  0x65   : > { %v928_v26 = vadd.f32 %v900_v12, %v839_v49  ;;  %v929_v4 = vadd.f32 %v902_v14, %v840_v25  ;;  %v1073_v0 = vsel %vm1054_vm4, %v1070_v17, %v1072_v42  ;;  %v577_v13 = vmul.f32 %v4865_v11, %v5511_v56  ;;  %v4869_v49 = vld [vmem:[%s6537_s2 + $0x6] ss:$0 sm:$0xff] }
  0x66   : > { %v1075_v35 = vsel %vm1054_vm4, %v1072_v42, %v1074_v40  ;;  %v556_v16 = vadd.f32 %v5534_v6, %v485_v15  ;;  %v557_v7 = vadd.f32 %v5537_v45, %v486_v23  ;;  %v5632_v52 = vmul.f32 %v4865_v11, %v561_v10 }
  0x67   : > { %v1016_v17 = vadd.f32 %v988_v37, %v928_v26  ;;  %v1017_v62 = vadd.f32 %v990_v31, %v929_v4  ;;  %v614_v39 = vrot.slane %v577_v13, 1  ;;  %v4071_v36 = vunpack.c.h.bf16 %v5514_v59 }
  0x68   : > { %v616_v56 = vrot.slane %v5632_v52, 1  ;;  %v686_v6 = vmul.f32 %v5639_v8, %v4070_v38  ;;  %v4091_v45 = vunpack.c.h.bf16 %v5529_v61  ;;  %v728_v33 = vunpack.c.l.bf16 %v3701_v27  ;;  %v5658_v61 = vld [vmem:[%s6537_s2 + $0x4] ss:$0 sm:$0xff]  ;;  %v456_v27 = vld [vmem:[%s5006_s13 + $0x30] sm:$0x3] }
  0x69   : > { %v1101_v32 = vadd.f32 %v1073_v0, %v1016_v17  ;;  %v1102_v30 = vadd.f32 %v1075_v35, %v1017_v62  ;;  %v615_v34 = vsel %vm592_vm2, %v612_v9, %v614_v39  ;;  %v687_v3 = vmul.f32 %v5639_v8, %v4071_v36  ;;  %v4871_v17 = vld [vmem:[%s6537_s2 + $0x8] ss:$0 sm:$0xff]  ;;  %v4738_v52 = vld [vmem:[%s6540_s5 + $0x40] sm:$0xff]  }
  0x6a   : > { %v617_v59 = vsel %vm592_vm2, %v614_v39, %v616_v56  ;;  %v641_v20 = vadd.f32 %v615_v34, %v556_v16  ;;  %v744_v38 = vmul.f32 %v5658_v61, %v4091_v45  ;;  %v745_v60 = vmul.f32 %v5658_v61, %v728_v33  ;;  %v3688_v39 = vld [vmem:[%s5006_s13 + $0xa8] sm:$0x3]  ;;  %v3702_v34 = vld [vmem:[%s5006_s13 + $0xe4] sm:$0x3]  ;;  %4323 = vmatpush3.bf16.msra.mxu1 %v4738_v52 }
  0x6b   : > { %v1110_v9 = vpack.c.bf16 %v1102_v30, %v1101_v32  ;;  %v642_v54 = vadd.f32 %v617_v59, %v557_v7  ;;  %v762_v21 = vunpack.c.l.bf16 %v3704_v51  ;;  %v778_v50 = vmul.f32 %v4868_v47, %v4071_v36  ;;  %4324 = vmatprep.subr.bf16.mxu1 %v4897_v1 }
  0x6c   : > { %v699_v5 = vadd.f32 %v686_v6, %v641_v20  ;;  %v849_v53 = vunpack.c.l.bf16 %v845_v48  ;;  %v850_v55 = vunpack.c.l.bf16 %v846_v19  ;;  %v938_v58 = vunpack.c.h.bf16 %v5488_v18  ;;  %v4870_v18 = vld [vmem:[%s6537_s2 + $0x7] ss:$0 sm:$0xff] }
  0x6d   : > { %4311 = vmatmul.mubr.msk.bf16.gmra.mrb[16].mxu0 %vm1121_vm5, %v1110_v9  ;;  %v700_v44 = vadd.f32 %v687_v3, %v642_v54  ;;  %v779_v22 = vmul.f32 %v4868_v47, %v762_v21  ;;  %v814_v12 = vrot.slane %v778_v50, 1  ;;  %v939_v14 = vunpack.c.l.bf16 %v3709_v41 }
  0x6e   : > { %4314 = vmatprep.mubr.msk.bf16.mxu0 %vm4898_vm1, %v4897_v1  ;;  %v757_v37 = vadd.f32 %v744_v38, %v699_v5  ;;  %v866_v25 = vmul.f32 %v4869_v49, %v849_v53  ;;  %v867_v31 = vmul.f32 %v4869_v49, %v850_v55  ;;  %v955_v42 = vmul.f32 %v4870_v18, %v938_v58  ;;  %v4744_v49 = vld [vmem:[%s6540_s5 + $0x58] sm:$0xff]  }
  0x6f   : > { %v758_v15 = vadd.f32 %v745_v60, %v700_v44  ;;  %v815_v23 = vsel %vm592_vm2, %v812_v29, %v814_v12  ;;  %v816_v10 = vrot.slane %v779_v22, 1  ;;  %v956_v26 = vmul.f32 %v4870_v18, %v939_v14  ;;  %v4742_v14 = vld [vmem:[%s6540_s5 + $0x50] sm:$0xff]   ;;  %v4747_v18 = vld [vmem:[%s6540_s5 + $0x38] sm:$0xff]  }
  0x70   : > { %v841_v4 = vadd.f32 %v815_v23, %v757_v37  ;;  %v903_v0 = vrot.slane %v866_v25, 2  ;;  %v905_v11 = vrot.slane %v867_v31, 2  ;;  %v991_v13 = vrot.slane %v955_v42, 2  ;;  %v4743_v37 = vld [vmem:[%s6540_s5 + $0x28] sm:$0xff]   ;;  %v4745_v25 = vld [vmem:[%s6540_s5 + $0x30] sm:$0xff]   ;;  %v4746_v31 = vld [vmem:[%s6540_s5 + $0x60] sm:$0xff]  }
  0x71   : > { %v817_v35 = vsel %vm592_vm2, %v814_v12, %v816_v10  ;;  %v993_v16 = vrot.slane %v956_v26, 2  ;;  %v1023_v7 = vunpack.c.h.bf16 %v845_v48  ;;  %v1039_v62 = vmul.f32 %v4871_v17, %v849_v53  ;;  %v4749_v42 = vld [vmem:[%s6540_s5 + $0x68] sm:$0xff]   ;;  %v4752_v23 = vld [vmem:[%s6540_s5 + $0x78] sm:$0xff]  }
  0x72   : > { %v842_v29 = vadd.f32 %v817_v35, %v758_v15  ;;  %v904_v36 = vsel %vm881_vm3, %v901_v57, %v903_v0  ;;  %v906_v6 = vsel %vm881_vm3, %v903_v0, %v905_v11  ;;  %v992_v45 = vsel %vm881_vm3, %v989_v46, %v991_v13  ;;  %v4872_v46 = vld [vmem:[%s6537_s2 + $0x1] ss:$0 sm:$0xff]  ;;  %v4750_v15 = vld [vmem:[%s6540_s5 + $0x70] sm:$0xff]  }
  0x73   : > { %v930_v33 = vadd.f32 %v904_v36, %v841_v4  ;;  %v994_v51 = vsel %vm881_vm3, %v991_v13, %v993_v16  ;;  %v1040_v32 = vmul.f32 %v4871_v17, %v1023_v7  ;;  %v1076_v30 = vrot.slane %v1039_v62, 3 }
  0x74   : > { %v931_v3 = vadd.f32 %v906_v6, %v842_v29  ;;  %v470_v48 = vunpack.c.l.bf16 %v456_v27  ;;  %v528_v19 = vunpack.c.l.bf16 %v3673_v28  ;;  %v671_v59 = vunpack.c.l.bf16 %v3688_v39 }
  0x75   : > { %v1018_v20 = vadd.f32 %v992_v45, %v930_v33  ;;  %v1077_v43 = vsel %vm1054_vm4, %v1074_v40, %v1076_v30  ;;  %v1078_v57 = vrot.slane %v1040_v32, 3  ;;  %v729_v41 = vunpack.c.l.bf16 %v3702_v34  ;;  %v4753_v34 = vld [vmem:[%s6540_s5 + $0xc0] sm:$0xff]  }
  0x76   : > { %v1019_v38 = vadd.f32 %v994_v51, %v931_v3  ;;  %v487_v2 = vmul.f32 %v5613_v24, %v470_v48  ;;  %v545_v60 = vmul.f32 %v4872_v46, %v528_v19  ;;  %v688_v50 = vmul.f32 %v5639_v8, %v671_v59  ;;  %v4740_v8 = vld [vmem:[%s6540_s5 + $0x48] sm:$0xff]  }
  0x77   : > { %v1079_v9 = vsel %vm1054_vm4, %v1076_v30, %v1078_v57  ;;  %v1103_v54 = vadd.f32 %v1077_v43, %v1018_v20  ;;  %v746_v5 = vmul.f32 %v5658_v61, %v729_v41  ;;  %v4741_v61 = vld [vmem:[%s6540_s5 + $0x20] sm:$0xff]   ;;  %4325 = vmatpush3.bf16.msra.mxu1 %v4740_v8 }
  0x78   : > { %v1104_v21 = vadd.f32 %v1079_v9, %v1019_v38  ;;  %v558_v47 = vadd.f32 %v545_v60, %v487_v2  ;;  %4326 = vmatprep.subr.bf16.mxu1 %v4897_v1  ;;  %v4755_v38 = vld [vmem:[%s6540_s5 + $0xc8] sm:$0xff]   ;;  %v4757_v9 = vld [vmem:[%s6540_s5 + $0xd0] sm:$0xff]  }
  0x7a   : > { %v1111_v63 = vpack.c.bf16 %v1104_v21, %v1103_v54  ;;  %v643_v40 = vadd.f32 %v616_v56, %v558_v47  ;;  %v4739_v56 = vld [vmem:[%s6540_s5 + $0x18] sm:$0xff]  }
  0x7b   : > { %4365 = vmatpush3.bf16.msra.mxu0 %v4739_v56  ;;  %4327 = vmatpush3.bf16.msra.mxu1 %v4742_v14  ;;  %v4759_v21 = vld [vmem:[%s6540_s5 + $0xd8] sm:$0xff]   ;;  %v4764_v56 = vld [vmem:[%s6540_s5 + $0xe8] sm:$0xff]  }
  0x7c   : > { %4315 = vmatmul.mubr.msk.bf16.gmra.mrb[20].mxu0 %vm1121_vm5, %v1111_v63  ;;  %v701_v24 = vadd.f32 %v688_v50, %v643_v40  ;;  %4366 = vmatprep.subr.bf16.mxu0 %v4897_v1 }
  0x7d   : > { %4318 = vmatprep.mubr.msk.bf16.mxu0 %vm4898_vm1, %v4897_v1  ;;  %4328 = vmatprep.subr.bf16.mxu1 %v4897_v1 }
  0x7e   : > { %v759_v53 = vadd.f32 %v746_v5, %v701_v24  ;;  %v4762_v24 = vld [vmem:[%s6540_s5 + $0xe0] sm:$0xff]  }
  0x7f   : > { %4367 = vmatpush3.bf16.msra.mxu0 %v4741_v61  ;;  %4329 = vmatpush3.bf16.msra.mxu1 %v4744_v49 }
  0x80   : > { %v843_v55 = vadd.f32 %v816_v10, %v759_v53  ;;  %4368 = vmatprep.subr.bf16.mxu0 %v4897_v1  ;;  %4330 = vmatprep.subr.bf16.mxu1 %v4897_v1  ;;  %v5768_v10 = vld [vmem:[%s6539_s4] ss:$0 sm:$0xff] }
  0x82   : > { %v932_v58 = vadd.f32 %v905_v11, %v843_v55 }
  0x83   : > { %4369 = vmatpush3.bf16.msra.mxu0 %v4743_v37  ;;  %4331 = vmatpush3.bf16.msra.mxu1 %v4746_v31 }
  0x84   : > { %v1020_v44 = vadd.f32 %v993_v16, %v932_v58  ;;  %4370 = vmatprep.subr.bf16.mxu0 %v4897_v1  ;;  %4332 = vmatprep.subr.bf16.mxu1 %v4897_v1 }
  0x86   : > { %v1105_v22 = vadd.f32 %v1078_v57, %v1020_v44 }
  0x87   : > { %4371 = vmatpush3.bf16.msra.mxu0 %v4745_v25  ;;  %4333 = vmatpush3.bf16.msra.mxu1 %v4749_v42 }
  0x88   : > { %v1112_v12 = vpack.c.bf16 %v1105_v22, %v1105_v22  ;;  %4372 = vmatprep.subr.bf16.mxu0 %v4897_v1  ;;  %4334 = vmatprep.subr.bf16.mxu1 %v4897_v1 }
  0x8a   : > { %4319 = vmatmul.mubr.msk.bf16.gmra.mrb[24].mxu0 %vm1121_vm5, %v1112_v12  ;;  %v1290_v4 = vpop.permute.xlu0 %1289  ;;  %v1300_v45 = vpop.permute.xlu1 %1299 }
  0x8b   : > { %4374 = vmatprep.mubr.msk.bf16.mxu0 %vm4898_vm1, %v4897_v1  ;;  %4373 = vmatpush3.bf16.msra.mxu0 %v4747_v18 }
  0x8c   : > { %4430 = vmatprep.subr.bf16.mxu0 %v4897_v1  ;;  %4335 = vmatpush3.bf16.msra.mxu1 %v4750_v15 }
  0x8d   : > { %4336 = vmatprep.subr.bf16.mxu1 %v4897_v1 }
  0x8e   : > { %v1295_v62 = vpop.permute.xlu0 %1294  ;;  %v1305_v2 = vpop.permute.xlu1 %1304 }
  0x90   : > { %4337 = vmatpush3.bf16.msra.mxu1 %v4752_v23 }
  0x91   : > { %4394 = vmatprep.subr.bf16.mxu1 %v4897_v1 }
  0x92   : > { %v1310_v31 = vpop.permute.xlu0 %1309  ;;  %v1315_v18 = vpop.permute.xlu1 %1314 }
  0xff   : > { %v1181_v26 = vpop.f32.mrb[0].mxu0 }
 0x100   : > { %v1182_v0 = vadd.f32 %v5768_v10, %v1181_v26  ;;  %v4296_v11 = vpop.f32.mrb[1].mxu0 }
 0x101   : > { %v1184_v13 = vpop.f32.mrb[2].mxu0 }
 0x102   : > { %vm1235_vm6 = vcmp.ge.f32.partialorder %v1182_v0, 0.0  ;;  %v1248_v27 = vmul.f32 0.01, %v1182_v0  ;;  %v1185_v35 = vadd.f32 %v5768_v10, %v1184_v13  ;;  %v4297_v16 = vpop.f32.mrb[3].mxu0  ;;  %v4767_v13 = vld [vmem:[%s6540_s5 + $0xf0] sm:$0xff]  }
 0x103   : > { %v4758_v16 = vld [vmem:[%s6540_s5 + $0x88] sm:$0xff]  }
 0x104   : > { %v1261_v7 = vsel %vm1235_vm6, %v1182_v0, %v1248_v27  ;;  %vm1236_vm7 = vcmp.ge.f32.partialorder %v1185_v35, 0.0  ;;  %v1249_v17 = vmul.f32 0.01, %v1185_v35  ;;  %v4754_v0 = vld [vmem:[%s6540_s5 + $0x80] sm:$0xff]  }
 0x105   : > { %v1352_v39 = vmul.f32 %v1290_v4, %v1261_v7  ;;  %v4768_v7 = vld [vmem:[%s6540_s5 + $0xf8] sm:$0xff]  }
 0x106   : > { %v1262_v28 = vsel %vm1236_vm7, %v1185_v35, %v1249_v17 }
 0x107   : > { %v1353_v29 = vmul.f32 %v1295_v62, %v1262_v28 }
 0x109   : > { %v4095_v36 = vpack.c.bf16 %v1353_v29, %v1352_v39  ;;  %v4760_v39 = vld [vmem:[%s6540_s5 + $0x90] sm:$0xff]  }
 0x10b   : > { %4096 = vst [vmem:[#allocation2] sm:$0xff] %v4095_v36  }
 0x111   : > { %v1189_v6 = vpop.f32.mrb[4].mxu0 }
 0x112   : > { %v1190_v33 = vadd.f32 %v5768_v10, %v1189_v6  ;;  %v4300_v51 = vpop.f32.mrb[5].mxu0  ;;  %v1433_v32 = vld [vmem:[#allocation2] sm:$0xf]  ;;  %v1434_v30 = vld [vmem:[#allocation2 + $0x4] sm:$0xf] }
 0x113   : > { %v1192_v3 = vpop.f32.mrb[6].mxu0  ;;  %v3749_v48 = vcombine.low %v1433_v32, %v1434_v30  ;;  %v1802_v50 = vld [vmem:[#allocation2] sm:$0xe]  ;;  %v4763_v51 = vld [vmem:[%s6540_s5 + $0x98] sm:$0xff]  }
 0x114   : > { %vm1237_vm8 = vcmp.ge.f32.partialorder %v1190_v33, 0.0  ;;  %v1250_v19 = vmul.f32 0.01, %v1190_v33  ;;  %v1193_v59 = vadd.f32 %v5768_v10, %v1192_v3  ;;  %v4301_v20 = vpop.f32.mrb[7].mxu0  ;;  %v3787_v58 = vcombine.low %v1802_v50, %v1434_v30 }
 0x115   : > { %4375 = vmatmul.mubr.bf16.vlgmr.msra.gmra.mrb[28].mxu0 %v3749_v48  ;;  %v1509_v47 = vshll.u32 %v3749_v48, 16  ;;  %v1507_v14 = vshrl.u32 %v3749_v48, 16  ;;  %v1320_v20 = vpop.permute.xlu0 %1319 }
 0x116   : > { %v1263_v43 = vsel %vm1237_vm8, %v1190_v33, %v1250_v19  ;;  %vm1238_vm9 = vcmp.ge.f32.partialorder %v1193_v59, 0.0  ;;  %v1251_v57 = vmul.f32 0.01, %v1193_v59  ;;  %4378 = vmatprep.mubr.msk.bf16.mxu0 %vm4898_vm1, %v4897_v1  ;;  %4431 = vmatpush3.bf16.msra.mxu0 %v4753_v34  ;;  %v1824_v49 = vrot.slane %v3787_v58, 1 }
 0x117   : > { %4432 = vmatprep.subr.bf16.mxu0 %v4897_v1  ;;  %v1354_v60 = vmul.f32 %v1300_v45, %v1263_v43  ;;  %v1511_v55 = vrot.slane %v1509_v47, 1  ;;  %v1325_v43 = vpop.permute.xlu1 %1324 }
 0x118   : > { %v1264_v46 = vsel %vm1238_vm9, %v1193_v59, %v1251_v57 }
 0x119   : > { %v1355_v41 = vmul.f32 %v1305_v2, %v1264_v46  ;;  %v1512_v15 = vor.u32 %v1511_v55, %v1507_v14 }
 0x11a   : > { %4433 = vmatpush3.bf16.msra.mxu0 %v4755_v38 }
 0x11b   : > { %v4100_v54 = vpack.c.bf16 %v1355_v41, %v1354_v60  ;;  %4434 = vmatprep.subr.bf16.mxu0 %v4897_v1 }
 0x11d   : > { %4143 = vst [vmem:[#allocation2 + $0x8] sm:$0xff] %v4100_v54  }
 0x11e   : > { %4435 = vmatpush3.bf16.msra.mxu0 %v4757_v9 }
 0x11f   : > { %4436 = vmatprep.subr.bf16.mxu0 %v4897_v1 }
 0x121   : > { %v1197_v63 = vpop.f32.mrb[8].mxu0 }
 0x122   : > { %v1198_v40 = vadd.f32 %v5768_v10, %v1197_v63  ;;  %v4304_v5 = vpop.f32.mrb[9].mxu0  ;;  %4437 = vmatpush3.bf16.msra.mxu0 %v4759_v21  ;;  %v4766_v21 = vld [vmem:[%s6540_s5 + $0xa0] sm:$0xff]  }
 0x123   : > { %v1200_v53 = vpop.f32.mrb[10].mxu0  ;;  %4438 = vmatprep.subr.bf16.mxu0 %v4897_v1  ;;  %v4769_v5 = vld [vmem:[%s6540_s5 + $0xa8] sm:$0xff]  }
 0x124   : > { %vm1239_vm10 = vcmp.ge.f32.partialorder %v1198_v40, 0.0  ;;  %v1252_v44 = vmul.f32 0.01, %v1198_v40  ;;  %v1201_v22 = vadd.f32 %v5768_v10, %v1200_v53  ;;  %v4305_v12 = vpop.f32.mrb[11].mxu0  ;;  %v5797_v52 = vld [vmem:[#allocation2 + $0x8] sm:$0xff]  }
 0x125   : > { %4379 = vmatmul.mubr.bf16.gmra.mrb[32].mxu0 %v5797_v52  ;;  %v1514_v37 = vshll.u32 %v5797_v52, 16  ;;  %v1825_v25 = vrot.slane %v5797_v52, 1  ;;  %v5836_v36 = vld [vmem:[#allocation2 + $0xc] sm:$0xf]  ;;  %v2968_v32 = vld [vmem:[#allocation2 + $0x8] sm:$0x8] }
 0x126   : > { %v1265_v8 = vsel %vm1239_vm10, %v1198_v40, %v1252_v44  ;;  %vm1240_vm11 = vcmp.ge.f32.partialorder %v1201_v22, 0.0  ;;  %v1253_v61 = vmul.f32 0.01, %v1201_v22  ;;  %4439 = vmatpush3.bf16.msra.mxu0 %v4762_v24  ;;  %4382 = vmatprep.mubr.msk.bf16.mxu0 %vm4898_vm1, %v4897_v1  ;;  %v1518_v48 = vshrl.u32 %v5797_v52, 16  ;;  %v4772_v44 = vld [vmem:[%s6540_s5 + $0xb0] sm:$0xff]  }
 0x127   : > { %4440 = vmatprep.subr.bf16.mxu0 %v4897_v1  ;;  %v1356_v23 = vmul.f32 %v1310_v31, %v1265_v8  ;;  %v1516_v4 = vrot.slane %v1514_v37, 1  ;;  %v5814_v11 = vsel %vm592_vm2, %v1824_v49, %v1825_v25  ;;  %v3947_v46 = vcombine.low %v2968_v32, %v5836_v36  ;;  %v4774_v37 = vld [vmem:[%s6540_s5 + $0xb8] sm:$0xff]   ;;  %v1330_v31 = vpop.permute.xlu0 %1329 }
 0x128   : > { %v1266_v42 = vsel %vm1240_vm11, %v1201_v22, %v1253_v61 }
 0x129   : > { %v1357_v26 = vmul.f32 %v1315_v18, %v1266_v42  ;;  %v1517_v35 = vsel %vm1505_vm12, %v1512_v15, %v1516_v4  ;;  %v1520_v38 = vor.u32 %v1518_v48, %v1516_v4  ;;  %v2990_v63 = vrot.slane %v3947_v46, 3  ;;  %v1335_v18 = vpop.permute.xlu1 %1334 }
 0x12a   : > { %4441 = vmatpush3.bf16.msra.mxu0 %v4764_v56  ;;  %4339 = vmatmul.mubr.bf16.vlgmr.msra.gmra.mrb[0].mxu1 %v1517_v35 }
 0x12b   : > { %v4105_v27 = vpack.c.bf16 %v1357_v26, %v1356_v23  ;;  %4442 = vmatprep.subr.bf16.mxu0 %v4897_v1  ;;  %4395 = vmatpush3.bf16.msra.mxu1 %v4754_v0 }
 0x12c   : > { %4342 = vmatprep.mubr.msk.bf16.mxu1 %vm4898_vm1, %v4897_v1  ;;  %4396 = vmatprep.subr.bf16.mxu1 %v4897_v1 }
 0x12d   : > { %4144 = vst [vmem:[#allocation2 + $0x10] sm:$0xff] %v4105_v27  }
 0x12e   : > { %4443 = vmatpush3.bf16.msra.mxu0 %v4767_v13 }
 0x12f   : > { %4444 = vmatprep.subr.bf16.mxu0 %v4897_v1  ;;  %4397 = vmatpush3.bf16.msra.mxu1 %v4758_v16 }
 0x130   : > { %v1205_v17 = vpop.f32.mrb[12].mxu0  ;;  %4398 = vmatprep.subr.bf16.mxu1 %v4897_v1 }
 0x131   : > { %v1206_v62 = vadd.f32 %v5768_v10, %v1205_v17  ;;  %v4308_v28 = vpop.f32.mrb[13].mxu0 }
 0x132   : > { %v1208_v29 = vpop.f32.mrb[14].mxu0  ;;  %4445 = vmatpush3.bf16.msra.mxu0 %v4768_v7 }
 0x133   : > { %vm1241_vm13 = vcmp.ge.f32.partialorder %v1206_v62, 0.0  ;;  %v1254_v6 = vmul.f32 0.01, %v1206_v62  ;;  %v1209_v45 = vadd.f32 %v5768_v10, %v1208_v29  ;;  %v4309_v33 = vpop.f32.mrb[15].mxu0  ;;  %4502 = vmatprep.subr.bf16.mxu0 %v4897_v1  ;;  %4399 = vmatpush3.bf16.msra.mxu1 %v4760_v39 }
 0x134   : > { %v5843_v30 = vld [vmem:[#allocation2 + $0x10] sm:$0xff]   ;;  %4400 = vmatprep.subr.bf16.mxu1 %v4897_v1 }
 0x135   : > { %v1267_v34 = vsel %vm1241_vm13, %v1206_v62, %v1254_v6  ;;  %vm1242_vm14 = vcmp.ge.f32.partialorder %v1209_v45, 0.0  ;;  %v1255_v3 = vmul.f32 0.01, %v1209_v45  ;;  %4383 = vmatmul.mubr.bf16.gmra.mrb[36].mxu0 %v5843_v30  ;;  %v1522_v19 = vshll.u32 %v5843_v30, 16  ;;  %v5852_v2 = vld [vmem:[#allocation2 + $0x10] sm:$0xff]  }
 0x136   : > { %v1827_v59 = vrot.slane %v5843_v30, 1  ;;  %4386 = vmatprep.mubr.msk.bf16.mxu0 %vm4898_vm1, %v4897_v1  ;;  %v1358_v60 = vmul.f32 %v1320_v20, %v1267_v34  ;;  %v2991_v40 = vrot.slane %v5852_v2, 3  ;;  %v1526_v49 = vshrl.u32 %v5843_v30, 16  ;;  %v5910_v34 = vld [vmem:[#allocation2 + $0xc] sm:$0xff]   ;;  %v1340_v20 = vpop.permute.xlu0 %1339  ;;  %v4797_v30 = vld [vmem:[%s6540_s5 + $0x1c0] sm:$0xff]  }
 0x137   : > { %v1268_v57 = vsel %vm1242_vm14, %v1209_v45, %v1255_v3  ;;  %v1524_v9 = vrot.slane %v1522_v19, 1  ;;  %4401 = vmatpush3.bf16.msra.mxu1 %v4763_v51  ;;  %v5906_v45 = vld [vmem:[#allocation2 + $0x8] sm:$0xf]  ;;  %v1971_v19 = vld [vmem:[#allocation2 + $0x4] sm:$0xe] }
 0x138   : > { %v1359_v41 = vmul.f32 %v1325_v43, %v1268_v57  ;;  %v5860_v54 = vsel %vm592_vm2, %v1825_v25, %v1827_v59  ;;  %4402 = vmatprep.subr.bf16.mxu1 %v4897_v1  ;;  %v5874_v24 = vsel %vm1054_vm4, %v2990_v63, %v2991_v40  ;;  %v1345_v43 = vpop.permute.xlu1 %1344 }
 0x139   : > { %v1525_v50 = vsel %vm1505_vm12, %v1520_v38, %v1524_v9  ;;  %v1528_v4 = vor.u32 %v1526_v49, %v1524_v9  ;;  %v5918_v38 = vcombine.low %v1971_v19, %v5906_v45  ;;  %v4788_v19 = vld [vmem:[%s6540_s5 + $0x168] sm:$0xff]  }
 0x13a   : > { %v4110_v47 = vpack.c.bf16 %v1359_v41, %v1358_v60  ;;  %4343 = vmatmul.mubr.bf16.gmra.mrb[4].mxu1 %v1525_v50 }
 0x13b   : > { %4346 = vmatprep.mubr.msk.bf16.mxu1 %vm4898_vm1, %v4897_v1  ;;  %4403 = vmatpush3.bf16.msra.mxu1 %v4766_v21 }
 0x13c   : > { %4145 = vst [vmem:[#allocation2 + $0x18] sm:$0xff] %v4110_v47   ;;  %4404 = vmatprep.subr.bf16.mxu1 %v4897_v1  ;;  %v2028_v47 = vrot.slane %v5910_v34, 1 }
 0x13f   : > { %4405 = vmatpush3.bf16.msra.mxu1 %v4769_v5  ;;  %v4776_v5 = vld [vmem:[%s6540_s5 + $0x140] sm:$0xff]  }
 0x140   : > { %v1213_v53 = vpop.f32.mrb[16].mxu0  ;;  %4406 = vmatprep.subr.bf16.mxu1 %v4897_v1 }
 0x141   : > { %v1214_v55 = vadd.f32 %v5768_v10, %v1213_v53  ;;  %v4312_v58 = vpop.f32.mrb[17].mxu0 }
 0x142   : > { %v1216_v22 = vpop.f32.mrb[18].mxu0 }
 0x143   : > { %vm1243_vm15 = vcmp.ge.f32.partialorder %v1214_v55, 0.0  ;;  %v1256_v12 = vmul.f32 0.01, %v1214_v55  ;;  %v1217_v52 = vadd.f32 %v5768_v10, %v1216_v22  ;;  %v4313_v56 = vpop.f32.mrb[19].mxu0  ;;  %v5883_v8 = vld [vmem:[#allocation2 + $0x18] sm:$0xff]   ;;  %4407 = vmatpush3.bf16.msra.mxu1 %v4772_v44 }
 0x144   : > { %4387 = vmatmul.mubr.bf16.gmra.mrb[40].mxu0 %v5883_v8  ;;  %v1530_v25 = vshll.u32 %v5883_v8, 16  ;;  %4408 = vmatprep.subr.bf16.mxu1 %v4897_v1  ;;  %v5894_v15 = vld [vmem:[#allocation2 + $0x18] sm:$0xff]   ;;  %v1534_v3 = vshrl.u32 %v5883_v8, 16 }
 0x145   : > { %v1269_v61 = vsel %vm1243_vm15, %v1214_v55, %v1256_v12  ;;  %vm1244_vm6 = vcmp.ge.f32.partialorder %v1217_v52, 0.0  ;;  %v1257_v14 = vmul.f32 0.01, %v1217_v52  ;;  %4390 = vmatprep.mubr.msk.bf16.mxu0 %vm4898_vm1, %v4897_v1  ;;  %v2993_v35 = vrot.slane %v5894_v15, 3  ;;  %v5932_v58 = vld [vmem:[#allocation2 + $0x14] sm:$0xff]  }
 0x146   : > { %v1360_v23 = vmul.f32 %v1330_v31, %v1269_v61  ;;  %v1532_v0 = vrot.slane %v1530_v25, 1  ;;  %v1350_v25 = vpop.permute.xlu0 %1349 }
 0x147   : > { %v1270_v42 = vsel %vm1244_vm6, %v1217_v52, %v1257_v14  ;;  %4409 = vmatpush3.bf16.msra.mxu1 %v4774_v37  ;;  %v5902_v16 = vsel %vm1054_vm4, %v2991_v40, %v2993_v35  ;;  %v2027_v40 = vrot.slane %v5918_v38, 1  ;;  %v4779_v52 = vld [vmem:[%s6540_s5 + $0x148] sm:$0xff]   ;;  %v2030_v37 = vrot.slane %v5932_v58, 1 }
 0x148   : > { %v1361_v26 = vmul.f32 %v1335_v18, %v1270_v42  ;;  %v1533_v27 = vsel %vm1505_vm12, %v1528_v4, %v1532_v0  ;;  %4466 = vmatprep.subr.bf16.mxu1 %v4897_v1  ;;  %v1536_v9 = vor.u32 %v1534_v3, %v1532_v0  ;;  %v4781_v18 = vld [vmem:[%s6540_s5 + $0x150] sm:$0xff]   ;;  %v4778_v3 = vld [vmem:[%s6540_s5 + $0x100] sm:$0xff]  }
 0x149   : > { %4347 = vmatmul.mubr.bf16.gmra.mrb[8].mxu1 %v1533_v27  ;;  %v2029_v55 = vsel %vm592_vm2, %v2027_v40, %v2028_v47  ;;  %v2031_v4 = vsel %vm592_vm2, %v2028_v47, %v2030_v37  ;;  %v4792_v47 = vld [vmem:[%s6540_s5 + $0x178] sm:$0xff]   ;;  %v1829_v40 = vrot.slane %v5883_v8, 1 }
 0x14a   : > { %v4115_v13 = vpack.c.bf16 %v1361_v26, %v1360_v23  ;;  %4350 = vmatprep.mubr.msk.bf16.mxu1 %vm4898_vm1, %v4897_v1 }
 0x14b   : > { %v1830_v8 = vsel %vm592_vm2, %v1827_v59, %v1829_v40 }
 0x14c   : > { %4146 = vst [vmem:[#allocation2 + $0x20] sm:$0xff] %v4115_v13  }
 0x14f   : > { %v1221_v7 = vpop.f32.mrb[20].mxu0 }
 0x150   : > { %v1222_v17 = vadd.f32 %v5768_v10, %v1221_v7  ;;  %v4316_v62 = vpop.f32.mrb[21].mxu0  ;;  %v4783_v7 = vld [vmem:[%s6540_s5 + $0x158] sm:$0xff]  }
 0x151   : > { %v1224_v28 = vpop.f32.mrb[22].mxu0 }
 0x152   : > { %vm1245_vm7 = vcmp.ge.f32.partialorder %v1222_v17, 0.0  ;;  %v1258_v39 = vmul.f32 0.01, %v1222_v17  ;;  %v1225_v29 = vadd.f32 %v5768_v10, %v1224_v28  ;;  %v4317_v6 = vpop.f32.mrb[23].mxu0 }
 0x153   : > { %v5908_v33 = vld [vmem:[#allocation2 + $0x20] sm:$0xff]  }
 0x154   : > { %v1271_v51 = vsel %vm1245_vm7, %v1222_v17, %v1258_v39  ;;  %vm1246_vm8 = vcmp.ge.f32.partialorder %v1225_v29, 0.0  ;;  %v1259_v32 = vmul.f32 0.01, %v1225_v29  ;;  %4391 = vmatmul.mubr.bf16.gmra.mrb[44].mxu0 %v5908_v33  ;;  %v1538_v48 = vshll.u32 %v5908_v33, 16  ;;  %v5920_v46 = vld [vmem:[#allocation2 + $0x20] sm:$0xff]  }
 0x155   : > { %4446 = vmatprep.mubr.msk.bf16.mxu0 %vm4898_vm1, %v4897_v1  ;;  %v1362_v60 = vmul.f32 %v1340_v20, %v1271_v51  ;;  %v2995_v53 = vrot.slane %v5920_v46, 3  ;;  %v1542_v23 = vshrl.u32 %v5908_v33, 16  ;;  %v5954_v0 = vld [vmem:[#allocation2 + $0x1c] sm:$0xff]   ;;  %v1831_v59 = vrot.slane %v5908_v33, 1 }
 0x156   : > { %v1272_v57 = vsel %vm1246_vm8, %v1225_v29, %v1259_v32  ;;  %v1540_v21 = vrot.slane %v1538_v48, 1  ;;  %v2032_v28 = vrot.slane %v5954_v0, 1  ;;  %v4786_v39 = vld [vmem:[%s6540_s5 + $0x160] sm:$0xff]  }
 0x157   : > { %v1363_v41 = vmul.f32 %v1345_v43, %v1272_v57  ;;  %v5935_v44 = vsel %vm1054_vm4, %v2993_v35, %v2995_v53  ;;  %v4782_v57 = vld [vmem:[%s6540_s5 + $0x108] sm:$0xff]   ;;  %v1832_v33 = vsel %vm592_vm2, %v1829_v40, %v1831_v59 }
 0x158   : > { %v1541_v63 = vsel %vm1505_vm12, %v1536_v9, %v1540_v21  ;;  %v1544_v27 = vor.u32 %v1542_v23, %v1540_v21  ;;  %v2033_v6 = vsel %vm592_vm2, %v2030_v37, %v2032_v28  ;;  %v4784_v21 = vld [vmem:[%s6540_s5 + $0x110] sm:$0xff]   ;;  %v4796_v37 = vld [vmem:[%s6540_s5 + $0x138] sm:$0xff]   ;;  %v2197_v23 = vshrl.u32 %v5918_v38, 16 }
 0x159   : > { %v4120_v50 = vpack.c.bf16 %v1363_v41, %v1362_v60  ;;  %4351 = vmatmul.mubr.bf16.gmra.mrb[12].mxu1 %v1541_v63  ;;  %v4791_v41 = vld [vmem:[%s6540_s5 + $0x170] sm:$0xff]   ;;  %v4787_v63 = vld [vmem:[%s6540_s5 + $0x118] sm:$0xff]  }
 0x15a   : > { %4354 = vmatprep.mubr.msk.bf16.mxu1 %vm4898_vm1, %v4897_v1 }
 0x15b   : > { %4147 = vst [vmem:[#allocation2 + $0x28] sm:$0xff] %v4120_v50  }
 0x15c   : > { %4447 = vmatmul.mubr.bf16.vlgmr.msra.gmra.mrb[48].mxu0 %v2029_v55 }
 0x15d   : > { %v1229_v22 = vpop.f32.mrb[24].mxu0  ;;  %4450 = vmatprep.mubr.msk.bf16.mxu0 %vm4898_vm1, %v4897_v1  ;;  %4503 = vmatpush3.bf16.msra.mxu0 %v4776_v5 }
 0x15e   : > { %v1230_v12 = vadd.f32 %v5768_v10, %v1229_v22  ;;  %v4320_v56 = vpop.f32.mrb[25].mxu0  ;;  %4504 = vmatprep.subr.bf16.mxu0 %v4897_v1  ;;  %v2408_v22 = vrot.slane %v5910_v34, 2 }
 0x15f   : > { %v1232_v61 = vpop.f32.mrb[26].mxu0  ;;  %v4795_v56 = vld [vmem:[%s6540_s5 + $0x130] sm:$0xff]  }
 0x160   : > { %vm1247_vm9 = vcmp.ge.f32.partialorder %v1230_v12, 0.0  ;;  %v1260_v14 = vmul.f32 0.01, %v1230_v12  ;;  %v4321_v49 = vpop.f32.mrb[27].mxu0  ;;  %v4799_v61 = vld [vmem:[%s6540_s5 + $0x1c8] sm:$0xff]  }
 0x161   : > { %4505 = vmatpush3.bf16.msra.mxu0 %v4779_v52  ;;  %v4800_v49 = vld [vmem:[%s6540_s5 + $0x1d0] sm:$0xff]  }
 0x162   : > { %v1273_v31 = vsel %vm1247_vm9, %v1230_v12, %v1260_v14  ;;  %v5945_v10 = vld [vmem:[#allocation2 + $0x28] ss:$0 sps:$4 sm:$0x11]   ;;  %4506 = vmatprep.subr.bf16.mxu0 %v4897_v1  ;;  %v4789_v9 = vld [vmem:[#allocation2 + $0x2c] ss:$0 sps:$4 sm:$0x11]  }
 0x163   : > { %v1364_v42 = vmul.f32 %v1350_v25, %v1273_v31  ;;  %v1546_v26 = vshll.u32 %v5945_v10, 16  ;;  %v5962_v17 = vld [vmem:[#allocation2 + $0x28] sm:$0xff]   ;;  %v2036_v50 = vrot.slane %v4789_v9, 1  ;;  %v2410_v14 = vrot.slane %v5932_v58, 2 }
 0x164   : > { %4451 = vmatmul.mubr.bf16.gmra.mrb[52].mxu0 %v2031_v4  ;;  %v2997_v29 = vrot.slane %v5962_v17, 3  ;;  %v5974_v51 = vld [vmem:[#allocation2 + $0x24] sm:$0xff]   ;;  %v1833_v25 = vrot.slane %v5945_v10, 1  ;;  %v4802_v10 = vld [vmem:[%s6540_s5 + $0x1d8] sm:$0xff]  }
 0x165   : > { %v4003_v13 = vpack.c.bf16 %v1364_v42, %v1364_v42  ;;  %v1548_v35 = vrot.slane %v1546_v26, 1  ;;  %4454 = vmatprep.mubr.msk.bf16.mxu0 %vm4898_vm1, %v4897_v1  ;;  %4507 = vmatpush3.bf16.msra.mxu0 %v4781_v18  ;;  %v2034_v20 = vrot.slane %v5974_v51, 1  ;;  %v4793_v12 = vld [vmem:[%s6540_s5 + $0x128] sm:$0xff]   ;;  %v2411_v31 = vsel %vm881_vm3, %v2408_v22, %v2410_v14 }
 0x166   : > { %4508 = vmatprep.subr.bf16.mxu0 %v4897_v1  ;;  %v5977_v32 = vsel %vm1054_vm4, %v2995_v53, %v2997_v29  ;;  %v2385_v53 = vld [vmem:[#allocation2 + $0x4] sm:$0xc]  ;;  %v2205_v18 = vshrl.u32 %v5910_v34, 16  ;;  %v2208_v42 = vshll.u32 %v5910_v34, 16  ;;  %v2200_v26 = vshll.u32 %v5918_v38, 16 }
 0x167   : > { %1430 = vst [vmem:[#allocation2 + $0x30] sm:$0x3] %v4003_v13  ;;  %v1549_v62 = vsel %vm1505_vm12, %v1544_v27, %v1548_v35  ;;  %v2037_v5 = vsel %vm592_vm2, %v2034_v20, %v2036_v50  ;;  %v3867_v55 = vcombine.low %v2385_v53, %v5906_v45  ;;  %v1834_v34 = vsel %vm592_vm2, %v1831_v59, %v1833_v25  ;;  %v2554_v9 = vld [vmem:[#allocation2 + $0x8] sm:$0xc] }
 0x168   : > { %4355 = vmatmul.mubr.bf16.gmra.mrb[16].mxu1 %v1549_v62  ;;  %v2207_v4 = vrot.slane %v2205_v18, 1  ;;  %v2210_v13 = vrot.slane %v2208_v42, 2  ;;  %v2412_v27 = vrot.slane %v5954_v0, 2  ;;  %v2199_v38 = vrot.slane %v2197_v23, 1 }
 0x169   : > { %4410 = vmatprep.mubr.msk.bf16.mxu1 %vm4898_vm1, %v4897_v1  ;;  %4509 = vmatpush3.bf16.msra.mxu0 %v4783_v7  ;;  %v2407_v52 = vrot.slane %v3867_v55, 2  ;;  %v2202_v35 = vrot.slane %v2200_v26, 2  ;;  %v4804_v7 = vld [vmem:[%s6540_s5 + $0x1e0] sm:$0xff]   ;;  %v2223_v50 = vshrl.u32 %v5954_v0, 16  ;;  %v6127_v53 = vcombine.low %v2554_v9, %v5836_v36  ;;  %v4805_v36 = vld [vmem:[%s6540_s5 + $0x198] sm:$0xff]  }
 0x16a   : > { %4510 = vmatprep.subr.bf16.mxu0 %v4897_v1  ;;  %v2211_v62 = vor.u32 %v2210_v13, %v2207_v4  ;;  %v6118_v40 = vld [vmem:[#allocation2 + $0x2c] ss:$0 sps:$4 sm:$0x33]   ;;  %v2791_v55 = vshll.u32 %v5852_v2, 16  ;;  %v2797_v18 = vshrl.u32 %v5894_v15, 16  ;;  %v2800_v42 = vshll.u32 %v5894_v15, 16 }
 0x16b   : > { %v2409_v45 = vsel %vm881_vm3, %v2407_v52, %v2408_v22  ;;  %v2225_v22 = vrot.slane %v2223_v50, 1  ;;  %v2416_v52 = vrot.slane %v6118_v40, 2  ;;  %v2783_v59 = vshll.u32 %v6127_v53, 16 }
 0x16c   : > { %4455 = vmatmul.mubr.bf16.gmra.mrb[56].mxu0 %v2033_v6  ;;  %v2203_v6 = vor.u32 %v2202_v35, %v2199_v38  ;;  %v2799_v13 = vrot.slane %v2797_v18, 2  ;;  %v2818_v50 = vshll.u32 %v5962_v17, 16 }
 0x16d   : > { %4458 = vmatprep.mubr.msk.bf16.mxu0 %vm4898_vm1, %v4897_v1  ;;  %4511 = vmatpush3.bf16.msra.mxu0 %v4786_v39  ;;  %v2214_v39 = vshrl.u32 %v5932_v58, 16 }
 0x16e   : > { %v5984_v48 = vld [vmem:[#allocation2 + $0x30] ss:$0 sps:$4 sm:$0x77]   ;;  %4512 = vmatprep.subr.bf16.mxu0 %v4897_v1 }
 0x16f   : > { %v2999_v43 = vrot.slane %v5984_v48, 3  ;;  %v4827_v18 = vld [vmem:[#allocation2 + $0x30] ss:$0 sps:$4 sm:$0x33]  }
 0x170   : > { %4411 = vmatmul.mubr.bf16.vlgmr.msra.gmra.mrb[20].mxu1 %v5814_v11  ;;  %v2035_v11 = vsel %vm592_vm2, %v2032_v28, %v2034_v20  ;;  %v2413_v28 = vsel %vm881_vm3, %v2410_v14, %v2412_v27  ;;  %vm2195_vm2 = vsmask.f32 6400  ;;  %v2232_v14 = vshrl.u32 %v5974_v51, 16 }
 0x171   : > { %4467 = vmatpush3.bf16.msra.mxu1 %v4778_v3  ;;  %4414 = vmatprep.mubr.msk.bf16.mxu1 %vm4898_vm1, %v4897_v1  ;;  %v5999_v60 = vsel %vm1054_vm4, %v2997_v29, %v2999_v43  ;;  %v2217_v29 = vshll.u32 %v5932_v58, 16  ;;  %v4798_v3 = vld [vmem:[%s6540_s5 + $0x180] sm:$0xff]   ;;  %v2212_v20 = vsel %vm2195_vm2, %v2203_v6, %v2211_v62  ;;  %v2216_v58 = vrot.slane %v2214_v39, 1 }
 0x172   : > { %4468 = vmatprep.subr.bf16.mxu1 %v4897_v1  ;;  %4513 = vmatpush3.bf16.msra.mxu0 %v4788_v19  ;;  %v4806_v19 = vld [vmem:[%s6540_s5 + $0x1e8] sm:$0xff]   ;;  %v2234_v23 = vrot.slane %v2232_v14, 1  ;;  %vm2778_vm4 = vsmask.f32 5376  ;;  %v4824_v14 = vld [vmem:[%s6540_s5 + $0x220] sm:$0xff]  }
 0x173   : > { %4514 = vmatprep.subr.bf16.mxu0 %v4897_v1  ;;  %v2219_v43 = vrot.slane %v2217_v29, 2  ;;  %v2806_v29 = vshrl.u32 %v5920_v46, 16 }
 0x174   : > { %4459 = vmatmul.mubr.bf16.gmra.mrb[60].mxu0 %v2035_v11  ;;  %v4809_v11 = vld [vmem:[%s6540_s5 + $0x1f0] sm:$0xff]  }
 0x175   : > { %4469 = vmatpush3.bf16.msra.mxu1 %v4782_v57  ;;  %4462 = vmatprep.mubr.msk.bf16.mxu0 %vm4898_vm1, %v4897_v1  ;;  %v2414_v57 = vrot.slane %v5974_v51, 2 }
 0x176   : > { %4470 = vmatprep.subr.bf16.mxu1 %v4897_v1  ;;  %4515 = vmatpush3.bf16.msra.mxu0 %v4791_v41  ;;  %v4801_v41 = vld [vmem:[%s6540_s5 + $0x188] sm:$0xff]  }
 0x177   : > { %4516 = vmatprep.subr.bf16.mxu0 %v4897_v1 }
 0x178   : > { %4415 = vmatmul.mubr.bf16.gmra.mrb[24].mxu1 %v5860_v54  ;;  %v4790_v54 = vld [vmem:[%s6540_s5 + $0x120] sm:$0xff]  }
 0x179   : > { %4471 = vmatpush3.bf16.msra.mxu1 %v4784_v21  ;;  %4418 = vmatprep.mubr.msk.bf16.mxu1 %vm4898_vm1, %v4897_v1  ;;  %v2220_v21 = vor.u32 %v2219_v43, %v2216_v58  ;;  %v4815_v58 = vld [vmem:[%s6540_s5 + $0x1b8] sm:$0xff]  }
 0x17a   : > { %4472 = vmatprep.subr.bf16.mxu1 %v4897_v1  ;;  %4517 = vmatpush3.bf16.msra.mxu0 %v4792_v47  ;;  %v2415_v47 = vsel %vm881_vm3, %v2412_v27, %v2414_v57  ;;  %v2802_v27 = vrot.slane %v2800_v42, 3  ;;  %v4828_v42 = vld [vmem:[%s6540_s5 + $0x238] sm:$0xff]  }
 0x17b   : > { %4574 = vmatprep.subr.bf16.mxu0 %v4897_v1 }
 0x17c   : > { %4463 = vmatmul.mubr.bf16.gmra.mrb[64].mxu0 %v2037_v5  ;;  %v4803_v5 = vld [vmem:[%s6540_s5 + $0x190] sm:$0xff]   ;;  %v2803_v39 = vor.u32 %v2802_v27, %v2799_v13 }
 0x17d   : > { %4473 = vmatpush3.bf16.msra.mxu1 %v4787_v63  ;;  %4518 = vmatprep.mubr.msk.bf16.mxu0 %vm4898_vm1, %v4897_v1  ;;  %v2226_v63 = vshll.u32 %v5954_v0, 16  ;;  %v4810_v0 = vld [vmem:[%s6540_s5 + $0x1f8] sm:$0xff]  }
 0x17e   : > { %4474 = vmatprep.subr.bf16.mxu1 %v4897_v1 }
 0x180   : > { %4419 = vmatmul.mubr.bf16.gmra.mrb[28].mxu1 %v1830_v8  ;;  %v2221_v8 = vsel %vm2195_vm2, %v2211_v62, %v2220_v21  ;;  %v2244_v62 = vshll.u32 %v6118_v40, 16 }
 0x181   : > { %4475 = vmatpush3.bf16.msra.mxu1 %v4790_v54  ;;  %4422 = vmatprep.mubr.msk.bf16.mxu1 %vm4898_vm1, %v4897_v1  ;;  %v2788_v54 = vshrl.u32 %v5852_v2, 16 }
 0x182   : > { %4476 = vmatprep.subr.bf16.mxu1 %v4897_v1 }
 0x184   : > { %4519 = vmatmul.mubr.bf16.vlgmr.msra.gmra.mrb[68].mxu0 %v2409_v45  ;;  %v2790_v45 = vrot.slane %v2788_v54, 2  ;;  %v2610_v54 = vrot.slane %v6127_v53, 2 }
 0x185   : > { %4477 = vmatpush3.bf16.msra.mxu1 %v4793_v12  ;;  %4522 = vmatprep.mubr.msk.bf16.mxu0 %vm4898_vm1, %v4897_v1  ;;  %v2228_v12 = vrot.slane %v2226_v63, 2  ;;  %v2611_v63 = vrot.slane %v5852_v2, 2  ;;  %v2827_v2 = vshll.u32 %v5984_v48, 16 }
 0x186   : > { %4478 = vmatprep.subr.bf16.mxu1 %v4897_v1  ;;  %4575 = vmatpush3.bf16.msra.mxu0 %v4797_v30  ;;  %v2780_v30 = vshrl.u32 %v6127_v53, 16  ;;  %v4819_v53 = vld [vmem:[%s6540_s5 + $0x208] sm:$0xff]  }
 0x187   : > { %4576 = vmatprep.subr.bf16.mxu0 %v4897_v1 }
 0x188   : > { %4423 = vmatmul.mubr.bf16.gmra.mrb[32].mxu1 %v1832_v33  ;;  %v2417_v33 = vsel %vm881_vm3, %v2414_v57, %v2416_v52  ;;  %v2782_v25 = vrot.slane %v2780_v30, 2  ;;  %v2613_v52 = vrot.slane %v5894_v15, 2  ;;  %v4822_v15 = vld [vmem:[%s6540_s5 + $0x218] sm:$0xff]  }
 0x189   : > { %4479 = vmatpush3.bf16.msra.mxu1 %v4795_v56  ;;  %4426 = vmatprep.mubr.msk.bf16.mxu1 %vm4898_vm1, %v4897_v1  ;;  %v2793_v56 = vrot.slane %v2791_v55, 3  ;;  %v4817_v55 = vld [vmem:[%s6540_s5 + $0x200] sm:$0xff]  }
 0x18a   : > { %4480 = vmatprep.subr.bf16.mxu1 %v4897_v1  ;;  %4577 = vmatpush3.bf16.msra.mxu0 %v4799_v61  ;;  %v2229_v61 = vor.u32 %v2228_v12, %v2225_v22  ;;  %v2824_v12 = vshrl.u32 %v5984_v48, 16  ;;  %v4820_v48 = vld [vmem:[%s6540_s5 + $0x210] sm:$0xff]  }
 0x18b   : > { %4578 = vmatprep.subr.bf16.mxu0 %v4897_v1 }
 0x18c   : > { %4523 = vmatmul.mubr.bf16.gmra.mrb[72].mxu0 %v2411_v31  ;;  %v2785_v31 = vrot.slane %v2783_v59, 3  ;;  %v2826_v30 = vrot.slane %v2824_v12, 2  ;;  %v2829_v59 = vrot.slane %v2827_v2, 3 }
 0x18d   : > { %4481 = vmatpush3.bf16.msra.mxu1 %v4796_v37  ;;  %4526 = vmatprep.mubr.msk.bf16.mxu0 %vm4898_vm1, %v4897_v1  ;;  %v2235_v37 = vshll.u32 %v5974_v51, 16  ;;  %v2230_v51 = vsel %vm2195_vm2, %v2220_v21, %v2229_v61 }
 0x18e   : > { %4538 = vmatprep.subr.bf16.mxu1 %v4897_v1  ;;  %4579 = vmatpush3.bf16.msra.mxu0 %v4800_v49  ;;  %v4808_v49 = vld [vmem:[%s6540_s5 + $0x1a0] sm:$0xff]   ;;  %v2786_v4 = vor.u32 %v2785_v31, %v2782_v25  ;;  %v4826_v25 = vld [vmem:[%s6540_s5 + $0x230] sm:$0xff]  }
 0x18f   : > { %4580 = vmatprep.subr.bf16.mxu0 %v4897_v1  ;;  %v2237_v26 = vrot.slane %v2235_v37, 2 }
 0x190   : > { %4427 = vmatmul.mubr.bf16.gmra.mrb[36].mxu1 %v1834_v34  ;;  %v4811_v34 = vld [vmem:[%s6540_s5 + $0x1a8] sm:$0xff]  }
 0x191   : > { %4482 = vmatprep.mubr.msk.bf16.mxu1 %vm4898_vm1, %v4897_v1  ;;  %v2238_v38 = vor.u32 %v2237_v26, %v2234_v23  ;;  %v3344_v23 = vld [vmem:[%s6544_s9] sm:$0x3] }
 0x192   : > { %4581 = vmatpush3.bf16.msra.mxu0 %v4802_v10  ;;  %v2794_v10 = vor.u32 %v2793_v56, %v2790_v45  ;;  %v2614_v45 = vsel %vm881_vm3, %v2611_v63, %v2613_v52  ;;  %v2830_v56 = vor.u32 %v2829_v59, %v2826_v30  ;;  %v3449_v26 = vsel %vm1143_vm0, %v3344_v23, 0 }
 0x193   : > { %4582 = vmatprep.subr.bf16.mxu0 %v4897_v1  ;;  %v2239_v6 = vsel %vm2195_vm2, %v2229_v61, %v2238_v38  ;;  %v2615_v61 = vrot.slane %v5920_v46, 2 }
 0x194   : > { %4527 = vmatmul.mubr.bf16.gmra.mrb[76].mxu0 %v2413_v28  ;;  %v2795_v35 = vsel %vm2778_vm4, %v2786_v4, %v2794_v10  ;;  %v4814_v28 = vld [vmem:[%s6540_s5 + $0x1b0] sm:$0xff]   ;;  %v2804_v57 = vsel %vm2778_vm4, %v2794_v10, %v2803_v39 }
 0x195   : > { %4530 = vmatprep.mubr.msk.bf16.mxu0 %vm4898_vm1, %v4897_v1  ;;  %v2616_v37 = vsel %vm881_vm3, %v2613_v52, %v2615_v61 }
 0x196   : > { %4583 = vmatpush3.bf16.msra.mxu0 %v4804_v7  ;;  %v2241_v7 = vshrl.u32 %v6118_v40, 16 }
 0x197   : > { %4584 = vmatprep.subr.bf16.mxu0 %v4897_v1 }
 0x198   : > { %4483 = vmatmul.mubr.bf16.vlgmr.msra.gmra.mrb[40].mxu1 %v2212_v20  ;;  %v2809_v20 = vshll.u32 %v5920_v46, 16  ;;  %v4825_v46 = vld [vmem:[%s6540_s5 + $0x228] sm:$0xff]  }
 0x199   : > { %4539 = vmatpush3.bf16.msra.mxu1 %v4798_v3  ;;  %4486 = vmatprep.mubr.msk.bf16.mxu1 %vm4898_vm1, %v4897_v1  ;;  %v2243_v3 = vrot.slane %v2241_v7, 1 }
 0x19a   : > { %4540 = vmatprep.subr.bf16.mxu1 %v4897_v1  ;;  %4585 = vmatpush3.bf16.msra.mxu0 %v4806_v19  ;;  %v2246_v19 = vrot.slane %v2244_v62, 2 }
 0x19b   : > { %4586 = vmatprep.subr.bf16.mxu0 %v4897_v1 }
 0x19c   : > { %4531 = vmatmul.mubr.bf16.gmra.mrb[80].mxu0 %v2415_v47  ;;  %v2247_v43 = vor.u32 %v2246_v19, %v2243_v3  ;;  %v2815_v47 = vshrl.u32 %v5962_v17, 16 }
 0x19d   : > { %4541 = vmatpush3.bf16.msra.mxu1 %v4801_v41  ;;  %4534 = vmatprep.mubr.msk.bf16.mxu0 %vm4898_vm1, %v4897_v1  ;;  %v2808_v41 = vrot.slane %v2806_v29, 2 }
 0x19e   : > { %4542 = vmatprep.subr.bf16.mxu1 %v4897_v1  ;;  %4587 = vmatpush3.bf16.msra.mxu0 %v4809_v11  ;;  %v2811_v11 = vrot.slane %v2809_v20, 3  ;;  %v2248_v9 = vsel %vm2195_vm2, %v2238_v38, %v2247_v43 }
 0x19f   : > { %4588 = vmatprep.subr.bf16.mxu0 %v4897_v1 }
 0x1a0   : > { %4487 = vmatmul.mubr.bf16.gmra.mrb[44].mxu1 %v2221_v8  ;;  %v2812_v21 = vor.u32 %v2811_v11, %v2808_v41  ;;  %v2612_v8 = vsel %vm881_vm3, %v2610_v54, %v2611_v63 }
 0x1a1   : > { %4543 = vmatpush3.bf16.msra.mxu1 %v4803_v5  ;;  %4490 = vmatprep.mubr.msk.bf16.mxu1 %vm4898_vm1, %v4897_v1  ;;  %v2817_v5 = vrot.slane %v2815_v47, 2 }
 0x1a2   : > { %4544 = vmatprep.subr.bf16.mxu1 %v4897_v1  ;;  %4589 = vmatpush3.bf16.msra.mxu0 %v4810_v0  ;;  %v2813_v40 = vsel %vm2778_vm4, %v2803_v39, %v2812_v21  ;;  %v2820_v0 = vrot.slane %v2818_v50, 3 }
 0x1a3   : > { %4646 = vmatprep.subr.bf16.mxu0 %v4897_v1 }
 0x1a4   : > { %4535 = vmatmul.mubr.bf16.gmra.mrb[84].mxu0 %v2417_v33  ;;  %v2821_v22 = vor.u32 %v2820_v0, %v2817_v5 }
 0x1a5   : > { %4545 = vmatpush3.bf16.msra.mxu1 %v4805_v36  ;;  %4590 = vmatprep.mubr.msk.bf16.mxu0 %vm4898_vm1, %v4897_v1 }
 0x1a6   : > { %4546 = vmatprep.subr.bf16.mxu1 %v4897_v1  ;;  %v2822_v36 = vsel %vm2778_vm4, %v2812_v21, %v2821_v22  ;;  %v2831_v33 = vsel %vm2778_vm4, %v2821_v22, %v2830_v56 }
 0x1a8   : > { %4491 = vmatmul.mubr.bf16.gmra.mrb[48].mxu1 %v2230_v51 }
 0x1a9   : > { %4547 = vmatpush3.bf16.msra.mxu1 %v4808_v49  ;;  %4494 = vmatprep.mubr.msk.bf16.mxu1 %vm4898_vm1, %v4897_v1  ;;  %v2617_v49 = vrot.slane %v5962_v17, 2  ;;  %v2619_v17 = vrot.slane %v4827_v18, 2 }
 0x1aa   : > { %4548 = vmatprep.subr.bf16.mxu1 %v4897_v1 }
 0x1ab   : > { %v2618_v31 = vsel %vm881_vm3, %v2615_v61, %v2617_v49  ;;  %v2620_v51 = vsel %vm881_vm3, %v2617_v49, %v2619_v17 }
 0x1ac   : > { %4591 = vmatmul.mubr.bf16.vlgmr.msra.gmra.mrb[88].mxu0 %v2795_v35 }
 0x1ad   : > { %4549 = vmatpush3.bf16.msra.mxu1 %v4811_v34  ;;  %4594 = vmatprep.mubr.msk.bf16.mxu0 %vm4898_vm1, %v4897_v1 }
 0x1ae   : > { %4550 = vmatprep.subr.bf16.mxu1 %v4897_v1 }
 0x1b0   : > { %4495 = vmatmul.mubr.bf16.gmra.mrb[52].mxu1 %v2239_v6 }
 0x1b1   : > { %4551 = vmatpush3.bf16.msra.mxu1 %v4814_v28  ;;  %4498 = vmatprep.mubr.msk.bf16.mxu1 %vm4898_vm1, %v4897_v1 }
 0x1b2   : > { %4552 = vmatprep.subr.bf16.mxu1 %v4897_v1 }
 0x1b4   : > { %4595 = vmatmul.mubr.bf16.gmra.mrb[92].mxu0 %v2804_v57 }
 0x1b5   : > { %4553 = vmatpush3.bf16.msra.mxu1 %v4815_v58  ;;  %4598 = vmatprep.mubr.msk.bf16.mxu0 %vm4898_vm1, %v4897_v1 }
 0x1b6   : > { %4610 = vmatprep.subr.bf16.mxu1 %v4897_v1 }
 0x1b8   : > { %4499 = vmatmul.mubr.bf16.gmra.mrb[56].mxu1 %v2248_v9 }
 0x1b9   : > { %4554 = vmatprep.mubr.msk.bf16.mxu1 %vm4898_vm1, %v4897_v1 }
 0x1bc   : > { %4599 = vmatmul.mubr.bf16.gmra.mrb[96].mxu0 %v2813_v40  ;;  %v4830_v40 = vld [vmem:[%s6543_s8] sm:$0xff]  }
 0x1bd   : > { %4602 = vmatprep.mubr.msk.bf16.mxu0 %vm4898_vm1, %v4897_v1  ;;  %4647 = vmatpush3.bf16.msra.mxu0 %v4830_v40 }
 0x1be   : > { %4648 = vmatprep.subr.bf16.mxu0 %v4897_v1 }
 0x1c0   : > { %4555 = vmatmul.mubr.bf16.vlgmr.msra.gmra.mrb[60].mxu1 %v2612_v8  ;;  %v4832_v8 = vld [vmem:[%s6543_s8 + $0x10] sm:$0xff]  }
 0x1c1   : > { %4611 = vmatpush3.bf16.msra.mxu1 %v4817_v55  ;;  %4558 = vmatprep.mubr.msk.bf16.mxu1 %vm4898_vm1, %v4897_v1  ;;  %v4831_v55 = vld [vmem:[%s6543_s8 + $0x8] sm:$0xff]  }
 0x1c2   : > { %4612 = vmatprep.subr.bf16.mxu1 %v4897_v1  ;;  %4649 = vmatpush3.bf16.msra.mxu0 %v4831_v55 }
 0x1c3   : > { %4650 = vmatprep.subr.bf16.mxu0 %v4897_v1 }
 0x1c4   : > { %4603 = vmatmul.mubr.bf16.gmra.mrb[100].mxu0 %v2822_v36 }
 0x1c5   : > { %4613 = vmatpush3.bf16.msra.mxu1 %v4819_v53  ;;  %4606 = vmatprep.mubr.msk.bf16.mxu0 %vm4898_vm1, %v4897_v1 }
 0x1c6   : > { %4614 = vmatprep.subr.bf16.mxu1 %v4897_v1  ;;  %4651 = vmatpush3.bf16.msra.mxu0 %v4832_v8 }
 0x1c7   : > { %4652 = vmatprep.subr.bf16.mxu0 %v4897_v1 }
 0x1c8   : > { %4559 = vmatmul.mubr.bf16.gmra.mrb[64].mxu1 %v2614_v45 }
 0x1c9   : > { %4615 = vmatpush3.bf16.msra.mxu1 %v4820_v48  ;;  %4562 = vmatprep.mubr.msk.bf16.mxu1 %vm4898_vm1, %v4897_v1  ;;  %v4833_v48 = vld [vmem:[%s6543_s8 + $0x18] sm:$0xff]  }
 0x1ca   : > { %4616 = vmatprep.subr.bf16.mxu1 %v4897_v1  ;;  %4653 = vmatpush3.bf16.msra.mxu0 %v4833_v48 }
 0x1cb   : > { %4654 = vmatprep.subr.bf16.mxu0 %v4897_v1 }
 0x1cc   : > { %4607 = vmatmul.mubr.bf16.gmra.mrb[104].mxu0 %v2831_v33  ;;  %v4834_v33 = vld [vmem:[%s6543_s8 + $0x20] sm:$0xff]  }
 0x1cd   : > { %4617 = vmatpush3.bf16.msra.mxu1 %v4822_v15  ;;  %4662 = vmatprep.mubr.msk.bf16.mxu0 %vm4898_vm1, %v4897_v1 }
 0x1ce   : > { %4618 = vmatprep.subr.bf16.mxu1 %v4897_v1  ;;  %4655 = vmatpush3.bf16.msra.mxu0 %v4834_v33 }
 0x1cf   : > { %4656 = vmatprep.subr.bf16.mxu0 %v4897_v1 }
 0x1d0   : > { %4563 = vmatmul.mubr.bf16.gmra.mrb[68].mxu1 %v2616_v37 }
 0x1d1   : > { %4619 = vmatpush3.bf16.msra.mxu1 %v4824_v14  ;;  %4566 = vmatprep.mubr.msk.bf16.mxu1 %vm4898_vm1, %v4897_v1 }
 0x1d2   : > { %4620 = vmatprep.subr.bf16.mxu1 %v4897_v1 }
 0x1d5   : > { %4621 = vmatpush3.bf16.msra.mxu1 %v4825_v46  ;;  %v4835_v46 = vld [vmem:[%s6543_s8 + $0x28] sm:$0xff]  }
 0x1d6   : > { %4622 = vmatprep.subr.bf16.mxu1 %v4897_v1  ;;  %4657 = vmatpush3.bf16.msra.mxu0 %v4835_v46 }
 0x1d7   : > { %4658 = vmatprep.subr.bf16.mxu0 %v4897_v1 }
 0x1d8   : > { %4567 = vmatmul.mubr.bf16.gmra.mrb[72].mxu1 %v2618_v31 }
 0x1d9   : > { %4623 = vmatpush3.bf16.msra.mxu1 %v4826_v25  ;;  %4570 = vmatprep.mubr.msk.bf16.mxu1 %vm4898_vm1, %v4897_v1 }
 0x1da   : > { %4624 = vmatprep.subr.bf16.mxu1 %v4897_v1 }
 0x1dd   : > { %4625 = vmatpush3.bf16.msra.mxu1 %v4828_v42 }
 0x1de   : > { %4682 = vmatprep.subr.bf16.mxu1 %v4897_v1 }
 0x1e0   : > { %4571 = vmatmul.mubr.bf16.gmra.mrb[76].mxu1 %v2620_v51 }
 0x1e1   : > { %4626 = vmatprep.mubr.msk.bf16.mxu1 %vm4898_vm1, %v4897_v1 }
 0x1e8   : > { %v1763_v10 = vpop.f32.mrb[28].mxu0  ;;  %4627 = vmatmul.mubr.bf16.vlgmr.msra.gmra.mrb[80].mxu1 %v5874_v24 }
 0x1e9   : > { %v4376_v34 = vpop.f32.mrb[29].mxu0  ;;  %4630 = vmatprep.mubr.msk.bf16.mxu1 %vm4898_vm1, %v4897_v1  ;;  %4683 = vmatpush3.bf16.msra.mxu1 %v3449_v26 }
 0x1ea   : > { %v1766_v4 = vpop.f32.mrb[30].mxu0 }
 0x1eb   : > { %v4377_v13 = vpop.f32.mrb[31].mxu0 }
 0x1ec   : > { %v4836_v13 = vld [vmem:[%s6543_s8 + $0x30] sm:$0xff]  }
 0x1ed   : > { %4659 = vmatpush3.bf16.msra.mxu0 %v4836_v13 }
 0x1ee   : > { %4660 = vmatprep.subr.bf16.mxu0 %v4897_v1 }
 0x1f0   : > { %4631 = vmatmul.mubr.bf16.gmra.mrb[84].mxu1 %v5902_v16 }
 0x1f1   : > { %4634 = vmatprep.mubr.msk.bf16.mxu1 %vm4898_vm1, %v4897_v1 }
 0x1f8   : > { %4635 = vmatmul.mubr.bf16.gmra.mrb[88].mxu1 %v5935_v44  ;;  %v1771_v27 = vpop.f32.mrb[32].mxu0 }
 0x1f9   : > { %4638 = vmatprep.mubr.msk.bf16.mxu1 %vm4898_vm1, %v4897_v1  ;;  %v4380_v38 = vpop.f32.mrb[33].mxu0 }
 0x1fa   : > { %v1774_v24 = vpop.f32.mrb[34].mxu0 }
 0x1fb   : > { %v4381_v35 = vpop.f32.mrb[35].mxu0 }
 0x1fd   : > { %v1637_v7 = vpop.f32.mrb[0].mxu1 }
 0x1fe   : > { %v6268_v62 = vadd.f32 %v1763_v10, %v1637_v7  ;;  %v4340_v28 = vpop.f32.mrb[1].mxu1 }
 0x1ff   : > { %v1640_v39 = vpop.f32.mrb[2].mxu1  ;;  %v4837_v28 = vld [vmem:[%s6543_s8 + $0x38] sm:$0xff]  }
 0x200   : > { %4639 = vmatmul.mubr.bf16.gmra.mrb[92].mxu1 %v5977_v32  ;;  %v6273_v16 = vadd.f32 %v1766_v4, %v1640_v39  ;;  %v4341_v44 = vpop.f32.mrb[3].mxu1  ;;  %4661 = vmatpush3.bf16.msra.mxu0 %v4837_v28 }
 0x201   : > { %4642 = vmatprep.mubr.msk.bf16.mxu1 %vm4898_vm1, %v4897_v1 }
 0x208   : > { %4643 = vmatmul.mubr.bf16.gmra.mrb[96].mxu1 %v5999_v60  ;;  %v1779_v29 = vpop.f32.mrb[36].mxu0 }
 0x209   : > { %v4384_v6 = vpop.f32.mrb[37].mxu0  ;;  %4684 = vmatprep.mubr.msk.bf16.mxu1 %vm4898_vm1, %v4897_v1 }
 0x20a   : > { %v1782_v3 = vpop.f32.mrb[38].mxu0 }
 0x20b   : > { %v4385_v19 = vpop.f32.mrb[39].mxu0 }
 0x20d   : > { %v1645_v20 = vpop.f32.mrb[4].mxu1 }
 0x20e   : > { %v6278_v58 = vadd.f32 %v1771_v27, %v1645_v20  ;;  %v4344_v32 = vpop.f32.mrb[5].mxu1 }
 0x20f   : > { %v1648_v43 = vpop.f32.mrb[6].mxu1 }
 0x210   : > { %v6280_v57 = vadd.f32 %v1774_v24, %v1648_v43  ;;  %v4345_v41 = vpop.f32.mrb[7].mxu1 }
 0x217   : > { %v1787_v11 = vpop.f32.mrb[40].mxu0 }
 0x218   : > { %v4388_v9 = vpop.f32.mrb[41].mxu0 }
 0x219   : > { %v1790_v21 = vpop.f32.mrb[42].mxu0 }
 0x21a   : > { %v4389_v47 = vpop.f32.mrb[43].mxu0 }
 0x21c   : > { %v1653_v60 = vpop.f32.mrb[8].mxu1 }
 0x21d   : > { %v6282_v50 = vadd.f32 %v1779_v29, %v1653_v60  ;;  %v4348_v63 = vpop.f32.mrb[9].mxu1  ;;  %v4838_v60 = vld [vmem:[%s5006_s13 + $0xb8] sm:$0xfe]  }
 0x21e   : > { %v1656_v5 = vpop.f32.mrb[10].mxu1  ;;  %v4839_v63 = vld [vmem:[%s5006_s13 + $0xc0] sm:$0xff]   ;;  %v3381_v55 = vshrl.u32 %v4838_v60, 16  ;;  %v3384_v8 = vshll.u32 %v4838_v60, 16 }
 0x21f   : > { %v6287_v0 = vadd.f32 %v1782_v3, %v1656_v5  ;;  %v4349_v54 = vpop.f32.mrb[11].mxu1 }
 0x227   : > { %v1795_v22 = vpop.f32.mrb[44].mxu0 }
 0x228   : > { %v4392_v12 = vpop.f32.mrb[45].mxu0 }
 0x229   : > { %v1798_v2 = vpop.f32.mrb[46].mxu0 }
 0x22a   : > { %v4393_v53 = vpop.f32.mrb[47].mxu0 }
 0x22b   : > { %v3383_v53 = vrot.slane %v3381_v55, 1 }
 0x22c   : > { %v1661_v52 = vpop.f32.mrb[12].mxu1 }
 0x22d   : > { %v6298_v36 = vadd.f32 %v1787_v11, %v1661_v52  ;;  %v4352_v30 = vpop.f32.mrb[13].mxu1 }
 0x22e   : > { %v1664_v59 = vpop.f32.mrb[14].mxu1 }
 0x22f   : > { %v6303_v45 = vadd.f32 %v1790_v21, %v1664_v59  ;;  %v4353_v56 = vpop.f32.mrb[15].mxu1  ;;  %v2125_v15 = vpop.f32.mrb[48].mxu0 }
 0x230   : > { %v4448_v61 = vpop.f32.mrb[49].mxu0 }
 0x231   : > { %v2128_v14 = vpop.f32.mrb[50].mxu0 }
 0x232   : > { %v4449_v37 = vpop.f32.mrb[51].mxu0 }
 0x237   : > { %v2133_v49 = vpop.f32.mrb[52].mxu0 }
 0x238   : > { %v4452_v25 = vpop.f32.mrb[53].mxu0 }
 0x239   : > { %v2136_v31 = vpop.f32.mrb[54].mxu0 }
 0x23a   : > { %v4453_v18 = vpop.f32.mrb[55].mxu0 }
 0x23b   : > { %v1669_v42 = vpop.f32.mrb[16].mxu1 }
 0x23c   : > { %v6314_v17 = vadd.f32 %v1795_v22, %v1669_v42  ;;  %v4356_v51 = vpop.f32.mrb[17].mxu1  ;;  %v3389_v22 = vshrl.u32 %v4839_v63, 16 }
 0x23d   : > { %v1672_v23 = vpop.f32.mrb[18].mxu1 }
 0x23e   : > { %v6316_v26 = vadd.f32 %v1798_v2, %v1672_v23  ;;  %v4357_v10 = vpop.f32.mrb[19].mxu1  ;;  %v3391_v52 = vrot.slane %v3389_v22, 1  ;;  %v4842_v22 = vld [vmem:[%s5006_s13 + $0xd8] sm:$0xff]  }
 0x23f   : > { %v2141_v34 = vpop.f32.mrb[56].mxu0 }
 0x240   : > { %v4456_v4 = vpop.f32.mrb[57].mxu0 }
 0x241   : > { %v2144_v27 = vpop.f32.mrb[58].mxu0 }
 0x242   : > { %v4457_v38 = vpop.f32.mrb[59].mxu0 }
 0x243   : > { %v1922_v24 = vpop.f32.mrb[20].mxu1 }
 0x244   : > { %v1961_v35 = vadd.f32 %v1922_v24, %v6268_v62  ;;  %v4412_v7 = vpop.f32.mrb[21].mxu1 }
 0x245   : > { %v1925_v39 = vpop.f32.mrb[22].mxu1 }
 0x246   : > { %v1962_v44 = vadd.f32 %v1925_v39, %v6273_v16  ;;  %v4413_v29 = vpop.f32.mrb[23].mxu1  ;;  %v6327_v6 = vadd.f32 %v2125_v15, %v1961_v35 }
 0x247   : > { %v2149_v3 = vpop.f32.mrb[60].mxu0 }
 0x248   : > { %v4460_v19 = vpop.f32.mrb[61].mxu0  ;;  %v6329_v20 = vadd.f32 %v2128_v14, %v1962_v44  ;;  %v4841_v44 = vld [vmem:[%s5006_s13 + $0xd0] sm:$0xff]  }
 0x249   : > { %v2152_v32 = vpop.f32.mrb[62].mxu0 }
 0x24a   : > { %v4461_v62 = vpop.f32.mrb[63].mxu0 }
 0x24b   : > { %v1930_v43 = vpop.f32.mrb[24].mxu1 }
 0x24c   : > { %v1963_v41 = vadd.f32 %v1930_v43, %v6278_v58  ;;  %v4416_v11 = vpop.f32.mrb[25].mxu1  ;;  %v3392_v58 = vshll.u32 %v4839_v63, 16  ;;  %v3407_v43 = vshrl.u32 %v4841_v44, 16 }
 0x24d   : > { %v1933_v9 = vpop.f32.mrb[26].mxu1 }
 0x24e   : > { %v1964_v21 = vadd.f32 %v1933_v9, %v6280_v57  ;;  %v4417_v16 = vpop.f32.mrb[27].mxu1  ;;  %v6333_v47 = vadd.f32 %v2133_v49, %v1963_v41  ;;  %v3386_v57 = vrot.slane %v3384_v8, 2  ;;  %v3394_v59 = vrot.slane %v3392_v58, 2  ;;  %v4840_v49 = vld [vmem:[%s5006_s13 + $0xc8] sm:$0xff]  }
 0x24f   : > { %v6337_v40 = vpop.f32.mrb[64].mxu0  ;;  %v3401_v51 = vshll.u32 %v4840_v49, 16  ;;  %v4843_v58 = vld [vmem:[%s5006_s13 + $0xe0] ss:$0 sps:$4 sm:$0x33]  }
 0x250   : > { %v4464_v5 = vpop.f32.mrb[65].mxu0  ;;  %v6339_v54 = vadd.f32 %v2136_v31, %v1964_v21  ;;  %v3387_v15 = vor.u32 %v3386_v57, %v3383_v53  ;;  %v3395_v33 = vor.u32 %v3394_v59, %v3391_v52  ;;  %v3419_v52 = vshll.u32 %v4842_v22, 16 }
 0x251   : > { %v6341_v12 = vpop.f32.mrb[66].mxu0 }
 0x252   : > { %v4465_v2 = vpop.f32.mrb[67].mxu0  ;;  %v3396_v31 = vsel %vm2195_vm2, %v3387_v15, %v3395_v33 }
 0x253   : > { %v1938_v30 = vpop.f32.mrb[28].mxu1  ;;  %4685 = vmatmul.mubr.msk.bf16.vlgmr.msra.gmra.mrb[100].mxu1 %vm1121_vm5, %v3396_v31 }
 0x254   : > { %v1965_v48 = vadd.f32 %v1938_v30, %v6282_v50  ;;  %v4420_v56 = vpop.f32.mrb[29].mxu1  ;;  %v3398_v50 = vshrl.u32 %v4840_v49, 16  ;;  %4688 = vmatprep.mubr.msk.bf16.mxu1 %vm4898_vm1, %v4897_v1 }
 0x255   : > { %v1941_v61 = vpop.f32.mrb[30].mxu1  ;;  %v3421_v56 = vrot.slane %v3419_v52, 2 }
 0x256   : > { %v1966_v14 = vadd.f32 %v1941_v61, %v6287_v0  ;;  %v4421_v37 = vpop.f32.mrb[31].mxu1  ;;  %v6345_v46 = vadd.f32 %v2141_v34, %v1965_v48  ;;  %v3400_v10 = vrot.slane %v3398_v50, 1  ;;  %v3403_v34 = vrot.slane %v3401_v51, 2 }
 0x257   : > { %v6348_v25 = vpop.f32.mrb[68].mxu0 }
 0x258   : > { %v4520_v18 = vpop.f32.mrb[69].mxu0  ;;  %v6351_v42 = vadd.f32 %v2144_v27, %v1966_v14  ;;  %v3404_v24 = vor.u32 %v3403_v34, %v3400_v10 }
 0x259   : > { %v6354_v23 = vpop.f32.mrb[70].mxu0 }
 0x25a   : > { %v4521_v0 = vpop.f32.mrb[71].mxu0  ;;  %v3405_v39 = vsel %vm2195_vm2, %v3395_v33, %v3404_v24 }
 0x25b   : > { %v1946_v4 = vpop.f32.mrb[32].mxu1  ;;  %4689 = vmatmul.mubr.msk.bf16.gmra.mrb[104].mxu1 %vm1121_vm5, %v3405_v39 }
 0x25c   : > { %v1967_v13 = vadd.f32 %v1946_v4, %v6298_v36  ;;  %v4424_v38 = vpop.f32.mrb[33].mxu1  ;;  %v3410_v36 = vshll.u32 %v4841_v44, 16  ;;  %4692 = vmatprep.mubr.msk.bf16.mxu1 %vm4898_vm1, %v4897_v1 }
 0x25d   : > { %v1949_v27 = vpop.f32.mrb[34].mxu1 }
 0x25e   : > { %v1968_v35 = vadd.f32 %v1949_v27, %v6303_v45  ;;  %v4425_v7 = vpop.f32.mrb[35].mxu1  ;;  %v6360_v28 = vadd.f32 %v2149_v3, %v1967_v13  ;;  %v3409_v3 = vrot.slane %v3407_v43, 1  ;;  %v3412_v11 = vrot.slane %v3410_v36, 2 }
 0x25f   : > { %v2513_v29 = vpop.f32.mrb[72].mxu0 }
 0x260   : > { %v4524_v19 = vpop.f32.mrb[73].mxu0  ;;  %v6364_v62 = vadd.f32 %v2152_v32, %v1968_v35  ;;  %v3413_v60 = vor.u32 %v3412_v11, %v3409_v3 }
 0x261   : > { %v2516_v41 = vpop.f32.mrb[74].mxu0 }
 0x262   : > { %v4525_v45 = vpop.f32.mrb[75].mxu0  ;;  %v3414_v8 = vsel %vm2195_vm2, %v3404_v24, %v3413_v60 }
 0x263   : > { %v1954_v9 = vpop.f32.mrb[36].mxu1  ;;  %4693 = vmatmul.mubr.msk.bf16.gmra.mrb[108].mxu1 %vm1121_vm5, %v3414_v8 }
 0x264   : > { %v1969_v21 = vadd.f32 %v1954_v9, %v6314_v17  ;;  %v4428_v16 = vpop.f32.mrb[37].mxu1  ;;  %v3416_v17 = vshrl.u32 %v4842_v22, 16  ;;  %4696 = vmatprep.mubr.msk.bf16.mxu1 %vm4898_vm1, %v4897_v1 }
 0x265   : > { %v1957_v32 = vpop.f32.mrb[38].mxu1 }
 0x266   : > { %v1970_v63 = vadd.f32 %v1957_v32, %v6316_v26  ;;  %v4429_v5 = vpop.f32.mrb[39].mxu1  ;;  %v6372_v55 = vadd.f32 %v6337_v40, %v1969_v21  ;;  %v3425_v26 = vshrl.u32 %v4843_v58, 16  ;;  %v3428_v40 = vshll.u32 %v4843_v58, 16 }
 0x267   : > { %v2521_v2 = vpop.f32.mrb[76].mxu0  ;;  %v3418_v48 = vrot.slane %v3416_v17, 1 }
 0x268   : > { %v4528_v53 = vpop.f32.mrb[77].mxu0  ;;  %v6378_v57 = vadd.f32 %v6341_v12, %v1970_v63  ;;  %v3427_v37 = vrot.slane %v3425_v26, 1  ;;  %v3430_v49 = vrot.slane %v3428_v40, 2 }
 0x269   : > { %v2524_v30 = vpop.f32.mrb[78].mxu0  ;;  %v3422_v14 = vor.u32 %v3421_v56, %v3418_v48 }
 0x26a   : > { %v4529_v59 = vpop.f32.mrb[79].mxu0 }
 0x26b   : > { %v2336_v15 = vpop.f32.mrb[40].mxu1  ;;  %v3423_v51 = vsel %vm2195_vm2, %v3413_v60, %v3422_v14 }
 0x26c   : > { %v2375_v61 = vadd.f32 %v2336_v15, %v6327_v6  ;;  %v4484_v33 = vpop.f32.mrb[41].mxu1  ;;  %4697 = vmatmul.mubr.msk.bf16.gmra.mrb[112].mxu1 %vm1121_vm5, %v3423_v51  ;;  %v3431_v6 = vor.u32 %v3430_v49, %v3427_v37 }
 0x26d   : > { %v2339_v12 = vpop.f32.mrb[42].mxu1  ;;  %4700 = vmatprep.mubr.msk.bf16.mxu1 %vm4898_vm1, %v4897_v1 }
 0x26e   : > { %v2376_v31 = vadd.f32 %v2339_v12, %v6329_v20  ;;  %v4485_v18 = vpop.f32.mrb[43].mxu1  ;;  %v2544_v50 = vadd.f32 %v6348_v25, %v2375_v61  ;;  %v3432_v25 = vsel %vm2195_vm2, %v3422_v14, %v3431_v6 }
 0x26f   : > { %v2529_v0 = vpop.f32.mrb[80].mxu0 }
 0x270   : > { %v4532_v10 = vpop.f32.mrb[81].mxu0  ;;  %v2545_v34 = vadd.f32 %v6354_v23, %v2376_v31 }
 0x271   : > { %v2532_v4 = vpop.f32.mrb[82].mxu0 }
 0x272   : > { %v4533_v13 = vpop.f32.mrb[83].mxu0 }
 0x273   : > { %v2344_v38 = vpop.f32.mrb[44].mxu1 }
 0x274   : > { %v2377_v20 = vadd.f32 %v2344_v38, %v6333_v47  ;;  %v4488_v24 = vpop.f32.mrb[45].mxu1  ;;  %4701 = vmatmul.mubr.msk.bf16.gmra.mrb[116].mxu1 %vm1121_vm5, %v3432_v25 }
 0x275   : > { %v2347_v27 = vpop.f32.mrb[46].mxu1 }
 0x276   : > { %v2378_v35 = vadd.f32 %v2347_v27, %v6339_v54  ;;  %v4489_v7 = vpop.f32.mrb[47].mxu1  ;;  %v2546_v39 = vadd.f32 %v2513_v29, %v2377_v20 }
 0x277   : > { %v2537_v23 = vpop.f32.mrb[84].mxu0 }
 0x278   : > { %v4536_v44 = vpop.f32.mrb[85].mxu0  ;;  %v2547_v19 = vadd.f32 %v2516_v41, %v2378_v35 }
 0x279   : > { %v2540_v43 = vpop.f32.mrb[86].mxu0 }
 0x27a   : > { %v4537_v36 = vpop.f32.mrb[87].mxu0 }
 0x27b   : > { %v2352_v45 = vpop.f32.mrb[48].mxu1 }
 0x27c   : > { %v2379_v3 = vadd.f32 %v2352_v45, %v6345_v46  ;;  %v4492_v11 = vpop.f32.mrb[49].mxu1 }
 0x27d   : > { %v2355_v47 = vpop.f32.mrb[50].mxu1 }
 0x27e   : > { %v2380_v9 = vadd.f32 %v2355_v47, %v6351_v42  ;;  %v4493_v21 = vpop.f32.mrb[51].mxu1  ;;  %v2548_v16 = vadd.f32 %v2521_v2, %v2379_v3 }
 0x27f   : > { %v2919_v60 = vpop.f32.mrb[88].mxu0 }
 0x280   : > { %v4592_v54 = vpop.f32.mrb[89].mxu0  ;;  %v2549_v32 = vadd.f32 %v2524_v30, %v2380_v9 }
 0x281   : > { %v2922_v29 = vpop.f32.mrb[90].mxu0 }
 0x282   : > { %v4593_v63 = vpop.f32.mrb[91].mxu0 }
 0x283   : > { %v2360_v5 = vpop.f32.mrb[52].mxu1 }
 0x284   : > { %v2381_v41 = vadd.f32 %v2360_v5, %v6360_v28  ;;  %v4496_v8 = vpop.f32.mrb[53].mxu1 }
 0x285   : > { %v2363_v22 = vpop.f32.mrb[54].mxu1 }
 0x286   : > { %v2382_v58 = vadd.f32 %v2363_v22, %v6364_v62  ;;  %v4497_v53 = vpop.f32.mrb[55].mxu1  ;;  %v2550_v46 = vadd.f32 %v2529_v0, %v2381_v41 }
 0x287   : > { %v2927_v17 = vpop.f32.mrb[92].mxu0 }
 0x288   : > { %v4596_v52 = vpop.f32.mrb[93].mxu0  ;;  %v2551_v26 = vadd.f32 %v2532_v4, %v2382_v58 }
 0x289   : > { %v2930_v42 = vpop.f32.mrb[94].mxu0 }
 0x28a   : > { %v4597_v40 = vpop.f32.mrb[95].mxu0 }
 0x28b   : > { %v2368_v2 = vpop.f32.mrb[56].mxu1 }
 0x28c   : > { %v2383_v59 = vadd.f32 %v2368_v2, %v6372_v55  ;;  %v4500_v30 = vpop.f32.mrb[57].mxu1  ;;  %v3956_v2 = vld [vmem:[%s6541_s6] ss:$0 sm:$0xff] }
 0x28d   : > { %v2371_v48 = vpop.f32.mrb[58].mxu1 }
 0x28e   : > { %v2384_v56 = vadd.f32 %v2371_v48, %v6378_v57  ;;  %v4501_v15 = vpop.f32.mrb[59].mxu1  ;;  %v2552_v28 = vadd.f32 %v2537_v23, %v2383_v59 }
 0x28f   : > { %v2935_v61 = vpop.f32.mrb[96].mxu0 }
 0x290   : > { %v4600_v33 = vpop.f32.mrb[97].mxu0  ;;  %v2553_v14 = vadd.f32 %v2540_v43, %v2384_v56 }
 0x291   : > { %v2938_v62 = vpop.f32.mrb[98].mxu0 }
 0x292   : > { %v4601_v12 = vpop.f32.mrb[99].mxu0 }
 0x293   : > { %v2708_v37 = vpop.f32.mrb[60].mxu1 }
 0x294   : > { %v2747_v49 = vadd.f32 %v2708_v37, %v2544_v50  ;;  %v4556_v31 = vpop.f32.mrb[61].mxu1 }
 0x295   : > { %v2711_v18 = vpop.f32.mrb[62].mxu1 }
 0x296   : > { %v2748_v51 = vadd.f32 %v2711_v18, %v2545_v34  ;;  %v4557_v0 = vpop.f32.mrb[63].mxu1  ;;  %v2958_v10 = vadd.f32 %v2919_v60, %v2747_v49 }
 0x297   : > { %v2943_v4 = vpop.f32.mrb[100].mxu0 }
 0x298   : > { %v4604_v55 = vpop.f32.mrb[101].mxu0  ;;  %v2959_v6 = vadd.f32 %v2922_v29, %v2748_v51 }
 0x299   : > { %v2946_v13 = vpop.f32.mrb[102].mxu0 }
 0x29a   : > { %v4605_v38 = vpop.f32.mrb[103].mxu0 }
 0x29b   : > { %v2716_v57 = vpop.f32.mrb[64].mxu1 }
 0x29c   : > { %v2749_v20 = vadd.f32 %v2716_v57, %v2546_v39  ;;  %v4560_v24 = vpop.f32.mrb[65].mxu1 }
 0x29d   : > { %v2719_v27 = vpop.f32.mrb[66].mxu1 }
 0x29e   : > { %v2750_v25 = vadd.f32 %v2719_v27, %v2547_v19  ;;  %v4561_v35 = vpop.f32.mrb[67].mxu1  ;;  %v2960_v7 = vadd.f32 %v2927_v17, %v2749_v20 }
 0x29f   : > { %v2951_v23 = vpop.f32.mrb[104].mxu0 }
 0x2a0   : > { %v4608_v44 = vpop.f32.mrb[105].mxu0  ;;  %v2961_v50 = vadd.f32 %v2930_v42, %v2750_v25 }
 0x2a1   : > { %v2954_v43 = vpop.f32.mrb[106].mxu0 }
 0x2a2   : > { %v4609_v36 = vpop.f32.mrb[107].mxu0 }
 0x2a3   : > { %v2724_v34 = vpop.f32.mrb[68].mxu1 }
 0x2a4   : > { %v2751_v45 = vadd.f32 %v2724_v34, %v2548_v16  ;;  %v4564_v3 = vpop.f32.mrb[69].mxu1 }
 0x2a5   : > { %v2727_v11 = vpop.f32.mrb[70].mxu1 }
 0x2a6   : > { %v2752_v47 = vadd.f32 %v2727_v11, %v2549_v32  ;;  %v4565_v9 = vpop.f32.mrb[71].mxu1  ;;  %v2962_v21 = vadd.f32 %v2935_v61, %v2751_v45 }
 0x2a8   : > { %v2963_v60 = vadd.f32 %v2938_v62, %v2752_v47 }
 0x2ab   : > { %v2732_v54 = vpop.f32.mrb[72].mxu1 }
 0x2ac   : > { %v2753_v39 = vadd.f32 %v2732_v54, %v2550_v46  ;;  %v4568_v29 = vpop.f32.mrb[73].mxu1 }
 0x2ad   : > { %v2735_v63 = vpop.f32.mrb[74].mxu1 }
 0x2ae   : > { %v2754_v19 = vadd.f32 %v2735_v63, %v2551_v26  ;;  %v4569_v5 = vpop.f32.mrb[75].mxu1  ;;  %v2964_v41 = vadd.f32 %v2943_v4, %v2753_v39 }
 0x2b0   : > { %v2965_v8 = vadd.f32 %v2946_v13, %v2754_v19 }
 0x2b3   : > { %v2740_v22 = vpop.f32.mrb[76].mxu1 }
 0x2b4   : > { %v2755_v58 = vadd.f32 %v2740_v22, %v2552_v28  ;;  %v4572_v53 = vpop.f32.mrb[77].mxu1 }
 0x2b5   : > { %v2743_v17 = vpop.f32.mrb[78].mxu1 }
 0x2b6   : > { %v2756_v52 = vadd.f32 %v2743_v17, %v2553_v14  ;;  %v4573_v16 = vpop.f32.mrb[79].mxu1  ;;  %v2966_v42 = vadd.f32 %v2951_v23, %v2755_v58 }
 0x2b8   : > { %v2967_v40 = vadd.f32 %v2954_v43, %v2756_v52 }
 0x2bb   : > { %v3088_v32 = vpop.f32.mrb[80].mxu1 }
 0x2bc   : > { %v3127_v46 = vadd.f32 %v3088_v32, %v2958_v10  ;;  %v4628_v59 = vpop.f32.mrb[81].mxu1 }
 0x2bd   : > { %v3091_v30 = vpop.f32.mrb[82].mxu1 }
 0x2be   : > { %v6404_v26 = vadd.f32 %v3956_v2, %v3127_v46  ;;  %v3128_v48 = vadd.f32 %v3091_v30, %v2959_v6  ;;  %v4629_v56 = vpop.f32.mrb[83].mxu1 }
 0x2c0   : > { %v6406_v15 = vadd.f32 %v3956_v2, %v3128_v48  ;;  %v3154_v28 = vmul.f32 %v6404_v26, %v6404_v26 }
 0x2c2   : > { %v3155_v61 = vmul.f32 %v6406_v15, %v6406_v15 }
 0x2c3   : > { %v3096_v33 = vpop.f32.mrb[84].mxu1 }
 0x2c4   : > { %v3164_v14 = vpack.c.bf16 %v3155_v61, %v3154_v28  ;;  %v3129_v62 = vadd.f32 %v3096_v33, %v2960_v7  ;;  %v4632_v12 = vpop.f32.mrb[85].mxu1 }
 0x2c5   : > { %v3099_v37 = vpop.f32.mrb[86].mxu1  ;;  %v6467_v12 = vld [vmem:[%s6542_s7] ss:$0 sm:$0xff] }
 0x2c6   : > { %v6412_v49 = vadd.f32 %v3956_v2, %v3129_v62  ;;  %v3130_v31 = vadd.f32 %v3099_v37, %v2961_v50  ;;  %v4633_v18 = vpop.f32.mrb[87].mxu1  ;;  %4663 = vmatmul.mubr.bf16.vlgmr.msra.gmra.mrb[108].mxu0 %v3164_v14 }
 0x2c7   : > { %4666 = vmatprep.mubr.msk.bf16.mxu0 %vm4898_vm1, %v4897_v1 }
 0x2c8   : > { %v6416_v51 = vadd.f32 %v3956_v2, %v3130_v31  ;;  %v3156_v0 = vmul.f32 %v6412_v49, %v6412_v49 }
 0x2ca   : > { %v3157_v10 = vmul.f32 %v6416_v51, %v6416_v51 }
 0x2cb   : > { %v3104_v4 = vpop.f32.mrb[88].mxu1 }
 0x2cc   : > { %v3131_v55 = vadd.f32 %v3104_v4, %v2962_v21  ;;  %v4636_v6 = vpop.f32.mrb[89].mxu1  ;;  %v3165_v13 = vpack.c.bf16 %v3157_v10, %v3156_v0 }
 0x2cd   : > { %v3107_v38 = vpop.f32.mrb[90].mxu1 }
 0x2ce   : > { %v6422_v57 = vadd.f32 %v3956_v2, %v3131_v55  ;;  %v3132_v20 = vadd.f32 %v3107_v38, %v2963_v60  ;;  %v4637_v24 = vpop.f32.mrb[91].mxu1  ;;  %4667 = vmatmul.mubr.bf16.gmra.mrb[112].mxu0 %v3165_v13  ;;  %v6475_v38 = vld [vmem:[%s6545_s10] ss:$0 sm:$0xff] }
 0x2cf   : > { %4670 = vmatprep.mubr.msk.bf16.mxu0 %vm4898_vm1, %v4897_v1 }
 0x2d0   : > { %v6426_v27 = vadd.f32 %v3956_v2, %v3132_v20  ;;  %v3158_v25 = vmul.f32 %v6422_v57, %v6422_v57 }
 0x2d2   : > { %v3159_v35 = vmul.f32 %v6426_v27, %v6426_v27 }
 0x2d3   : > { %v3112_v7 = vpop.f32.mrb[92].mxu1 }
 0x2d4   : > { %v3133_v23 = vadd.f32 %v3112_v7, %v2964_v41  ;;  %v4640_v44 = vpop.f32.mrb[93].mxu1  ;;  %v3166_v50 = vpack.c.bf16 %v3159_v35, %v3158_v25 }
 0x2d5   : > { %v3115_v43 = vpop.f32.mrb[94].mxu1 }
 0x2d6   : > { %v6432_v36 = vadd.f32 %v3956_v2, %v3133_v23  ;;  %v3134_v34 = vadd.f32 %v3115_v43, %v2965_v8  ;;  %v4641_v45 = vpop.f32.mrb[95].mxu1  ;;  %4671 = vmatmul.mubr.bf16.gmra.mrb[116].mxu0 %v3166_v50 }
 0x2d7   : > { %4674 = vmatprep.mubr.msk.bf16.mxu0 %vm4898_vm1, %v4897_v1 }
 0x2d8   : > { %v6436_v3 = vadd.f32 %v3956_v2, %v3134_v34  ;;  %v3160_v11 = vmul.f32 %v6432_v36, %v6432_v36 }
 0x2da   : > { %v3161_v47 = vmul.f32 %v6436_v3, %v6436_v3 }
 0x2db   : > { %v3120_v9 = vpop.f32.mrb[96].mxu1 }
 0x2dc   : > { %v3135_v21 = vadd.f32 %v3120_v9, %v2966_v42  ;;  %v4644_v60 = vpop.f32.mrb[97].mxu1  ;;  %v3167_v54 = vpack.c.bf16 %v3161_v47, %v3160_v11 }
 0x2dd   : > { %v3123_v39 = vpop.f32.mrb[98].mxu1 }
 0x2de   : > { %v6442_v29 = vadd.f32 %v3956_v2, %v3135_v21  ;;  %v3136_v63 = vadd.f32 %v3123_v39, %v2967_v40  ;;  %v4645_v19 = vpop.f32.mrb[99].mxu1  ;;  %4675 = vmatmul.mubr.bf16.gmra.mrb[120].mxu0 %v3167_v54 }
 0x2df   : > { %4678 = vmatprep.mubr.msk.bf16.mxu0 %vm4898_vm1, %v4897_v1 }
 0x2e0   : > { %v6446_v5 = vadd.f32 %v3956_v2, %v3136_v63  ;;  %v3162_v41 = vmul.f32 %v6442_v29, %v6442_v29 }
 0x2e2   : > { %v3163_v8 = vmul.f32 %v6446_v5, %v6446_v5 }
 0x2e4   : > { %v3168_v22 = vpack.c.bf16 %v3163_v8, %v3162_v41 }
 0x2e6   : > { %4679 = vmatmul.mubr.bf16.gmra.mrb[124].mxu0 %v3168_v22 }
 0x326   : > { %v3485_v58 = vpop.f32.mrb[100].mxu1 }
 0x327   : > { %v4686_v53 = vpop.f32.mrb[101].mxu1  ;;  %v3486_v35 = vadd.f32 %v6475_v38, %v3485_v58 }
 0x328   : > { %v3488_v17 = vpop.f32.mrb[102].mxu1 }
 0x329   : > { %v4687_v52 = vpop.f32.mrb[103].mxu1  ;;  %v3489_v34 = vadd.f32 %v6475_v38, %v3488_v17 }
 0x32e   : > { %v3493_v16 = vpop.f32.mrb[104].mxu1 }
 0x32f   : > { %v4690_v42 = vpop.f32.mrb[105].mxu1  ;;  %v3494_v54 = vadd.f32 %v6475_v38, %v3493_v16 }
 0x330   : > { %v3496_v40 = vpop.f32.mrb[106].mxu1 }
 0x331   : > { %v4691_v32 = vpop.f32.mrb[107].mxu1  ;;  %v3497_v8 = vadd.f32 %v6475_v38, %v3496_v40 }
 0x336   : > { %v6452_v46 = vpop.f32.mrb[108].mxu1 }
 0x337   : > { %v4694_v1 = vpop.f32.mrb[109].mxu1 }
 0x338   : > { %v6454_v2 = vpop.f32.mrb[110].mxu1 }
 0x339   : > { %v4695_v59 = vpop.f32.mrb[111].mxu1 }
 0x33f   : > { %v6456_v30 = vpop.f32.mrb[112].mxu1 }
 0x340   : > { %v4698_v48 = vpop.f32.mrb[113].mxu1 }
 0x341   : > { %v6458_v56 = vpop.f32.mrb[114].mxu1  ;;  %v3505_v48 = vadd.f32 %v6475_v38, %v6454_v2 }
 0x342   : > { %v4699_v28 = vpop.f32.mrb[115].mxu1 }
 0x347   : > { %v6460_v61 = vpop.f32.mrb[116].mxu1 }
 0x348   : > { %v4702_v33 = vpop.f32.mrb[117].mxu1 }
 0x349   : > { %v6462_v14 = vpop.f32.mrb[118].mxu1 }
 0x34a   : > { %v4703_v62 = vpop.f32.mrb[119].mxu1 }
 0x399   : > { %v3274_v37 = vpop.f32.mrb[108].mxu0 }
 0x39a   : > { %v3275_v31 = vadd.f32 %v6467_v12, %v3274_v37  ;;  %v4664_v18 = vpop.f32.mrb[109].mxu0 }
 0x39b   : > { %v3277_v0 = vpop.f32.mrb[110].mxu0 }
 0x39c   : > { %4844 = vrsqrt.f32 %v3275_v31  ;;  %v3278_v10 = vadd.f32 %v6467_v12, %v3277_v0  ;;  %v4665_v4 = vpop.f32.mrb[111].mxu0 }
 0x39e   : > { %4846 = vrsqrt.f32 %v3278_v10 }
 0x3a1   : > { %v3282_v55 = vpop.f32.mrb[112].mxu0 }
 0x3a2   : > { %v3283_v6 = vadd.f32 %v6467_v12, %v3282_v55  ;;  %v4668_v13 = vpop.f32.mrb[113].mxu0  ;;  %v3513_v55 = vadd.f32 %v6475_v38, %v6458_v56 }
 0x3a3   : > { %v3285_v20 = vpop.f32.mrb[114].mxu0 }
 0x3a4   : > { %4848 = vrsqrt.f32 %v3283_v6  ;;  %v3286_v24 = vadd.f32 %v6467_v12, %v3285_v20  ;;  %v4669_v25 = vpop.f32.mrb[115].mxu0  ;;  %v3518_v6 = vadd.f32 %v6475_v38, %v6460_v61 }
 0x3a5   : > { %v3521_v25 = vadd.f32 %v6475_v38, %v6462_v14 }
 0x3a6   : > { %v4845_v7 = vpop.eup %4844  ;;  %4850 = vrsqrt.f32 %v3286_v24 }
 0x3a7   : > { %v3323_v23 = vmul.f32 %v4845_v7, %v6404_v26 }
 0x3a8   : > { %v4847_v44 = vpop.eup %4846 }
 0x3a9   : > { %v3524_v50 = vadd.f32 %v3486_v35, %v3323_v23  ;;  %v3324_v43 = vmul.f32 %v4847_v44, %v6406_v15  ;;  %v3290_v45 = vpop.f32.mrb[116].mxu0 }
 0x3aa   : > { %v3291_v11 = vadd.f32 %v6467_v12, %v3290_v45  ;;  %v4672_v47 = vpop.f32.mrb[117].mxu0 }
 0x3ab   : > { %3534 = vst [vmem:[%s6484_s22] sm:$0xff] %v3524_v50  ;;  %v3525_v9 = vadd.f32 %v3489_v34, %v3324_v43  ;;  %v3293_v26 = vpop.f32.mrb[118].mxu0 }
 0x3ac   : > { %4852 = vrsqrt.f32 %v3291_v11  ;;  %v3294_v21 = vadd.f32 %v6467_v12, %v3293_v26  ;;  %v4673_v60 = vpop.f32.mrb[119].mxu0 }
 0x3ad   : > { %3535 = vst [vmem:[%s6484_s22 + $0x8] sm:$0xff] %v3525_v9 }
 0x3ae   : > { %v4849_v39 = vpop.eup %4848  ;;  %4854 = vrsqrt.f32 %v3294_v21 }
 0x3af   : > { %v3325_v15 = vmul.f32 %v4849_v39, %v6412_v49  ;;  %v3502_v49 = vadd.f32 %v6475_v38, %v6452_v46 }
 0x3b0   : > { %v4851_v63 = vpop.eup %4850 }
 0x3b1   : > { %v3526_v19 = vadd.f32 %v3494_v54, %v3325_v15  ;;  %v3326_v41 = vmul.f32 %v4851_v63, %v6416_v51  ;;  %v3298_v22 = vpop.f32.mrb[120].mxu0 }
 0x3b2   : > { %v3299_v58 = vadd.f32 %v6467_v12, %v3298_v22  ;;  %v4676_v53 = vpop.f32.mrb[121].mxu0 }
 0x3b3   : > { %3536 = vst [vmem:[%s6484_s22 + $0x10] sm:$0xff] %v3526_v19  ;;  %v3527_v17 = vadd.f32 %v3497_v8, %v3326_v41  ;;  %v3301_v52 = vpop.f32.mrb[122].mxu0 }
 0x3b4   : > { %4856 = vrsqrt.f32 %v3299_v58  ;;  %v3302_v16 = vadd.f32 %v6467_v12, %v3301_v52  ;;  %v4677_v42 = vpop.f32.mrb[123].mxu0 }
 0x3b5   : > { %3537 = vst [vmem:[%s6484_s22 + $0x18] sm:$0xff] %v3527_v17 }
 0x3b6   : > { %v4853_v32 = vpop.eup %4852  ;;  %4858 = vrsqrt.f32 %v3302_v16 }
 0x3b7   : > { %v3327_v51 = vmul.f32 %v4853_v32, %v6422_v57 }
 0x3b8   : > { %v4855_v40 = vpop.eup %4854 }
 0x3b9   : > { %v3528_v1 = vadd.f32 %v3502_v49, %v3327_v51  ;;  %v3328_v59 = vmul.f32 %v4855_v40, %v6426_v27  ;;  %v3306_v28 = vpop.f32.mrb[124].mxu0  ;;  %v3510_v27 = vadd.f32 %v6475_v38, %v6456_v30 }
 0x3ba   : > { %v3307_v33 = vadd.f32 %v6467_v12, %v3306_v28  ;;  %v4680_v62 = vpop.f32.mrb[125].mxu0 }
 0x3bb   : > { %3538 = vst [vmem:[%s6484_s22 + $0x20] sm:$0xff] %v3528_v1  ;;  %v3529_v37 = vadd.f32 %v3505_v48, %v3328_v59  ;;  %v3309_v46 = vpop.f32.mrb[126].mxu0 }
 0x3bc   : > { %4860 = vrsqrt.f32 %v3307_v33  ;;  %v3310_v31 = vadd.f32 %v6467_v12, %v3309_v46  ;;  %v4681_v57 = vpop.f32.mrb[127].mxu0 }
 0x3bd   : > { %3539 = vst [vmem:[%s6484_s22 + $0x28] sm:$0xff] %v3529_v37 }
 0x3be   : > { %v4857_v18 = vpop.eup %4856  ;;  %4862 = vrsqrt.f32 %v3310_v31 }
 0x3bf   : > { %v3329_v2 = vmul.f32 %v4857_v18, %v6432_v36 }
 0x3c0   : > { %v4859_v0 = vpop.eup %4858 }
 0x3c1   : > { %v3530_v10 = vadd.f32 %v3510_v27, %v3329_v2  ;;  %v3330_v4 = vmul.f32 %v4859_v0, %v6436_v3 }
 0x3c3   : > { %3540 = vst [vmem:[%s6484_s22 + $0x30] sm:$0xff] %v3530_v10  ;;  %v3531_v12 = vadd.f32 %v3513_v55, %v3330_v4 }
 0x3c5   : > { %3541 = vst [vmem:[%s6484_s22 + $0x38] sm:$0xff] %v3531_v12 }
 0x3c6   : > { %v4861_v30 = vpop.eup %4860 }
 0x3c7   : > { %v3331_v13 = vmul.f32 %v4861_v30, %v6442_v29 }
 0x3c8   : > { %v4863_v20 = vpop.eup %4862 }
 0x3c9   : > { %v3532_v24 = vadd.f32 %v3518_v6, %v3331_v13  ;;  %v3332_v36 = vmul.f32 %v4863_v20, %v6446_v5 }
 0x3cb   : > { %3542 = vst [vmem:[%s6484_s22 + $0x40] sm:$0xff] %v3532_v24  ;;  %v3533_v3 = vadd.f32 %v3521_v25, %v3332_v36 }
 0x3cd   : > { %3543 = vst [vmem:[%s6484_s22 + $0x48] sm:$0xff] %v3533_v3 }
 0x3ce PF: > { %s21_s19 = sadd.s32 1, %s4895_s19   ;;  %s6547_s17 = smov %s4891_s18 }
 0x3cf   : > { %p18_p5 = scmp.ge.s32.totalorder %s21_s19, 4   ;;  %s6548_s18 = smov %s6550_s20 }
 0x3d1   :  { %20 = sbr.rel (!%p18_p5) target bundleno = 2 (0x2), region = 108 }

</bundles_post_ra>
